<compile_context>
chip_gen: v7x
topology: tpu7x:2x2x1
jax: 0.10.0
libtpu: 0.0.40
codegen_flags: <defaults>
</compile_context>

<pallas_src>
import jax
import jax.numpy as jnp
from jax import lax
from jax.experimental import pallas as pl
from jax.experimental.pallas import tpu as pltpu

BN_EPS = 1e-5
LRELU_SLOPE = 0.01


def _vmem_limit_bytes():
    """Generation-aware scoped-VMEM budget (v7x: 64 MiB phys, v5e/v6e: 128)."""
    try:
        cap = int(pltpu.get_tpu_info().vmem_capacity_bytes)
    except Exception:
        cap = 64 * 1024 * 1024
    return min(cap * 3 // 4, 96 * 1024 * 1024)


def _compiler_params(dimension_semantics):
    cp_cls = getattr(pltpu, "CompilerParams", None)
    if cp_cls is None:  # very old jax fallback
        cp_cls = getattr(pltpu, "TPUCompilerParams")
    return cp_cls(dimension_semantics=dimension_semantics,
                  vmem_limit_bytes=_vmem_limit_bytes())


def _largest_divisor_le(n, cap):
    cap = max(1, min(n, cap))
    for d in range(cap, 0, -1):
        if n % d == 0:
            return d
    return 1


# ----------------------------------------------------------------------------
# Conv 3x3 (pad=1, stride=1, no bias) + fused BatchNorm statistics
# ----------------------------------------------------------------------------
def _conv3x3_stats_kernel(xm_ref, h0_ref, h1_ref, w_ref,
                          y_ref, sum_ref, ssq_ref):
    """One (image, row-block) grid step.

    xm_ref : (TH, W+2, Cin)   padded rows [rb*TH, rb*TH+TH)          bf16
    h0_ref : (W+2, Cin)       padded row   rb*TH+TH     (halo)       bf16
    h1_ref : (W+2, Cin)       padded row   rb*TH+TH+1   (halo)       bf16
    w_ref  : (3, 3, Cin, Cout)  VMEM-resident weights                bf16
    y_ref  : (TH, W, Cout)    conv output tile                       bf16
    sum/ssq: (1, Cout)        per-image BN stats (resident over rb)  f32
    """
    rb = pl.program_id(1)

    @pl.when(rb == 0)
    def _init_stats():
        sum_ref[...] = jnp.zeros_like(sum_ref)
        ssq_ref[...] = jnp.zeros_like(ssq_ref)

    th, wp2, cin = xm_ref.shape
    w_out = wp2 - 2
    cout = w_ref.shape[-1]

    # (TH+2, W+2, Cin) window: main block + two halo rows.  Concatenation is
    # along the leading (non-layout) axis -> cheap, no lane/sublane relayout.
    xw = jnp.concatenate(
        [xm_ref[...], h0_ref[...][None], h1_ref[...][None]], axis=0)

    # 9 tap matmuls (M = TH*W, K = Cin) accumulated in a local f32 value and
    # stored once.  kh slices are free (leading dim), kw slices are cheap
    # sublane shifts on the VMEM window.
    acc = jnp.zeros((th * w_out, cout), jnp.float32)
    for kh in range(3):
        for kw in range(3):
            lhs = xw[kh:kh + th, kw:kw + w_out, :].reshape(th * w_out, cin)
            acc = acc + jnp.dot(lhs, w_ref[kh, kw, :, :],
                                preferred_element_type=jnp.float32)

    y_ref[...] = acc.reshape(th, w_out, cout).astype(y_ref.dtype)

    # Fused BatchNorm statistics from the full-precision accumulator (rides
    # the free VPU/XLU slots while the step is MXU/DMA bound).
    sum_ref[...] += jnp.sum(acc, axis=0, keepdims=True)
    ssq_ref[...] += jnp.sum(acc * acc, axis=0, keepdims=True)


def conv3x3_bn_stats(x, w):
    """3x3 conv (pad=1, no bias) + per-image BN statistics.

    x: (N, H, W, Cin) float;  w: (Cout, Cin, 3, 3) PyTorch layout.
    Returns y (N, H, W, Cout) bf16, sums (N,1,Cout) f32, ssqs (N,1,Cout) f32.

    The conv bias is intentionally omitted: train-mode BatchNorm's batch-mean
    subtraction cancels a per-channel bias exactly.
    """
    n, h, wim, cin = x.shape
    cout = w.shape[0]

    # Pad channels to a multiple of 8 (zero taps), pad H/W by 1, cast to bf16.
    # TODO(synk): fold the spatial pad (in-kernel halo masking) and this cast
    # into the producing kernel to save one activation HBM round trip / layer.
    cpad = (-cin) % 8
    xp = jnp.pad(x.astype(jnp.bfloat16),
                 ((0, 0), (1, 1), (1, 1), (0, cpad)))
    cin_p = cin + cpad
    wm = jnp.transpose(w, (2, 3, 1, 0)).astype(jnp.bfloat16)   # (3,3,Cin,Cout)
    if cpad:
        wm = jnp.pad(wm, ((0, 0), (0, 0), (0, cpad), (0, 0)))

    # Row-block size: target >=512 MXU rows per step, must divide H exactly.
    th = _largest_divisor_le(h, max(1, 512 // max(wim, 1)))
    hb = h // th

    y, sums, ssqs = pl.pallas_call(
        _conv3x3_stats_kernel,
        grid=(n, hb),
        in_specs=[
            # main TH-row block of the padded input
            pl.BlockSpec((None, th, wim + 2, cin_p),
                         lambda ni, rb: (ni, rb, 0, 0)),
            # two single-row halo blocks (same array, shifted element index)
            pl.BlockSpec((None, None, wim + 2, cin_p),
                         lambda ni, rb: (ni, rb * th + th, 0, 0)),
            pl.BlockSpec((None, None, wim + 2, cin_p),
                         lambda ni, rb: (ni, rb * th + th + 1, 0, 0)),
            # full weights, constant block index -> fetched once, resident
            pl.BlockSpec((3, 3, cin_p, cout),
                         lambda ni, rb: (0, 0, 0, 0)),
        ],
        out_specs=(
            pl.BlockSpec((None, th, wim, cout), lambda ni, rb: (ni, rb, 0, 0)),
            pl.BlockSpec((None, 1, cout), lambda ni, rb: (ni, 0, 0)),
            pl.BlockSpec((None, 1, cout), lambda ni, rb: (ni, 0, 0)),
        ),
        out_shape=(
            jax.ShapeDtypeStruct((n, h, wim, cout), jnp.bfloat16),
            jax.ShapeDtypeStruct((n, 1, cout), jnp.float32),
            jax.ShapeDtypeStruct((n, 1, cout), jnp.float32),
        ),
        # N is "parallel" (2-TC megacore on v7x); the row-block axis is
        # "arbitrary" because the fused BN statistics accumulate across it.
        # TODO(synk): when N == 1 on v7x, shard row blocks across the two
        # TensorCores via per-core partial statistics.
        compiler_params=_compiler_params(("parallel", "arbitrary")),
    )(xp, xp, xp, wm)
    return y, sums, ssqs


# ----------------------------------------------------------------------------
# Fused BatchNorm affine + LeakyReLU (lane-dense, tiled over rows)
# ----------------------------------------------------------------------------
def _bn_lrelu_kernel(y_ref, scale_ref, shift_ref, o_ref):
    z = y_ref[...].astype(jnp.float32) * scale_ref[...] + shift_ref[...]
    o_ref[...] = jnp.where(z > 0, z, LRELU_SLOPE * z).astype(o_ref.dtype)


def _pick_row_tile(rows, lane_width):
    # in (bf16) + out (<=f32), double-buffered; stay well under the budget.
    budget = _vmem_limit_bytes() // 4
    per_row = lane_width * (2 + 4) * 2
    cap = max(8, budget // max(per_row, 1))
    if rows <= cap:
        return rows
    return max(8, (cap // 8) * 8)          # multiple of 8; cdiv grid handles tail


def bn_lrelu_apply(y, scale, shift, out_dtype):
    """y: (N,H,W,C) bf16; per-channel scale/shift; returns (N,H,W,C) out_dtype.

    Lane-dense: y is viewed as (N*H, W*C) (free contiguous reshape) so stores
    use full 128-lane vst even for C < 128; scale/shift are tiled to (1, W*C)
    in the wrapper so per-channel semantics are preserved.
    """
    n, h, wim, c = y.shape
    rows, lanes = n * h, wim * c
    y2 = y.reshape(rows, lanes)
    scale_row = jnp.tile(scale.astype(jnp.float32), wim).reshape(1, lanes)
    shift_row = jnp.tile(shift.astype(jnp.float32), wim).reshape(1, lanes)

    tr = _pick_row_tile(rows, lanes)
    out = pl.pallas_call(
        _bn_lrelu_kernel,
        grid=(pl.cdiv(rows, tr),),
        in_specs=[pl.BlockSpec((tr, lanes), lambda i: (i, 0)),
                  pl.BlockSpec((1, lanes), lambda i: (0, 0)),
                  pl.BlockSpec((1, lanes), lambda i: (0, 0))],
        out_specs=pl.BlockSpec((tr, lanes), lambda i: (i, 0)),
        out_shape=jax.ShapeDtypeStruct((rows, lanes), out_dtype),
        compiler_params=_compiler_params(("parallel",)),
    )(y2, scale_row, shift_row)
    return out.reshape(n, h, wim, c)


# ----------------------------------------------------------------------------
# DoubleConv
# ----------------------------------------------------------------------------
def conv_bn_lrelu(x, w, gamma, beta, out_dtype):
    n, h, wim, _ = x.shape
    y, sums, ssqs = conv3x3_bn_stats(x, w)
    cnt = float(n * h * wim)
    mean = jnp.sum(sums, axis=(0, 1)) / cnt
    ex2 = jnp.sum(ssqs, axis=(0, 1)) / cnt
    # NOTE: single-pass variance (E[x^2]-E[x]^2) in f32; post-conv activations
    # are near zero-mean so cancellation is benign here.
    var = jnp.maximum(ex2 - mean * mean, 0.0)          # biased (train) variance
    scale = gamma * lax.rsqrt(var + BN_EPS)
    shift = beta - mean * scale
    return bn_lrelu_apply(y, scale, shift, out_dtype)


def double_conv(x, p):
    x = conv_bn_lrelu(x, p["w1"], p["g1"], p["be1"], jnp.bfloat16)
    x = conv_bn_lrelu(x, p["w2"], p["g2"], p["be2"], jnp.float32)
    return x


def init_double_conv(key, cin, cout):
    def _init_w(k, co, ci):
        bound = 1.0 / jnp.sqrt(ci * 9.0)
        return jax.random.uniform(k, (co, ci, 3, 3), jnp.float32, -bound, bound)

    k1, k2 = jax.random.split(key)
    return dict(
        w1=_init_w(k1, cout, cin),
        g1=jnp.ones((cout,), jnp.float32), be1=jnp.zeros((cout,), jnp.float32),
        w2=_init_w(k2, cout, cout),
        g2=jnp.ones((cout,), jnp.float32), be2=jnp.zeros((cout,), jnp.float32),
    )


@jax.jit
def double_conv_forward(params, x_nchw):
    x = jnp.transpose(x_nchw, (0, 2, 3, 1)).astype(jnp.float32)    # -> NHWC
    y = double_conv(x, params)
    return jnp.transpose(y, (0, 3, 1, 2)).astype(jnp.float32)      # -> NCHW


def _reference_double_conv(x_nchw, p):
    """Pure-JAX f32 reference (train-mode BN; conv bias cancels)."""
    def conv(x, w):
        return lax.conv_general_dilated(
            x, w, (1, 1), ((1, 1), (1, 1)),
            dimension_numbers=("NCHW", "OIHW", "NCHW"))

    def bn_lrelu(y, g, b):
        mean = jnp.mean(y, axis=(0, 2, 3), keepdims=True)
        var = jnp.mean((y - mean) ** 2, axis=(0, 2, 3), keepdims=True)
        z = ((y - mean) * lax.rsqrt(var + BN_EPS) * g.reshape(1, -1, 1, 1)
             + b.reshape(1, -1, 1, 1))
        return jnp.where(z > 0, z, LRELU_SLOPE * z)

    y = bn_lrelu(conv(x_nchw, p["w1"]), p["g1"], p["be1"])
    return bn_lrelu(conv(y, p["w2"]), p["g2"], p["be2"])


if __name__ == "__main__":
    key = jax.random.PRNGKey(0)
    in_channels, out_channels = 4, 32
    x = jax.random.normal(jax.random.fold_in(key, 1),
                          (2, in_channels, 16, 16), dtype=jnp.float32)
    params = init_double_conv(jax.random.fold_in(key, 2),
                              in_channels, out_channels)

    y = jax.block_until_ready(double_conv_forward(params, x))
    assert y.shape == (2, out_channels, 16, 16), y.shape
    assert bool(jnp.all(jnp.isfinite(y)))

    # Loose correctness check vs. an f32 XLA reference (the kernel feeds the
    # MXU bf16, so tolerances are generous).
    y_ref = jax.block_until_ready(_reference_double_conv(x, params))
    max_err = float(jnp.max(jnp.abs(y - y_ref)))
    assert max_err < 0.2, f"max abs err vs reference: {max_err}"

    print("KERNEL_OK")
</pallas_src>

<mosaic_0001>
module attributes {stable_mosaic.version = 11 : i64} {
  func.func @_conv3x3_stats_kernel(%arg0: i32, %arg1: i32, %arg2: memref<1x16x18x8xbf16, #tpu.memory_space<vmem>>, %arg3: memref<1x1x18x8xbf16, #tpu.memory_space<vmem>>, %arg4: memref<1x1x18x8xbf16, #tpu.memory_space<vmem>>, %arg5: memref<3x3x8x32xbf16, #tpu.memory_space<vmem>>, %arg6: memref<1x16x16x32xbf16, #tpu.memory_space<vmem>>, %arg7: memref<1x1x32xf32, #tpu.memory_space<vmem>>, %arg8: memref<1x1x32xf32, #tpu.memory_space<vmem>>) attributes {dimension_semantics = [#tpu.dimension_semantics<parallel>, #tpu.dimension_semantics<arbitrary>], iteration_bounds = array<i64: 2, 1>, scalar_prefetch = 0 : i64, scratch_operands = 0 : i64, tpu.core_type = #tpu.core_type<tc>, window_params = [{transform_indices = @transform_0, window_bounds = array<i64: 1, 16, 18, 8>}, {transform_indices = @transform_1, window_bounds = array<i64: 1, 1, 18, 8>}, {transform_indices = @transform_2, window_bounds = array<i64: 1, 1, 18, 8>}, {pipeline_mode = #tpu.pipeline_mode<synchronous>, transform_indices = @transform_3, window_bounds = array<i64: 3, 3, 8, 32>}, {transform_indices = @transform_4, window_bounds = array<i64: 1, 16, 16, 32>}, {transform_indices = @transform_5, window_bounds = array<i64: 1, 1, 32>}, {transform_indices = @transform_6, window_bounds = array<i64: 1, 1, 32>}]} {
    %c0_i32 = arith.constant 0 : i32
    %0 = arith.cmpi eq, %arg1, %c0_i32 : i32
    %1 = arith.extui %0 : i1 to i32
    %c0_i32_0 = arith.constant 0 : i32
    %2 = arith.cmpi ne, %1, %c0_i32_0 : i32
    scf.if %2 {
      %cst_73 = arith.constant 0.000000e+00 : f32
      %89 = vector.broadcast %cst_73 : f32 to vector<1x32xf32>
      %c0_74 = arith.constant 0 : index
      %c0_75 = arith.constant 0 : index
      %c0_76 = arith.constant 0 : index
      %90 = vector.load %arg7[%c0_74, %c0_75, %c0_76] : memref<1x1x32xf32, #tpu.memory_space<vmem>>, vector<1x1x32xf32>
      %91 = vector.shape_cast %90 : vector<1x1x32xf32> to vector<1x32xf32>
      %92 = vector.shape_cast %89 : vector<1x32xf32> to vector<1x1x32xf32>
      tpu.vector_store %arg7[%c0_74, %c0_75, %c0_76], %92 {strides = array<i32>} : memref<1x1x32xf32, #tpu.memory_space<vmem>>, vector<1x1x32xf32>,
      %cst_77 = arith.constant 0.000000e+00 : f32
      %93 = vector.broadcast %cst_77 : f32 to vector<1x32xf32>
      %c0_78 = arith.constant 0 : index
      %c0_79 = arith.constant 0 : index
      %c0_80 = arith.constant 0 : index
      %94 = vector.load %arg8[%c0_78, %c0_79, %c0_80] : memref<1x1x32xf32, #tpu.memory_space<vmem>>, vector<1x1x32xf32>
      %95 = vector.shape_cast %94 : vector<1x1x32xf32> to vector<1x32xf32>
      %96 = vector.shape_cast %93 : vector<1x32xf32> to vector<1x1x32xf32>
      tpu.vector_store %arg8[%c0_78, %c0_79, %c0_80], %96 {strides = array<i32>} : memref<1x1x32xf32, #tpu.memory_space<vmem>>, vector<1x1x32xf32>,
    } else {
    }
    %c0 = arith.constant 0 : index
    %c0_1 = arith.constant 0 : index
    %c0_2 = arith.constant 0 : index
    %c0_3 = arith.constant 0 : index
    %3 = vector.load %arg2[%c0, %c0_1, %c0_2, %c0_3] : memref<1x16x18x8xbf16, #tpu.memory_space<vmem>>, vector<1x16x18x8xbf16>
    %4 = vector.shape_cast %3 : vector<1x16x18x8xbf16> to vector<16x18x8xbf16>
    %c0_4 = arith.constant 0 : index
    %c0_5 = arith.constant 0 : index
    %c0_6 = arith.constant 0 : index
    %c0_7 = arith.constant 0 : index
    %5 = vector.load %arg3[%c0_4, %c0_5, %c0_6, %c0_7] : memref<1x1x18x8xbf16, #tpu.memory_space<vmem>>, vector<1x1x18x8xbf16>
    %6 = vector.shape_cast %5 : vector<1x1x18x8xbf16> to vector<18x8xbf16>
    %7 = vector.shape_cast %6 : vector<18x8xbf16> to vector<1x18x8xbf16>
    %c0_8 = arith.constant 0 : index
    %c0_9 = arith.constant 0 : index
    %c0_10 = arith.constant 0 : index
    %c0_11 = arith.constant 0 : index
    %8 = vector.load %arg4[%c0_8, %c0_9, %c0_10, %c0_11] : memref<1x1x18x8xbf16, #tpu.memory_space<vmem>>, vector<1x1x18x8xbf16>
    %9 = vector.shape_cast %8 : vector<1x1x18x8xbf16> to vector<18x8xbf16>
    %10 = vector.shape_cast %9 : vector<18x8xbf16> to vector<1x18x8xbf16>
    %11 = tpu.concatenate %4, %7, %10 in 0 : vector<16x18x8xbf16>, vector<1x18x8xbf16>, vector<1x18x8xbf16> -> vector<18x18x8xbf16>
    %cst = arith.constant 0.000000e+00 : f32
    %12 = vector.broadcast %cst : f32 to vector<256x32xf32>
    %13 = vector.extract_strided_slice %11 {offsets = [0, 0, 0], sizes = [16, 16, 8], strides = [1, 1, 1]} : vector<18x18x8xbf16> to vector<16x16x8xbf16>
    %14 = vector.shape_cast %13 : vector<16x16x8xbf16> to vector<256x8xbf16>
    %c0_12 = arith.constant 0 : index
    %c0_13 = arith.constant 0 : index
    %c0_14 = arith.constant 0 : index
    %c0_15 = arith.constant 0 : index
    %15 = vector.load %arg5[%c0_12, %c0_13, %c0_14, %c0_15] : memref<3x3x8x32xbf16, #tpu.memory_space<vmem>>, vector<1x1x8x32xbf16>
    %16 = vector.shape_cast %15 : vector<1x1x8x32xbf16> to vector<8x32xbf16>
    %cst_16 = arith.constant dense<0.000000e+00> : vector<256x32xf32>
    %17 = tpu.matmul %14, %16, %cst_16 {dimension_numbers = #tpu.dot_dimension_numbers<[1], [0], [0], [1], [0, 0, 1, 1], [], []>} : vector<256x8xbf16>, vector<8x32xbf16>, vector<256x32xf32> -> vector<256x32xf32>
    %18 = arith.addf %12, %17 : vector<256x32xf32>
    %19 = vector.extract_strided_slice %11 {offsets = [0, 1, 0], sizes = [16, 16, 8], strides = [1, 1, 1]} : vector<18x18x8xbf16> to vector<16x16x8xbf16>
    %20 = vector.shape_cast %19 : vector<16x16x8xbf16> to vector<256x8xbf16>
    %c0_17 = arith.constant 0 : index
    %c1 = arith.constant 1 : index
    %c0_18 = arith.constant 0 : index
    %c0_19 = arith.constant 0 : index
    %21 = vector.load %arg5[%c0_17, %c1, %c0_18, %c0_19] : memref<3x3x8x32xbf16, #tpu.memory_space<vmem>>, vector<1x1x8x32xbf16>
    %22 = vector.shape_cast %21 : vector<1x1x8x32xbf16> to vector<8x32xbf16>
    %cst_20 = arith.constant dense<0.000000e+00> : vector<256x32xf32>
    %23 = tpu.matmul %20, %22, %cst_20 {dimension_numbers = #tpu.dot_dimension_numbers<[1], [0], [0], [1], [0, 0, 1, 1], [], []>} : vector<256x8xbf16>, vector<8x32xbf16>, vector<256x32xf32> -> vector<256x32xf32>
    %24 = arith.addf %18, %23 : vector<256x32xf32>
    %25 = vector.extract_strided_slice %11 {offsets = [0, 2, 0], sizes = [16, 16, 8], strides = [1, 1, 1]} : vector<18x18x8xbf16> to vector<16x16x8xbf16>
    %26 = vector.shape_cast %25 : vector<16x16x8xbf16> to vector<256x8xbf16>
    %c0_21 = arith.constant 0 : index
    %c2 = arith.constant 2 : index
    %c0_22 = arith.constant 0 : index
    %c0_23 = arith.constant 0 : index
    %27 = vector.load %arg5[%c0_21, %c2, %c0_22, %c0_23] : memref<3x3x8x32xbf16, #tpu.memory_space<vmem>>, vector<1x1x8x32xbf16>
    %28 = vector.shape_cast %27 : vector<1x1x8x32xbf16> to vector<8x32xbf16>
    %cst_24 = arith.constant dense<0.000000e+00> : vector<256x32xf32>
    %29 = tpu.matmul %26, %28, %cst_24 {dimension_numbers = #tpu.dot_dimension_numbers<[1], [0], [0], [1], [0, 0, 1, 1], [], []>} : vector<256x8xbf16>, vector<8x32xbf16>, vector<256x32xf32> -> vector<256x32xf32>
    %30 = arith.addf %24, %29 : vector<256x32xf32>
    %31 = vector.extract_strided_slice %11 {offsets = [1, 0, 0], sizes = [16, 16, 8], strides = [1, 1, 1]} : vector<18x18x8xbf16> to vector<16x16x8xbf16>
    %32 = vector.shape_cast %31 : vector<16x16x8xbf16> to vector<256x8xbf16>
    %c1_25 = arith.constant 1 : index
    %c0_26 = arith.constant 0 : index
    %c0_27 = arith.constant 0 : index
    %c0_28 = arith.constant 0 : index
    %33 = vector.load %arg5[%c1_25, %c0_26, %c0_27, %c0_28] : memref<3x3x8x32xbf16, #tpu.memory_space<vmem>>, vector<1x1x8x32xbf16>
    %34 = vector.shape_cast %33 : vector<1x1x8x32xbf16> to vector<8x32xbf16>
    %cst_29 = arith.constant dense<0.000000e+00> : vector<256x32xf32>
    %35 = tpu.matmul %32, %34, %cst_29 {dimension_numbers = #tpu.dot_dimension_numbers<[1], [0], [0], [1], [0, 0, 1, 1], [], []>} : vector<256x8xbf16>, vector<8x32xbf16>, vector<256x32xf32> -> vector<256x32xf32>
    %36 = arith.addf %30, %35 : vector<256x32xf32>
    %37 = vector.extract_strided_slice %11 {offsets = [1, 1, 0], sizes = [16, 16, 8], strides = [1, 1, 1]} : vector<18x18x8xbf16> to vector<16x16x8xbf16>
    %38 = vector.shape_cast %37 : vector<16x16x8xbf16> to vector<256x8xbf16>
    %c1_30 = arith.constant 1 : index
    %c1_31 = arith.constant 1 : index
    %c0_32 = arith.constant 0 : index
    %c0_33 = arith.constant 0 : index
    %39 = vector.load %arg5[%c1_30, %c1_31, %c0_32, %c0_33] : memref<3x3x8x32xbf16, #tpu.memory_space<vmem>>, vector<1x1x8x32xbf16>
    %40 = vector.shape_cast %39 : vector<1x1x8x32xbf16> to vector<8x32xbf16>
    %cst_34 = arith.constant dense<0.000000e+00> : vector<256x32xf32>
    %41 = tpu.matmul %38, %40, %cst_34 {dimension_numbers = #tpu.dot_dimension_numbers<[1], [0], [0], [1], [0, 0, 1, 1], [], []>} : vector<256x8xbf16>, vector<8x32xbf16>, vector<256x32xf32> -> vector<256x32xf32>
    %42 = arith.addf %36, %41 : vector<256x32xf32>
    %43 = vector.extract_strided_slice %11 {offsets = [1, 2, 0], sizes = [16, 16, 8], strides = [1, 1, 1]} : vector<18x18x8xbf16> to vector<16x16x8xbf16>
    %44 = vector.shape_cast %43 : vector<16x16x8xbf16> to vector<256x8xbf16>
    %c1_35 = arith.constant 1 : index
    %c2_36 = arith.constant 2 : index
    %c0_37 = arith.constant 0 : index
    %c0_38 = arith.constant 0 : index
    %45 = vector.load %arg5[%c1_35, %c2_36, %c0_37, %c0_38] : memref<3x3x8x32xbf16, #tpu.memory_space<vmem>>, vector<1x1x8x32xbf16>
    %46 = vector.shape_cast %45 : vector<1x1x8x32xbf16> to vector<8x32xbf16>
    %cst_39 = arith.constant dense<0.000000e+00> : vector<256x32xf32>
    %47 = tpu.matmul %44, %46, %cst_39 {dimension_numbers = #tpu.dot_dimension_numbers<[1], [0], [0], [1], [0, 0, 1, 1], [], []>} : vector<256x8xbf16>, vector<8x32xbf16>, vector<256x32xf32> -> vector<256x32xf32>
    %48 = arith.addf %42, %47 : vector<256x32xf32>
    %49 = vector.extract_strided_slice %11 {offsets = [2, 0, 0], sizes = [16, 16, 8], strides = [1, 1, 1]} : vector<18x18x8xbf16> to vector<16x16x8xbf16>
    %50 = vector.shape_cast %49 : vector<16x16x8xbf16> to vector<256x8xbf16>
    %c2_40 = arith.constant 2 : index
    %c0_41 = arith.constant 0 : index
    %c0_42 = arith.constant 0 : index
    %c0_43 = arith.constant 0 : index
    %51 = vector.load %arg5[%c2_40, %c0_41, %c0_42, %c0_43] : memref<3x3x8x32xbf16, #tpu.memory_space<vmem>>, vector<1x1x8x32xbf16>
    %52 = vector.shape_cast %51 : vector<1x1x8x32xbf16> to vector<8x32xbf16>
    %cst_44 = arith.constant dense<0.000000e+00> : vector<256x32xf32>
    %53 = tpu.matmul %50, %52, %cst_44 {dimension_numbers = #tpu.dot_dimension_numbers<[1], [0], [0], [1], [0, 0, 1, 1], [], []>} : vector<256x8xbf16>, vector<8x32xbf16>, vector<256x32xf32> -> vector<256x32xf32>
    %54 = arith.addf %48, %53 : vector<256x32xf32>
    %55 = vector.extract_strided_slice %11 {offsets = [2, 1, 0], sizes = [16, 16, 8], strides = [1, 1, 1]} : vector<18x18x8xbf16> to vector<16x16x8xbf16>
    %56 = vector.shape_cast %55 : vector<16x16x8xbf16> to vector<256x8xbf16>
    %c2_45 = arith.constant 2 : index
    %c1_46 = arith.constant 1 : index
    %c0_47 = arith.constant 0 : index
    %c0_48 = arith.constant 0 : index
    %57 = vector.load %arg5[%c2_45, %c1_46, %c0_47, %c0_48] : memref<3x3x8x32xbf16, #tpu.memory_space<vmem>>, vector<1x1x8x32xbf16>
    %58 = vector.shape_cast %57 : vector<1x1x8x32xbf16> to vector<8x32xbf16>
    %cst_49 = arith.constant dense<0.000000e+00> : vector<256x32xf32>
    %59 = tpu.matmul %56, %58, %cst_49 {dimension_numbers = #tpu.dot_dimension_numbers<[1], [0], [0], [1], [0, 0, 1, 1], [], []>} : vector<256x8xbf16>, vector<8x32xbf16>, vector<256x32xf32> -> vector<256x32xf32>
    %60 = arith.addf %54, %59 : vector<256x32xf32>
    %61 = vector.extract_strided_slice %11 {offsets = [2, 2, 0], sizes = [16, 16, 8], strides = [1, 1, 1]} : vector<18x18x8xbf16> to vector<16x16x8xbf16>
    %62 = vector.shape_cast %61 : vector<16x16x8xbf16> to vector<256x8xbf16>
    %c2_50 = arith.constant 2 : index
    %c2_51 = arith.constant 2 : index
    %c0_52 = arith.constant 0 : index
    %c0_53 = arith.constant 0 : index
    %63 = vector.load %arg5[%c2_50, %c2_51, %c0_52, %c0_53] : memref<3x3x8x32xbf16, #tpu.memory_space<vmem>>, vector<1x1x8x32xbf16>
    %64 = vector.shape_cast %63 : vector<1x1x8x32xbf16> to vector<8x32xbf16>
    %cst_54 = arith.constant dense<0.000000e+00> : vector<256x32xf32>
    %65 = tpu.matmul %62, %64, %cst_54 {dimension_numbers = #tpu.dot_dimension_numbers<[1], [0], [0], [1], [0, 0, 1, 1], [], []>} : vector<256x8xbf16>, vector<8x32xbf16>, vector<256x32xf32> -> vector<256x32xf32>
    %66 = arith.addf %60, %65 : vector<256x32xf32>
    %67 = vector.shape_cast %66 : vector<256x32xf32> to vector<16x16x32xf32>
    %68 = arith.truncf %67 : vector<16x16x32xf32> to vector<16x16x32xbf16>
    %c0_55 = arith.constant 0 : index
    %c0_56 = arith.constant 0 : index
    %c0_57 = arith.constant 0 : index
    %c0_58 = arith.constant 0 : index
    %69 = vector.load %arg6[%c0_55, %c0_56, %c0_57, %c0_58] : memref<1x16x16x32xbf16, #tpu.memory_space<vmem>>, vector<1x16x16x32xbf16>
    %70 = vector.shape_cast %69 : vector<1x16x16x32xbf16> to vector<16x16x32xbf16>
    %71 = vector.shape_cast %68 : vector<16x16x32xbf16> to vector<1x16x16x32xbf16>
    tpu.vector_store %arg6[%c0_55, %c0_56, %c0_57, %c0_58], %71 {strides = array<i32>} : memref<1x16x16x32xbf16, #tpu.memory_space<vmem>>, vector<1x16x16x32xbf16>,
    %c0_59 = arith.constant 0 : index
    %c0_60 = arith.constant 0 : index
    %c0_61 = arith.constant 0 : index
    %72 = vector.load %arg7[%c0_59, %c0_60, %c0_61] : memref<1x1x32xf32, #tpu.memory_space<vmem>>, vector<1x1x32xf32>
    %73 = vector.shape_cast %72 : vector<1x1x32xf32> to vector<1x32xf32>
    %cst_62 = arith.constant dense<0.000000e+00> : vector<32xf32>
    %74 = vector.multi_reduction <add>, %66, %cst_62 [0] : vector<256x32xf32> to vector<32xf32>
    %75 = vector.shape_cast %74 : vector<32xf32> to vector<1x32xf32>
    %76 = arith.addf %73, %75 : vector<1x32xf32>
    %c0_63 = arith.constant 0 : index
    %c0_64 = arith.constant 0 : index
    %c0_65 = arith.constant 0 : index
    %77 = vector.load %arg7[%c0_63, %c0_64, %c0_65] : memref<1x1x32xf32, #tpu.memory_space<vmem>>, vector<1x1x32xf32>
    %78 = vector.shape_cast %77 : vector<1x1x32xf32> to vector<1x32xf32>
    %79 = vector.shape_cast %76 : vector<1x32xf32> to vector<1x1x32xf32>
    tpu.vector_store %arg7[%c0_63, %c0_64, %c0_65], %79 {strides = array<i32>} : memref<1x1x32xf32, #tpu.memory_space<vmem>>, vector<1x1x32xf32>,
    %c0_66 = arith.constant 0 : index
    %c0_67 = arith.constant 0 : index
    %c0_68 = arith.constant 0 : index
    %80 = vector.load %arg8[%c0_66, %c0_67, %c0_68] : memref<1x1x32xf32, #tpu.memory_space<vmem>>, vector<1x1x32xf32>
    %81 = vector.shape_cast %80 : vector<1x1x32xf32> to vector<1x32xf32>
    %82 = arith.mulf %66, %66 : vector<256x32xf32>
    %cst_69 = arith.constant dense<0.000000e+00> : vector<32xf32>
    %83 = vector.multi_reduction <add>, %82, %cst_69 [0] : vector<256x32xf32> to vector<32xf32>
    %84 = vector.shape_cast %83 : vector<32xf32> to vector<1x32xf32>
    %85 = arith.addf %81, %84 : vector<1x32xf32>
    %c0_70 = arith.constant 0 : index
    %c0_71 = arith.constant 0 : index
    %c0_72 = arith.constant 0 : index
    %86 = vector.load %arg8[%c0_70, %c0_71, %c0_72] : memref<1x1x32xf32, #tpu.memory_space<vmem>>, vector<1x1x32xf32>
    %87 = vector.shape_cast %86 : vector<1x1x32xf32> to vector<1x32xf32>
    %88 = vector.shape_cast %85 : vector<1x32xf32> to vector<1x1x32xf32>
    tpu.vector_store %arg8[%c0_70, %c0_71, %c0_72], %88 {strides = array<i32>} : memref<1x1x32xf32, #tpu.memory_space<vmem>>, vector<1x1x32xf32>,
    return
  }
  func.func @transform_0(%arg0: i32, %arg1: i32) -> (i32, i32, i32, i32) {
    %c0_i32 = arith.constant 0 : i32
    %c0_i32_0 = arith.constant 0 : i32
    %c0_i32_1 = arith.constant 0 : i32
    return %arg0, %arg1, %c0_i32, %c0_i32_0 : i32, i32, i32, i32
  }
  func.func @transform_1(%arg0: i32, %arg1: i32) -> (i32, i32, i32, i32) {
    %c16_i32 = arith.constant 16 : i32
    %0 = arith.muli %arg1, %c16_i32 : i32
    %c16_i32_0 = arith.constant 16 : i32
    %1 = arith.addi %0, %c16_i32_0 : i32
    %c0_i32 = arith.constant 0 : i32
    %c0_i32_1 = arith.constant 0 : i32
    %c0_i32_2 = arith.constant 0 : i32
    return %arg0, %1, %c0_i32, %c0_i32_1 : i32, i32, i32, i32
  }
  func.func @transform_2(%arg0: i32, %arg1: i32) -> (i32, i32, i32, i32) {
    %c16_i32 = arith.constant 16 : i32
    %0 = arith.muli %arg1, %c16_i32 : i32
    %c16_i32_0 = arith.constant 16 : i32
    %1 = arith.addi %0, %c16_i32_0 : i32
    %c1_i32 = arith.constant 1 : i32
    %2 = arith.addi %1, %c1_i32 : i32
    %c0_i32 = arith.constant 0 : i32
    %c0_i32_1 = arith.constant 0 : i32
    %c0_i32_2 = arith.constant 0 : i32
    return %arg0, %2, %c0_i32, %c0_i32_1 : i32, i32, i32, i32
  }
  func.func @transform_3(%arg0: i32, %arg1: i32) -> (i32, i32, i32, i32) {
    %c0_i32 = arith.constant 0 : i32
    %c0_i32_0 = arith.constant 0 : i32
    %c0_i32_1 = arith.constant 0 : i32
    %c0_i32_2 = arith.constant 0 : i32
    %c0_i32_3 = arith.constant 0 : i32
    return %c0_i32, %c0_i32_0, %c0_i32_1, %c0_i32_2 : i32, i32, i32, i32
  }
  func.func @transform_4(%arg0: i32, %arg1: i32) -> (i32, i32, i32, i32) {
    %c0_i32 = arith.constant 0 : i32
    %c0_i32_0 = arith.constant 0 : i32
    %c0_i32_1 = arith.constant 0 : i32
    return %arg0, %arg1, %c0_i32, %c0_i32_0 : i32, i32, i32, i32
  }
  func.func @transform_5(%arg0: i32, %arg1: i32) -> (i32, i32, i32) {
    %c0_i32 = arith.constant 0 : i32
    %c0_i32_0 = arith.constant 0 : i32
    %c0_i32_1 = arith.constant 0 : i32
    return %arg0, %c0_i32, %c0_i32_0 : i32, i32, i32
  }
  func.func @transform_6(%arg0: i32, %arg1: i32) -> (i32, i32, i32) {
    %c0_i32 = arith.constant 0 : i32
    %c0_i32_0 = arith.constant 0 : i32
    %c0_i32_1 = arith.constant 0 : i32
    return %arg0, %c0_i32, %c0_i32_0 : i32, i32, i32
  }
}

module attributes {stable_mosaic.version = 11 : i64} {
  func.func @_bn_lrelu_kernel(%arg0: i32, %arg1: memref<32x512xbf16, #tpu.memory_space<vmem>>, %arg2: memref<1x512xf32, #tpu.memory_space<vmem>>, %arg3: memref<1x512xf32, #tpu.memory_space<vmem>>, %arg4: memref<32x512xbf16, #tpu.memory_space<vmem>>) attributes {dimension_semantics = [#tpu.dimension_semantics<parallel>], iteration_bounds = array<i64: 1>, scalar_prefetch = 0 : i64, scratch_operands = 0 : i64, tpu.core_type = #tpu.core_type<tc>, window_params = [{transform_indices = @transform_0, window_bounds = array<i64: 32, 512>}, {pipeline_mode = #tpu.pipeline_mode<synchronous>, transform_indices = @transform_1, window_bounds = array<i64: 1, 512>}, {pipeline_mode = #tpu.pipeline_mode<synchronous>, transform_indices = @transform_2, window_bounds = array<i64: 1, 512>}, {transform_indices = @transform_3, window_bounds = array<i64: 32, 512>}]} {
    %c0 = arith.constant 0 : index
    %c0_0 = arith.constant 0 : index
    %0 = vector.load %arg1[%c0, %c0_0] : memref<32x512xbf16, #tpu.memory_space<vmem>>, vector<32x512xbf16>
    %1 = arith.extf %0 : vector<32x512xbf16> to vector<32x512xf32>
    %c0_1 = arith.constant 0 : index
    %c0_2 = arith.constant 0 : index
    %2 = vector.load %arg2[%c0_1, %c0_2] : memref<1x512xf32, #tpu.memory_space<vmem>>, vector<1x512xf32>
    %3 = vector.broadcast %2 : vector<1x512xf32> to vector<32x512xf32>
    %4 = arith.mulf %1, %3 : vector<32x512xf32>
    %c0_3 = arith.constant 0 : index
    %c0_4 = arith.constant 0 : index
    %5 = vector.load %arg3[%c0_3, %c0_4] : memref<1x512xf32, #tpu.memory_space<vmem>>, vector<1x512xf32>
    %6 = vector.broadcast %5 : vector<1x512xf32> to vector<32x512xf32>
    %7 = arith.addf %4, %6 : vector<32x512xf32>
    %cst = arith.constant 0.000000e+00 : f32
    %8 = vector.broadcast %cst : f32 to vector<32x512xf32>
    %9 = arith.cmpf ogt, %7, %8 : vector<32x512xf32>
    %cst_5 = arith.constant 0.00999999977 : f32
    %10 = vector.broadcast %cst_5 : f32 to vector<32x512xf32>
    %11 = arith.mulf %10, %7 : vector<32x512xf32>
    %12 = arith.select %9, %7, %11 : vector<32x512xi1>, vector<32x512xf32>
    %13 = arith.truncf %12 : vector<32x512xf32> to vector<32x512xbf16>
    %c0_6 = arith.constant 0 : index
    %c0_7 = arith.constant 0 : index
    %14 = vector.load %arg4[%c0_6, %c0_7] : memref<32x512xbf16, #tpu.memory_space<vmem>>, vector<32x512xbf16>
    tpu.vector_store %arg4[%c0_6, %c0_7], %13 {strides = array<i32>} : memref<32x512xbf16, #tpu.memory_space<vmem>>, vector<32x512xbf16>,
    return
  }
  func.func @transform_0(%arg0: i32) -> (i32, i32) {
    %c0_i32 = arith.constant 0 : i32
    %c0_i32_0 = arith.constant 0 : i32
    return %arg0, %c0_i32 : i32, i32
  }
  func.func @transform_1(%arg0: i32) -> (i32, i32) {
    %c0_i32 = arith.constant 0 : i32
    %c0_i32_0 = arith.constant 0 : i32
    %c0_i32_1 = arith.constant 0 : i32
    return %c0_i32, %c0_i32_0 : i32, i32
  }
  func.func @transform_2(%arg0: i32) -> (i32, i32) {
    %c0_i32 = arith.constant 0 : i32
    %c0_i32_0 = arith.constant 0 : i32
    %c0_i32_1 = arith.constant 0 : i32
    return %c0_i32, %c0_i32_0 : i32, i32
  }
  func.func @transform_3(%arg0: i32) -> (i32, i32) {
    %c0_i32 = arith.constant 0 : i32
    %c0_i32_0 = arith.constant 0 : i32
    return %arg0, %c0_i32 : i32, i32
  }
}

module attributes {stable_mosaic.version = 11 : i64} {
  func.func @_conv3x3_stats_kernel(%arg0: i32, %arg1: i32, %arg2: memref<1x16x18x32xbf16, #tpu.memory_space<vmem>>, %arg3: memref<1x1x18x32xbf16, #tpu.memory_space<vmem>>, %arg4: memref<1x1x18x32xbf16, #tpu.memory_space<vmem>>, %arg5: memref<3x3x32x32xbf16, #tpu.memory_space<vmem>>, %arg6: memref<1x16x16x32xbf16, #tpu.memory_space<vmem>>, %arg7: memref<1x1x32xf32, #tpu.memory_space<vmem>>, %arg8: memref<1x1x32xf32, #tpu.memory_space<vmem>>) attributes {dimension_semantics = [#tpu.dimension_semantics<parallel>, #tpu.dimension_semantics<arbitrary>], iteration_bounds = array<i64: 2, 1>, scalar_prefetch = 0 : i64, scratch_operands = 0 : i64, tpu.core_type = #tpu.core_type<tc>, window_params = [{transform_indices = @transform_0, window_bounds = array<i64: 1, 16, 18, 32>}, {transform_indices = @transform_1, window_bounds = array<i64: 1, 1, 18, 32>}, {transform_indices = @transform_2, window_bounds = array<i64: 1, 1, 18, 32>}, {pipeline_mode = #tpu.pipeline_mode<synchronous>, transform_indices = @transform_3, window_bounds = array<i64: 3, 3, 32, 32>}, {transform_indices = @transform_4, window_bounds = array<i64: 1, 16, 16, 32>}, {transform_indices = @transform_5, window_bounds = array<i64: 1, 1, 32>}, {transform_indices = @transform_6, window_bounds = array<i64: 1, 1, 32>}]} {
    %c0_i32 = arith.constant 0 : i32
    %0 = arith.cmpi eq, %arg1, %c0_i32 : i32
    %1 = arith.extui %0 : i1 to i32
    %c0_i32_0 = arith.constant 0 : i32
    %2 = arith.cmpi ne, %1, %c0_i32_0 : i32
    scf.if %2 {
      %cst_73 = arith.constant 0.000000e+00 : f32
      %89 = vector.broadcast %cst_73 : f32 to vector<1x32xf32>
      %c0_74 = arith.constant 0 : index
      %c0_75 = arith.constant 0 : index
      %c0_76 = arith.constant 0 : index
      %90 = vector.load %arg7[%c0_74, %c0_75, %c0_76] : memref<1x1x32xf32, #tpu.memory_space<vmem>>, vector<1x1x32xf32>
      %91 = vector.shape_cast %90 : vector<1x1x32xf32> to vector<1x32xf32>
      %92 = vector.shape_cast %89 : vector<1x32xf32> to vector<1x1x32xf32>
      tpu.vector_store %arg7[%c0_74, %c0_75, %c0_76], %92 {strides = array<i32>} : memref<1x1x32xf32, #tpu.memory_space<vmem>>, vector<1x1x32xf32>,
      %cst_77 = arith.constant 0.000000e+00 : f32
      %93 = vector.broadcast %cst_77 : f32 to vector<1x32xf32>
      %c0_78 = arith.constant 0 : index
      %c0_79 = arith.constant 0 : index
      %c0_80 = arith.constant 0 : index
      %94 = vector.load %arg8[%c0_78, %c0_79, %c0_80] : memref<1x1x32xf32, #tpu.memory_space<vmem>>, vector<1x1x32xf32>
      %95 = vector.shape_cast %94 : vector<1x1x32xf32> to vector<1x32xf32>
      %96 = vector.shape_cast %93 : vector<1x32xf32> to vector<1x1x32xf32>
      tpu.vector_store %arg8[%c0_78, %c0_79, %c0_80], %96 {strides = array<i32>} : memref<1x1x32xf32, #tpu.memory_space<vmem>>, vector<1x1x32xf32>,
    } else {
    }
    %c0 = arith.constant 0 : index
    %c0_1 = arith.constant 0 : index
    %c0_2 = arith.constant 0 : index
    %c0_3 = arith.constant 0 : index
    %3 = vector.load %arg2[%c0, %c0_1, %c0_2, %c0_3] : memref<1x16x18x32xbf16, #tpu.memory_space<vmem>>, vector<1x16x18x32xbf16>
    %4 = vector.shape_cast %3 : vector<1x16x18x32xbf16> to vector<16x18x32xbf16>
    %c0_4 = arith.constant 0 : index
    %c0_5 = arith.constant 0 : index
    %c0_6 = arith.constant 0 : index
    %c0_7 = arith.constant 0 : index
    %5 = vector.load %arg3[%c0_4, %c0_5, %c0_6, %c0_7] : memref<1x1x18x32xbf16, #tpu.memory_space<vmem>>, vector<1x1x18x32xbf16>
    %6 = vector.shape_cast %5 : vector<1x1x18x32xbf16> to vector<18x32xbf16>
    %7 = vector.shape_cast %6 : vector<18x32xbf16> to vector<1x18x32xbf16>
    %c0_8 = arith.constant 0 : index
    %c0_9 = arith.constant 0 : index
    %c0_10 = arith.constant 0 : index
    %c0_11 = arith.constant 0 : index
    %8 = vector.load %arg4[%c0_8, %c0_9, %c0_10, %c0_11] : memref<1x1x18x32xbf16, #tpu.memory_space<vmem>>, vector<1x1x18x32xbf16>
    %9 = vector.shape_cast %8 : vector<1x1x18x32xbf16> to vector<18x32xbf16>
    %10 = vector.shape_cast %9 : vector<18x32xbf16> to vector<1x18x32xbf16>
    %11 = tpu.concatenate %4, %7, %10 in 0 : vector<16x18x32xbf16>, vector<1x18x32xbf16>, vector<1x18x32xbf16> -> vector<18x18x32xbf16>
    %cst = arith.constant 0.000000e+00 : f32
    %12 = vector.broadcast %cst : f32 to vector<256x32xf32>
    %13 = vector.extract_strided_slice %11 {offsets = [0, 0, 0], sizes = [16, 16, 32], strides = [1, 1, 1]} : vector<18x18x32xbf16> to vector<16x16x32xbf16>
    %14 = vector.shape_cast %13 : vector<16x16x32xbf16> to vector<256x32xbf16>
    %c0_12 = arith.constant 0 : index
    %c0_13 = arith.constant 0 : index
    %c0_14 = arith.constant 0 : index
    %c0_15 = arith.constant 0 : index
    %15 = vector.load %arg5[%c0_12, %c0_13, %c0_14, %c0_15] : memref<3x3x32x32xbf16, #tpu.memory_space<vmem>>, vector<1x1x32x32xbf16>
    %16 = vector.shape_cast %15 : vector<1x1x32x32xbf16> to vector<32x32xbf16>
    %cst_16 = arith.constant dense<0.000000e+00> : vector<256x32xf32>
    %17 = tpu.matmul %14, %16, %cst_16 {dimension_numbers = #tpu.dot_dimension_numbers<[1], [0], [0], [1], [0, 0, 1, 1], [], []>} : vector<256x32xbf16>, vector<32x32xbf16>, vector<256x32xf32> -> vector<256x32xf32>
    %18 = arith.addf %12, %17 : vector<256x32xf32>
    %19 = vector.extract_strided_slice %11 {offsets = [0, 1, 0], sizes = [16, 16, 32], strides = [1, 1, 1]} : vector<18x18x32xbf16> to vector<16x16x32xbf16>
    %20 = vector.shape_cast %19 : vector<16x16x32xbf16> to vector<256x32xbf16>
    %c0_17 = arith.constant 0 : index
    %c1 = arith.constant 1 : index
    %c0_18 = arith.constant 0 : index
    %c0_19 = arith.constant 0 : index
    %21 = vector.load %arg5[%c0_17, %c1, %c0_18, %c0_19] : memref<3x3x32x32xbf16, #tpu.memory_space<vmem>>, vector<1x1x32x32xbf16>
    %22 = vector.shape_cast %21 : vector<1x1x32x32xbf16> to vector<32x32xbf16>
    %cst_20 = arith.constant dense<0.000000e+00> : vector<256x32xf32>
    %23 = tpu.matmul %20, %22, %cst_20 {dimension_numbers = #tpu.dot_dimension_numbers<[1], [0], [0], [1], [0, 0, 1, 1], [], []>} : vector<256x32xbf16>, vector<32x32xbf16>, vector<256x32xf32> -> vector<256x32xf32>
    %24 = arith.addf %18, %23 : vector<256x32xf32>
    %25 = vector.extract_strided_slice %11 {offsets = [0, 2, 0], sizes = [16, 16, 32], strides = [1, 1, 1]} : vector<18x18x32xbf16> to vector<16x16x32xbf16>
    %26 = vector.shape_cast %25 : vector<16x16x32xbf16> to vector<256x32xbf16>
    %c0_21 = arith.constant 0 : index
    %c2 = arith.constant 2 : index
    %c0_22 = arith.constant 0 : index
    %c0_23 = arith.constant 0 : index
    %27 = vector.load %arg5[%c0_21, %c2, %c0_22, %c0_23] : memref<3x3x32x32xbf16, #tpu.memory_space<vmem>>, vector<1x1x32x32xbf16>
    %28 = vector.shape_cast %27 : vector<1x1x32x32xbf16> to vector<32x32xbf16>
    %cst_24 = arith.constant dense<0.000000e+00> : vector<256x32xf32>
    %29 = tpu.matmul %26, %28, %cst_24 {dimension_numbers = #tpu.dot_dimension_numbers<[1], [0], [0], [1], [0, 0, 1, 1], [], []>} : vector<256x32xbf16>, vector<32x32xbf16>, vector<256x32xf32> -> vector<256x32xf32>
    %30 = arith.addf %24, %29 : vector<256x32xf32>
    %31 = vector.extract_strided_slice %11 {offsets = [1, 0, 0], sizes = [16, 16, 32], strides = [1, 1, 1]} : vector<18x18x32xbf16> to vector<16x16x32xbf16>
    %32 = vector.shape_cast %31 : vector<16x16x32xbf16> to vector<256x32xbf16>
    %c1_25 = arith.constant 1 : index
    %c0_26 = arith.constant 0 : index
    %c0_27 = arith.constant 0 : index
    %c0_28 = arith.constant 0 : index
    %33 = vector.load %arg5[%c1_25, %c0_26, %c0_27, %c0_28] : memref<3x3x32x32xbf16, #tpu.memory_space<vmem>>, vector<1x1x32x32xbf16>
    %34 = vector.shape_cast %33 : vector<1x1x32x32xbf16> to vector<32x32xbf16>
    %cst_29 = arith.constant dense<0.000000e+00> : vector<256x32xf32>
    %35 = tpu.matmul %32, %34, %cst_29 {dimension_numbers = #tpu.dot_dimension_numbers<[1], [0], [0], [1], [0, 0, 1, 1], [], []>} : vector<256x32xbf16>, vector<32x32xbf16>, vector<256x32xf32> -> vector<256x32xf32>
    %36 = arith.addf %30, %35 : vector<256x32xf32>
    %37 = vector.extract_strided_slice %11 {offsets = [1, 1, 0], sizes = [16, 16, 32], strides = [1, 1, 1]} : vector<18x18x32xbf16> to vector<16x16x32xbf16>
    %38 = vector.shape_cast %37 : vector<16x16x32xbf16> to vector<256x32xbf16>
    %c1_30 = arith.constant 1 : index
    %c1_31 = arith.constant 1 : index
    %c0_32 = arith.constant 0 : index
    %c0_33 = arith.constant 0 : index
    %39 = vector.load %arg5[%c1_30, %c1_31, %c0_32, %c0_33] : memref<3x3x32x32xbf16, #tpu.memory_space<vmem>>, vector<1x1x32x32xbf16>
    %40 = vector.shape_cast %39 : vector<1x1x32x32xbf16> to vector<32x32xbf16>
    %cst_34 = arith.constant dense<0.000000e+00> : vector<256x32xf32>
    %41 = tpu.matmul %38, %40, %cst_34 {dimension_numbers = #tpu.dot_dimension_numbers<[1], [0], [0], [1], [0, 0, 1, 1], [], []>} : vector<256x32xbf16>, vector<32x32xbf16>, vector<256x32xf32> -> vector<256x32xf32>
    %42 = arith.addf %36, %41 : vector<256x32xf32>
    %43 = vector.extract_strided_slice %11 {offsets = [1, 2, 0], sizes = [16, 16, 32], strides = [1, 1, 1]} : vector<18x18x32xbf16> to vector<16x16x32xbf16>
    %44 = vector.shape_cast %43 : vector<16x16x32xbf16> to vector<256x32xbf16>
    %c1_35 = arith.constant 1 : index
    %c2_36 = arith.constant 2 : index
    %c0_37 = arith.constant 0 : index
    %c0_38 = arith.constant 0 : index
    %45 = vector.load %arg5[%c1_35, %c2_36, %c0_37, %c0_38] : memref<3x3x32x32xbf16, #tpu.memory_space<vmem>>, vector<1x1x32x32xbf16>
    %46 = vector.shape_cast %45 : vector<1x1x32x32xbf16> to vector<32x32xbf16>
    %cst_39 = arith.constant dense<0.000000e+00> : vector<256x32xf32>
    %47 = tpu.matmul %44, %46, %cst_39 {dimension_numbers = #tpu.dot_dimension_numbers<[1], [0], [0], [1], [0, 0, 1, 1], [], []>} : vector<256x32xbf16>, vector<32x32xbf16>, vector<256x32xf32> -> vector<256x32xf32>
    %48 = arith.addf %42, %47 : vector<256x32xf32>
    %49 = vector.extract_strided_slice %11 {offsets = [2, 0, 0], sizes = [16, 16, 32], strides = [1, 1, 1]} : vector<18x18x32xbf16> to vector<16x16x32xbf16>
    %50 = vector.shape_cast %49 : vector<16x16x32xbf16> to vector<256x32xbf16>
    %c2_40 = arith.constant 2 : index
    %c0_41 = arith.constant 0 : index
    %c0_42 = arith.constant 0 : index
    %c0_43 = arith.constant 0 : index
    %51 = vector.load %arg5[%c2_40, %c0_41, %c0_42, %c0_43] : memref<3x3x32x32xbf16, #tpu.memory_space<vmem>>, vector<1x1x32x32xbf16>
    %52 = vector.shape_cast %51 : vector<1x1x32x32xbf16> to vector<32x32xbf16>
    %cst_44 = arith.constant dense<0.000000e+00> : vector<256x32xf32>
    %53 = tpu.matmul %50, %52, %cst_44 {dimension_numbers = #tpu.dot_dimension_numbers<[1], [0], [0], [1], [0, 0, 1, 1], [], []>} : vector<256x32xbf16>, vector<32x32xbf16>, vector<256x32xf32> -> vector<256x32xf32>
    %54 = arith.addf %48, %53 : vector<256x32xf32>
    %55 = vector.extract_strided_slice %11 {offsets = [2, 1, 0], sizes = [16, 16, 32], strides = [1, 1, 1]} : vector<18x18x32xbf16> to vector<16x16x32xbf16>
    %56 = vector.shape_cast %55 : vector<16x16x32xbf16> to vector<256x32xbf16>
    %c2_45 = arith.constant 2 : index
    %c1_46 = arith.constant 1 : index
    %c0_47 = arith.constant 0 : index
    %c0_48 = arith.constant 0 : index
    %57 = vector.load %arg5[%c2_45, %c1_46, %c0_47, %c0_48] : memref<3x3x32x32xbf16, #tpu.memory_space<vmem>>, vector<1x1x32x32xbf16>
    %58 = vector.shape_cast %57 : vector<1x1x32x32xbf16> to vector<32x32xbf16>
    %cst_49 = arith.constant dense<0.000000e+00> : vector<256x32xf32>
    %59 = tpu.matmul %56, %58, %cst_49 {dimension_numbers = #tpu.dot_dimension_numbers<[1], [0], [0], [1], [0, 0, 1, 1], [], []>} : vector<256x32xbf16>, vector<32x32xbf16>, vector<256x32xf32> -> vector<256x32xf32>
    %60 = arith.addf %54, %59 : vector<256x32xf32>
    %61 = vector.extract_strided_slice %11 {offsets = [2, 2, 0], sizes = [16, 16, 32], strides = [1, 1, 1]} : vector<18x18x32xbf16> to vector<16x16x32xbf16>
    %62 = vector.shape_cast %61 : vector<16x16x32xbf16> to vector<256x32xbf16>
    %c2_50 = arith.constant 2 : index
    %c2_51 = arith.constant 2 : index
    %c0_52 = arith.constant 0 : index
    %c0_53 = arith.constant 0 : index
    %63 = vector.load %arg5[%c2_50, %c2_51, %c0_52, %c0_53] : memref<3x3x32x32xbf16, #tpu.memory_space<vmem>>, vector<1x1x32x32xbf16>
    %64 = vector.shape_cast %63 : vector<1x1x32x32xbf16> to vector<32x32xbf16>
    %cst_54 = arith.constant dense<0.000000e+00> : vector<256x32xf32>
    %65 = tpu.matmul %62, %64, %cst_54 {dimension_numbers = #tpu.dot_dimension_numbers<[1], [0], [0], [1], [0, 0, 1, 1], [], []>} : vector<256x32xbf16>, vector<32x32xbf16>, vector<256x32xf32> -> vector<256x32xf32>
    %66 = arith.addf %60, %65 : vector<256x32xf32>
    %67 = vector.shape_cast %66 : vector<256x32xf32> to vector<16x16x32xf32>
    %68 = arith.truncf %67 : vector<16x16x32xf32> to vector<16x16x32xbf16>
    %c0_55 = arith.constant 0 : index
    %c0_56 = arith.constant 0 : index
    %c0_57 = arith.constant 0 : index
    %c0_58 = arith.constant 0 : index
    %69 = vector.load %arg6[%c0_55, %c0_56, %c0_57, %c0_58] : memref<1x16x16x32xbf16, #tpu.memory_space<vmem>>, vector<1x16x16x32xbf16>
    %70 = vector.shape_cast %69 : vector<1x16x16x32xbf16> to vector<16x16x32xbf16>
    %71 = vector.shape_cast %68 : vector<16x16x32xbf16> to vector<1x16x16x32xbf16>
    tpu.vector_store %arg6[%c0_55, %c0_56, %c0_57, %c0_58], %71 {strides = array<i32>} : memref<1x16x16x32xbf16, #tpu.memory_space<vmem>>, vector<1x16x16x32xbf16>,
    %c0_59 = arith.constant 0 : index
    %c0_60 = arith.constant 0 : index
    %c0_61 = arith.constant 0 : index
    %72 = vector.load %arg7[%c0_59, %c0_60, %c0_61] : memref<1x1x32xf32, #tpu.memory_space<vmem>>, vector<1x1x32xf32>
    %73 = vector.shape_cast %72 : vector<1x1x32xf32> to vector<1x32xf32>
    %cst_62 = arith.constant dense<0.000000e+00> : vector<32xf32>
    %74 = vector.multi_reduction <add>, %66, %cst_62 [0] : vector<256x32xf32> to vector<32xf32>
    %75 = vector.shape_cast %74 : vector<32xf32> to vector<1x32xf32>
    %76 = arith.addf %73, %75 : vector<1x32xf32>
    %c0_63 = arith.constant 0 : index
    %c0_64 = arith.constant 0 : index
    %c0_65 = arith.constant 0 : index
    %77 = vector.load %arg7[%c0_63, %c0_64, %c0_65] : memref<1x1x32xf32, #tpu.memory_space<vmem>>, vector<1x1x32xf32>
    %78 = vector.shape_cast %77 : vector<1x1x32xf32> to vector<1x32xf32>
    %79 = vector.shape_cast %76 : vector<1x32xf32> to vector<1x1x32xf32>
    tpu.vector_store %arg7[%c0_63, %c0_64, %c0_65], %79 {strides = array<i32>} : memref<1x1x32xf32, #tpu.memory_space<vmem>>, vector<1x1x32xf32>,
    %c0_66 = arith.constant 0 : index
    %c0_67 = arith.constant 0 : index
    %c0_68 = arith.constant 0 : index
    %80 = vector.load %arg8[%c0_66, %c0_67, %c0_68] : memref<1x1x32xf32, #tpu.memory_space<vmem>>, vector<1x1x32xf32>
    %81 = vector.shape_cast %80 : vector<1x1x32xf32> to vector<1x32xf32>
    %82 = arith.mulf %66, %66 : vector<256x32xf32>
    %cst_69 = arith.constant dense<0.000000e+00> : vector<32xf32>
    %83 = vector.multi_reduction <add>, %82, %cst_69 [0] : vector<256x32xf32> to vector<32xf32>
    %84 = vector.shape_cast %83 : vector<32xf32> to vector<1x32xf32>
    %85 = arith.addf %81, %84 : vector<1x32xf32>
    %c0_70 = arith.constant 0 : index
    %c0_71 = arith.constant 0 : index
    %c0_72 = arith.constant 0 : index
    %86 = vector.load %arg8[%c0_70, %c0_71, %c0_72] : memref<1x1x32xf32, #tpu.memory_space<vmem>>, vector<1x1x32xf32>
    %87 = vector.shape_cast %86 : vector<1x1x32xf32> to vector<1x32xf32>
    %88 = vector.shape_cast %85 : vector<1x32xf32> to vector<1x1x32xf32>
    tpu.vector_store %arg8[%c0_70, %c0_71, %c0_72], %88 {strides = array<i32>} : memref<1x1x32xf32, #tpu.memory_space<vmem>>, vector<1x1x32xf32>,
    return
  }
  func.func @transform_0(%arg0: i32, %arg1: i32) -> (i32, i32, i32, i32) {
    %c0_i32 = arith.constant 0 : i32
    %c0_i32_0 = arith.constant 0 : i32
    %c0_i32_1 = arith.constant 0 : i32
    return %arg0, %arg1, %c0_i32, %c0_i32_0 : i32, i32, i32, i32
  }
  func.func @transform_1(%arg0: i32, %arg1: i32) -> (i32, i32, i32, i32) {
    %c16_i32 = arith.constant 16 : i32
    %0 = arith.muli %arg1, %c16_i32 : i32
    %c16_i32_0 = arith.constant 16 : i32
    %1 = arith.addi %0, %c16_i32_0 : i32
    %c0_i32 = arith.constant 0 : i32
    %c0_i32_1 = arith.constant 0 : i32
    %c0_i32_2 = arith.constant 0 : i32
    return %arg0, %1, %c0_i32, %c0_i32_1 : i32, i32, i32, i32
  }
  func.func @transform_2(%arg0: i32, %arg1: i32) -> (i32, i32, i32, i32) {
    %c16_i32 = arith.constant 16 : i32
    %0 = arith.muli %arg1, %c16_i32 : i32
    %c16_i32_0 = arith.constant 16 : i32
    %1 = arith.addi %0, %c16_i32_0 : i32
    %c1_i32 = arith.constant 1 : i32
    %2 = arith.addi %1, %c1_i32 : i32
    %c0_i32 = arith.constant 0 : i32
    %c0_i32_1 = arith.constant 0 : i32
    %c0_i32_2 = arith.constant 0 : i32
    return %arg0, %2, %c0_i32, %c0_i32_1 : i32, i32, i32, i32
  }
  func.func @transform_3(%arg0: i32, %arg1: i32) -> (i32, i32, i32, i32) {
    %c0_i32 = arith.constant 0 : i32
    %c0_i32_0 = arith.constant 0 : i32
    %c0_i32_1 = arith.constant 0 : i32
    %c0_i32_2 = arith.constant 0 : i32
    %c0_i32_3 = arith.constant 0 : i32
    return %c0_i32, %c0_i32_0, %c0_i32_1, %c0_i32_2 : i32, i32, i32, i32
  }
  func.func @transform_4(%arg0: i32, %arg1: i32) -> (i32, i32, i32, i32) {
    %c0_i32 = arith.constant 0 : i32
    %c0_i32_0 = arith.constant 0 : i32
    %c0_i32_1 = arith.constant 0 : i32
    return %arg0, %arg1, %c0_i32, %c0_i32_0 : i32, i32, i32, i32
  }
  func.func @transform_5(%arg0: i32, %arg1: i32) -> (i32, i32, i32) {
    %c0_i32 = arith.constant 0 : i32
    %c0_i32_0 = arith.constant 0 : i32
    %c0_i32_1 = arith.constant 0 : i32
    return %arg0, %c0_i32, %c0_i32_0 : i32, i32, i32
  }
  func.func @transform_6(%arg0: i32, %arg1: i32) -> (i32, i32, i32) {
    %c0_i32 = arith.constant 0 : i32
    %c0_i32_0 = arith.constant 0 : i32
    %c0_i32_1 = arith.constant 0 : i32
    return %arg0, %c0_i32, %c0_i32_0 : i32, i32, i32
  }
}

module attributes {stable_mosaic.version = 11 : i64} {
  func.func @_bn_lrelu_kernel(%arg0: i32, %arg1: memref<32x512xbf16, #tpu.memory_space<vmem>>, %arg2: memref<1x512xf32, #tpu.memory_space<vmem>>, %arg3: memref<1x512xf32, #tpu.memory_space<vmem>>, %arg4: memref<32x512xf32, #tpu.memory_space<vmem>>) attributes {dimension_semantics = [#tpu.dimension_semantics<parallel>], iteration_bounds = array<i64: 1>, scalar_prefetch = 0 : i64, scratch_operands = 0 : i64, tpu.core_type = #tpu.core_type<tc>, window_params = [{transform_indices = @transform_0, window_bounds = array<i64: 32, 512>}, {pipeline_mode = #tpu.pipeline_mode<synchronous>, transform_indices = @transform_1, window_bounds = array<i64: 1, 512>}, {pipeline_mode = #tpu.pipeline_mode<synchronous>, transform_indices = @transform_2, window_bounds = array<i64: 1, 512>}, {transform_indices = @transform_3, window_bounds = array<i64: 32, 512>}]} {
    %c0 = arith.constant 0 : index
    %c0_0 = arith.constant 0 : index
    %0 = vector.load %arg1[%c0, %c0_0] : memref<32x512xbf16, #tpu.memory_space<vmem>>, vector<32x512xbf16>
    %1 = arith.extf %0 : vector<32x512xbf16> to vector<32x512xf32>
    %c0_1 = arith.constant 0 : index
    %c0_2 = arith.constant 0 : index
    %2 = vector.load %arg2[%c0_1, %c0_2] : memref<1x512xf32, #tpu.memory_space<vmem>>, vector<1x512xf32>
    %3 = vector.broadcast %2 : vector<1x512xf32> to vector<32x512xf32>
    %4 = arith.mulf %1, %3 : vector<32x512xf32>
    %c0_3 = arith.constant 0 : index
    %c0_4 = arith.constant 0 : index
    %5 = vector.load %arg3[%c0_3, %c0_4] : memref<1x512xf32, #tpu.memory_space<vmem>>, vector<1x512xf32>
    %6 = vector.broadcast %5 : vector<1x512xf32> to vector<32x512xf32>
    %7 = arith.addf %4, %6 : vector<32x512xf32>
    %cst = arith.constant 0.000000e+00 : f32
    %8 = vector.broadcast %cst : f32 to vector<32x512xf32>
    %9 = arith.cmpf ogt, %7, %8 : vector<32x512xf32>
    %cst_5 = arith.constant 0.00999999977 : f32
    %10 = vector.broadcast %cst_5 : f32 to vector<32x512xf32>
    %11 = arith.mulf %10, %7 : vector<32x512xf32>
    %12 = arith.select %9, %7, %11 : vector<32x512xi1>, vector<32x512xf32>
    %c0_6 = arith.constant 0 : index
    %c0_7 = arith.constant 0 : index
    %13 = vector.load %arg4[%c0_6, %c0_7] : memref<32x512xf32, #tpu.memory_space<vmem>>, vector<32x512xf32>
    tpu.vector_store %arg4[%c0_6, %c0_7], %12 {strides = array<i32>} : memref<32x512xf32, #tpu.memory_space<vmem>>, vector<32x512xf32>,
    return
  }
  func.func @transform_0(%arg0: i32) -> (i32, i32) {
    %c0_i32 = arith.constant 0 : i32
    %c0_i32_0 = arith.constant 0 : i32
    return %arg0, %c0_i32 : i32, i32
  }
  func.func @transform_1(%arg0: i32) -> (i32, i32) {
    %c0_i32 = arith.constant 0 : i32
    %c0_i32_0 = arith.constant 0 : i32
    %c0_i32_1 = arith.constant 0 : i32
    return %c0_i32, %c0_i32_0 : i32, i32
  }
  func.func @transform_2(%arg0: i32) -> (i32, i32) {
    %c0_i32 = arith.constant 0 : i32
    %c0_i32_0 = arith.constant 0 : i32
    %c0_i32_1 = arith.constant 0 : i32
    return %c0_i32, %c0_i32_0 : i32, i32
  }
  func.func @transform_3(%arg0: i32) -> (i32, i32) {
    %c0_i32 = arith.constant 0 : i32
    %c0_i32_0 = arith.constant 0 : i32
    return %arg0, %c0_i32 : i32, i32
  }
}

</mosaic_0001>

<bundles_post_ra>
// kernel: tile.23
= control target key start
LH: loop header
LB: loop body
LE: loop exit
PB: predicated region body
PF: predicated region fallthrough
CT: control target
= control target key end

     0   :  { %s28_s0 = inlined_call_operand.vmem [shape: f32[32], index: 0, kind: input, shape index: {}]   ;;  %s29_s1 = inlined_call_operand.vmem [shape: f32[16,32], index: 1, kind: output, shape index: {}]  }
   0x1   :  { %v4_v0 = vld [vmem:[%s28_s0] ss:$0 sm:$0xff] }
   0x2   :  { %5 = vst [vmem:[%s29_s1] sm:$0xff] %v4_v0  ;;  %8 = vst [vmem:[%s29_s1 + $0x8] sm:$0xff] %v4_v0 }

// kernel: tile.24
= control target key start
LH: loop header
LB: loop body
LE: loop exit
PB: predicated region body
PF: predicated region fallthrough
CT: control target
= control target key end

     0   :  { %s57_s8 = smov 96   ;;  %vm3_vm0 = vcmask 261120   ;;  %s59_s15 = smov 64   ;;  %vm9_vm1 = vcmask 1048320   ;;  %vm15_vm2 = vcmask 785920   ;;  %vm21_vm3 = vcmask 523520   ;;  %s94_s0 = inlined_call_operand.vmem [shape: f32[16,32], index: 0, kind: input, shape index: {}]   ;;  %s95_s1 = inlined_call_operand.vmem [shape: f32[1,512], index: 1, kind: output, shape index: {}]  }
   0x1   :  { %v48_v0 = vld [vmem:[%s94_s0 + $0x3] ss:$4 sm:$0xf]   ;;  %v49_v1 = vld [vmem:[%s94_s0 + $0x2] ss:$4 sm:$0xf]  }
   0x2   :  { %7 = vrot.lane.b32.xlu0 %v48_v0, %s57_s8  ;;  %v50_v2 = vld [vmem:[%s94_s0 + $0x1] ss:$4 sm:$0xf]   ;;  %v2_v3 = vld [vmem:[%s94_s0] ss:$4 sm:$0xf]  }
   0x3   :  { %s58_s0 = smov 32   ;;  %4 = vst.msk [vmem:[#allocation0] ss:$8 sm:$0xf] %vm3_vm0, %v2_v3  }
   0x4   :  { %19 = vrot.lane.b32.xlu1 %v50_v2, %s58_s0 }
   0x6   :  { %13 = vrot.lane.b32.xlu0 %v49_v1, %s59_s15 }
  0x74   :  { %v8_v4 = vpop.permute.xlu0 %7  }
  0x75   :  { %10 = vst.msk [vmem:[#allocation0] ss:$8 sm:$0xf] %vm9_vm1, %v8_v4  }
  0x76   :  { %v20_v5 = vpop.permute.xlu1 %19  }
  0x78   :  { %v14_v6 = vpop.permute.xlu0 %13  }
  0x79   :  { %16 = vst.msk [vmem:[#allocation0] ss:$8 sm:$0xf] %vm15_vm2, %v14_v6  }
  0x7a   :  { %22 = vst.msk [vmem:[#allocation0] ss:$8 sm:$0xf] %vm21_vm3, %v20_v5  }
  0x81   :  { %v26_v7 = vld [vmem:[#allocation0] sm:$0x1]  ;;  %v30_v8 = vld [vmem:[#allocation0 + $0x8] sm:$0x1]  ;;  %v35_v9 = vld [vmem:[#allocation0 + $0x10] sm:$0x1] }
  0x82   :  { %28 = vst [vmem:[%s95_s1] sm:$0x1] %v26_v7  ;;  %51 = vst [vmem:[%s95_s1 + $0x1] sm:$0x1] %v30_v8  ;;  %v41_v10 = vld [vmem:[#allocation0 + $0x18] sm:$0x1] }
  0x83   :  { %52 = vst [vmem:[%s95_s1 + $0x2] sm:$0x1] %v35_v9  ;;  %53 = vst [vmem:[%s95_s1 + $0x3] sm:$0x1] %v41_v10 }

// kernel: double_conv_forward.5
= control target key start
LH: loop header
LB: loop body
LE: loop exit
PB: predicated region body
PF: predicated region fallthrough
CT: control target
= control target key end

     0   :  { %v40_v0 = vlaneseq  ;;  %s365_s0 = inlined_call_operand.vmem [shape: bf16[32,512], index: 0, kind: input, shape index: {}]   ;;  %s366_s1 = inlined_call_operand.vmem [shape: f32[1,512], index: 1, kind: input, shape index: {}]   ;;  %s367_s2 = inlined_call_operand.vmem [shape: f32[1,512], index: 2, kind: input, shape index: {}]   ;;  %s368_s3 = inlined_call_operand.vmem [shape: bf16[32,512], index: 3, kind: output, shape index: {}]  }
   0x1   :  { %v14_v1 = vld [vmem:[%s365_s0] sm:$0xff]  ;;  %v15_v5 = vld [vmem:[%s365_s0 + $0x8] sm:$0xff]  ;;  %v16_v6 = vld [vmem:[%s365_s0 + $0x10] sm:$0xff] }
   0x2   :  { %v22_v2 = vunpack.c.l.bf16 %v14_v1  ;;  %v23_v3 = vunpack.c.h.bf16 %v14_v1  ;;  %v41_v4 = vshrl.u32 %v40_v0, 7  ;;  %v17_v7 = vld [vmem:[%s365_s0 + $0x18] sm:$0xff]  ;;  %v38_v8 = vld [vmem:[%s366_s1] sm:$0xf]  ;;  %v24_v10 = vunpack.c.l.bf16 %v15_v5  ;;  %v19_v57 = vld [vmem:[%s365_s0 + $0x28] sm:$0xff] }
   0x3   :  { %v76_v9 = vld [vmem:[%s367_s2] sm:$0xf]  ;;  %v25_v11 = vunpack.c.h.bf16 %v15_v5  ;;  %v26_v12 = vunpack.c.l.bf16 %v16_v6  ;;  %v27_v13 = vunpack.c.h.bf16 %v16_v6  ;;  %v28_v19 = vunpack.c.l.bf16 %v17_v7 }
   0x4   :  { %v279_v14 = vld [vmem:[%s365_s0 + $0x20] sm:$0xff]  ;;  %v42_v15 = vsub.s32 0, %v41_v4  ;;  %v46_v16 = vsub.s32 1, %v41_v4  ;;  %v50_v17 = vsub.s32 2, %v41_v4  ;;  %v54_v18 = vsub.s32 3, %v41_v4  ;;  %v20_v4 = vld [vmem:[%s365_s0 + $0x30] sm:$0xff] }
   0x5   :  { %v29_v20 = vunpack.c.h.bf16 %v17_v7  ;;  %v30_v21 = vunpack.c.l.bf16 %v279_v14  ;;  %v31_v22 = vunpack.c.h.bf16 %v279_v14 }
   0x6   :  { %v283_v23 = vrot.slane %v38_v8, %v42_v15  ;;  %v285_v24 = vrot.slane %v38_v8, %v46_v16  ;;  %v287_v25 = vrot.slane %v76_v9, %v42_v15  ;;  %v289_v26 = vrot.slane %v76_v9, %v46_v16 }
   0x7   :  { %v291_v27 = vrot.slane %v38_v8, %v50_v17  ;;  %v293_v28 = vrot.slane %v38_v8, %v54_v18  ;;  %v295_v29 = vrot.slane %v76_v9, %v50_v17  ;;  %v297_v30 = vrot.slane %v76_v9, %v54_v18 }
   0x8   :  { %v60_v31 = vmul.f32 %v283_v23, %v22_v2  ;;  %v61_v32 = vmul.f32 %v285_v24, %v23_v3  ;;  %v64_v33 = vmul.f32 %v283_v23, %v26_v12  ;;  %v65_v34 = vmul.f32 %v285_v24, %v27_v13  ;;  %v21_v13 = vld [vmem:[%s365_s0 + $0x38] sm:$0xff] }
   0x9   :  { %v62_v35 = vmul.f32 %v291_v27, %v24_v10  ;;  %v63_v36 = vmul.f32 %v293_v28, %v25_v11  ;;  %v66_v37 = vmul.f32 %v291_v27, %v28_v19  ;;  %v67_v38 = vmul.f32 %v293_v28, %v29_v20 }
   0xa   :  { %v98_v39 = vadd.f32 %v287_v25, %v60_v31  ;;  %v99_v40 = vadd.f32 %v289_v26, %v61_v32  ;;  %v102_v41 = vadd.f32 %v287_v25, %v64_v33  ;;  %v103_v42 = vadd.f32 %v289_v26, %v65_v34 }
   0xb   :  { %v100_v43 = vadd.f32 %v295_v29, %v62_v35  ;;  %v101_v44 = vadd.f32 %v297_v30, %v63_v36  ;;  %v104_v45 = vadd.f32 %v295_v29, %v66_v37  ;;  %v105_v46 = vadd.f32 %v297_v30, %v67_v38 }
   0xc   :  { %vm114_vm0 = vcmp.gt.f32.partialorder %v98_v39, 0.0  ;;  %vm115_vm1 = vcmp.gt.f32.partialorder %v99_v40, 0.0  ;;  %v130_v47 = vmul.f32 0.01, %v98_v39  ;;  %v131_v48 = vmul.f32 0.01, %v99_v40 }
   0xd   :  { %vm116_vm2 = vcmp.gt.f32.partialorder %v100_v43, 0.0  ;;  %vm117_vm3 = vcmp.gt.f32.partialorder %v101_v44, 0.0  ;;  %v132_v49 = vmul.f32 0.01, %v100_v43  ;;  %v133_v50 = vmul.f32 0.01, %v101_v44 }
   0xe   :  { %v146_v51 = vsel %vm114_vm0, %v98_v39, %v130_v47  ;;  %v147_v52 = vsel %vm115_vm1, %v99_v40, %v131_v48  ;;  %vm118_vm4 = vcmp.gt.f32.partialorder %v102_v41, 0.0  ;;  %vm119_vm5 = vcmp.gt.f32.partialorder %v103_v42, 0.0 }
   0xf   :  { %v230_v53 = vpack.c.bf16 %v147_v52, %v146_v51  ;;  %v148_v54 = vsel %vm116_vm2, %v100_v43, %v132_v49  ;;  %v149_v55 = vsel %vm117_vm3, %v101_v44, %v133_v50  ;;  %v134_v56 = vmul.f32 0.01, %v102_v41 }
  0x10   :  { %v231_v58 = vpack.c.bf16 %v149_v55, %v148_v54  ;;  %v135_v59 = vmul.f32 0.01, %v103_v42  ;;  %vm120_vm6 = vcmp.gt.f32.partialorder %v104_v45, 0.0  ;;  %vm121_vm7 = vcmp.gt.f32.partialorder %v105_v46, 0.0 }
  0x11   :  { %210 = vst [vmem:[%s368_s3] sm:$0xff] %v230_v53  ;;  %v150_v60 = vsel %vm118_vm4, %v102_v41, %v134_v56  ;;  %v136_v61 = vmul.f32 0.01, %v104_v45  ;;  %v137_v62 = vmul.f32 0.01, %v105_v46  ;;  %v68_v63 = vmul.f32 %v283_v23, %v30_v21 }
  0x12   :  { %211 = vst [vmem:[%s368_s3 + $0x8] sm:$0xff] %v231_v58  ;;  %v151_v0 = vsel %vm119_vm5, %v103_v42, %v135_v59  ;;  %v69_v1 = vmul.f32 %v285_v24, %v31_v22  ;;  %v32_v2 = vunpack.c.l.bf16 %v19_v57  ;;  %v33_v3 = vunpack.c.h.bf16 %v19_v57 }
  0x13   :  { %v232_v5 = vpack.c.bf16 %v151_v0, %v150_v60  ;;  %v152_v6 = vsel %vm120_vm6, %v104_v45, %v136_v61  ;;  %v153_v7 = vsel %vm121_vm7, %v105_v46, %v137_v62  ;;  %v106_v8 = vadd.f32 %v287_v25, %v68_v63 }
  0x14   :  { %v233_v9 = vpack.c.bf16 %v153_v7, %v152_v6  ;;  %v107_v10 = vadd.f32 %v289_v26, %v69_v1  ;;  %v70_v11 = vmul.f32 %v291_v27, %v32_v2  ;;  %v71_v12 = vmul.f32 %v293_v28, %v33_v3 }
  0x15   :  { %212 = vst [vmem:[%s368_s3 + $0x10] sm:$0xff] %v232_v5  ;;  %vm122_vm8 = vcmp.gt.f32.partialorder %v106_v8, 0.0  ;;  %v138_v14 = vmul.f32 0.01, %v106_v8  ;;  %v34_v15 = vunpack.c.l.bf16 %v20_v4  ;;  %v35_v16 = vunpack.c.h.bf16 %v20_v4 }
  0x16   :  { %213 = vst [vmem:[%s368_s3 + $0x18] sm:$0xff] %v233_v9  ;;  %vm123_vm9 = vcmp.gt.f32.partialorder %v107_v10, 0.0  ;;  %v139_v17 = vmul.f32 0.01, %v107_v10  ;;  %v108_v18 = vadd.f32 %v295_v29, %v70_v11  ;;  %v109_v19 = vadd.f32 %v297_v30, %v71_v12 }
  0x17   :  { %v154_v20 = vsel %vm122_vm8, %v106_v8, %v138_v14  ;;  %v72_v21 = vmul.f32 %v283_v23, %v34_v15  ;;  %v73_v22 = vmul.f32 %v285_v24, %v35_v16  ;;  %v36_v31 = vunpack.c.l.bf16 %v21_v13 }
  0x18   :  { %v155_v32 = vsel %vm123_vm9, %v107_v10, %v139_v17  ;;  %vm124_vm10 = vcmp.gt.f32.partialorder %v108_v18, 0.0  ;;  %vm125_vm11 = vcmp.gt.f32.partialorder %v109_v19, 0.0  ;;  %v140_v33 = vmul.f32 0.01, %v108_v18 }
  0x19   :  { %v234_v34 = vpack.c.bf16 %v155_v32, %v154_v20  ;;  %v141_v35 = vmul.f32 0.01, %v109_v19  ;;  %v110_v36 = vadd.f32 %v287_v25, %v72_v21  ;;  %v111_v37 = vadd.f32 %v289_v26, %v73_v22 }
  0x1a   :  { %v156_v38 = vsel %vm124_vm10, %v108_v18, %v140_v33  ;;  %v37_v39 = vunpack.c.h.bf16 %v21_v13  ;;  %v74_v40 = vmul.f32 %v291_v27, %v36_v31 }
  0x1b   :  { %214 = vst [vmem:[%s368_s3 + $0x20] sm:$0xff] %v234_v34  ;;  %v157_v23 = vsel %vm125_vm11, %v109_v19, %v141_v35  ;;  %vm126_vm12 = vcmp.gt.f32.partialorder %v110_v36, 0.0  ;;  %vm127_vm13 = vcmp.gt.f32.partialorder %v111_v37, 0.0  ;;  %v142_v24 = vmul.f32 0.01, %v110_v36 }
  0x1c   :  { %v235_v41 = vpack.c.bf16 %v157_v23, %v156_v38  ;;  %v143_v42 = vmul.f32 0.01, %v111_v37  ;;  %v75_v43 = vmul.f32 %v293_v28, %v37_v39  ;;  %v112_v25 = vadd.f32 %v295_v29, %v74_v40 }
  0x1d   :  { %v158_v44 = vsel %vm126_vm12, %v110_v36, %v142_v24 }
  0x1e   :  { %215 = vst [vmem:[%s368_s3 + $0x28] sm:$0xff] %v235_v41  ;;  %v159_v26 = vsel %vm127_vm13, %v111_v37, %v143_v42  ;;  %v113_v27 = vadd.f32 %v297_v30, %v75_v43  ;;  %vm128_vm14 = vcmp.gt.f32.partialorder %v112_v25, 0.0  ;;  %v144_v45 = vmul.f32 0.01, %v112_v25 }
  0x1f   :  { %v236_v46 = vpack.c.bf16 %v159_v26, %v158_v44 }
  0x20   :  { %vm129_vm15 = vcmp.gt.f32.partialorder %v113_v27, 0.0  ;;  %v145_v47 = vmul.f32 0.01, %v113_v27  ;;  %v160_v48 = vsel %vm128_vm14, %v112_v25, %v144_v45 }
  0x21   :  { %216 = vst [vmem:[%s368_s3 + $0x30] sm:$0xff] %v236_v46 }
  0x22   :  { %v161_v28 = vsel %vm129_vm15, %v113_v27, %v145_v47 }
  0x23   :  { %v237_v29 = vpack.c.bf16 %v161_v28, %v160_v48 }
  0x25   :  { %217 = vst [vmem:[%s368_s3 + $0x38] sm:$0xff] %v237_v29 }

// kernel: double_conv_forward.7
= control target key start
LH: loop header
LB: loop body
LE: loop exit
PB: predicated region body
PF: predicated region fallthrough
CT: control target
= control target key end

     0   :  { %v40_v0 = vlaneseq  ;;  %s332_s0 = inlined_call_operand.vmem [shape: bf16[32,512], index: 0, kind: input, shape index: {}]   ;;  %s333_s1 = inlined_call_operand.vmem [shape: f32[1,512], index: 1, kind: input, shape index: {}]   ;;  %s334_s2 = inlined_call_operand.vmem [shape: f32[1,512], index: 2, kind: input, shape index: {}]   ;;  %s335_s3 = inlined_call_operand.vmem [shape: f32[32,512], index: 3, kind: output, shape index: {}]  }
   0x1   :  { %v14_v1 = vld [vmem:[%s332_s0] sm:$0xff]  ;;  %v15_v5 = vld [vmem:[%s332_s0 + $0x8] sm:$0xff]  ;;  %v16_v6 = vld [vmem:[%s332_s0 + $0x10] sm:$0xff] }
   0x2   :  { %v22_v2 = vunpack.c.l.bf16 %v14_v1  ;;  %v41_v3 = vshrl.u32 %v40_v0, 7  ;;  %v23_v4 = vunpack.c.h.bf16 %v14_v1  ;;  %v17_v7 = vld [vmem:[%s332_s0 + $0x18] sm:$0xff]  ;;  %v38_v8 = vld [vmem:[%s333_s1] sm:$0xf]  ;;  %v24_v10 = vunpack.c.l.bf16 %v15_v5  ;;  %v19_v57 = vld [vmem:[%s332_s0 + $0x28] sm:$0xff] }
   0x3   :  { %v76_v9 = vld [vmem:[%s334_s2] sm:$0xf]  ;;  %v25_v11 = vunpack.c.h.bf16 %v15_v5  ;;  %v26_v12 = vunpack.c.l.bf16 %v16_v6  ;;  %v27_v13 = vunpack.c.h.bf16 %v16_v6  ;;  %v28_v19 = vunpack.c.l.bf16 %v17_v7  ;;  %v20_v58 = vld [vmem:[%s332_s0 + $0x30] sm:$0xff]  ;;  %v21_v1 = vld [vmem:[%s332_s0 + $0x38] sm:$0xff] }
   0x4   :  { %v223_v14 = vld [vmem:[%s332_s0 + $0x20] sm:$0xff]  ;;  %v42_v15 = vsub.s32 0, %v41_v3  ;;  %v46_v16 = vsub.s32 1, %v41_v3  ;;  %v50_v17 = vsub.s32 2, %v41_v3  ;;  %v54_v18 = vsub.s32 3, %v41_v3 }
   0x5   :  { %v29_v20 = vunpack.c.h.bf16 %v17_v7  ;;  %v30_v21 = vunpack.c.l.bf16 %v223_v14  ;;  %v31_v22 = vunpack.c.h.bf16 %v223_v14  ;;  %v32_v3 = vunpack.c.l.bf16 %v19_v57 }
   0x6   :  { %v227_v23 = vrot.slane %v38_v8, %v42_v15  ;;  %v229_v24 = vrot.slane %v76_v9, %v42_v15  ;;  %v231_v25 = vrot.slane %v38_v8, %v46_v16  ;;  %v233_v26 = vrot.slane %v76_v9, %v46_v16 }
   0x7   :  { %v235_v27 = vrot.slane %v38_v8, %v50_v17  ;;  %v237_v28 = vrot.slane %v76_v9, %v50_v17  ;;  %v239_v29 = vrot.slane %v38_v8, %v54_v18  ;;  %v241_v30 = vrot.slane %v76_v9, %v54_v18 }
   0x8   :  { %v60_v31 = vmul.f32 %v227_v23, %v22_v2  ;;  %v61_v32 = vmul.f32 %v231_v25, %v23_v4  ;;  %v64_v33 = vmul.f32 %v227_v23, %v26_v12  ;;  %v65_v34 = vmul.f32 %v231_v25, %v27_v13 }
   0x9   :  { %v62_v35 = vmul.f32 %v235_v27, %v24_v10  ;;  %v63_v36 = vmul.f32 %v239_v29, %v25_v11  ;;  %v66_v37 = vmul.f32 %v235_v27, %v28_v19  ;;  %v67_v38 = vmul.f32 %v239_v29, %v29_v20 }
   0xa   :  { %v98_v39 = vadd.f32 %v229_v24, %v60_v31  ;;  %v99_v40 = vadd.f32 %v233_v26, %v61_v32  ;;  %v102_v41 = vadd.f32 %v229_v24, %v64_v33  ;;  %v103_v42 = vadd.f32 %v233_v26, %v65_v34 }
   0xb   :  { %v100_v43 = vadd.f32 %v237_v28, %v62_v35  ;;  %v101_v44 = vadd.f32 %v241_v30, %v63_v36  ;;  %v104_v45 = vadd.f32 %v237_v28, %v66_v37  ;;  %v105_v46 = vadd.f32 %v241_v30, %v67_v38 }
   0xc   :  { %vm114_vm0 = vcmp.gt.f32.partialorder %v98_v39, 0.0  ;;  %v130_v47 = vmul.f32 0.01, %v98_v39  ;;  %vm115_vm1 = vcmp.gt.f32.partialorder %v99_v40, 0.0  ;;  %v131_v48 = vmul.f32 0.01, %v99_v40 }
   0xd   :  { %vm116_vm2 = vcmp.gt.f32.partialorder %v100_v43, 0.0  ;;  %v132_v49 = vmul.f32 0.01, %v100_v43  ;;  %vm117_vm3 = vcmp.gt.f32.partialorder %v101_v44, 0.0  ;;  %v133_v50 = vmul.f32 0.01, %v101_v44 }
   0xe   :  { %v146_v51 = vsel %vm114_vm0, %v98_v39, %v130_v47  ;;  %v147_v52 = vsel %vm115_vm1, %v99_v40, %v131_v48  ;;  %vm118_vm4 = vcmp.gt.f32.partialorder %v102_v41, 0.0  ;;  %v134_v53 = vmul.f32 0.01, %v102_v41 }
   0xf   :  { %162 = vst [vmem:[%s335_s3] sm:$0xff] %v146_v51  ;;  %163 = vst [vmem:[%s335_s3 + $0x8] sm:$0xff] %v147_v52  ;;  %v148_v54 = vsel %vm116_vm2, %v100_v43, %v132_v49  ;;  %v149_v55 = vsel %vm117_vm3, %v101_v44, %v133_v50  ;;  %vm119_vm5 = vcmp.gt.f32.partialorder %v103_v42, 0.0  ;;  %v135_v56 = vmul.f32 0.01, %v103_v42 }
  0x10   :  { %164 = vst [vmem:[%s335_s3 + $0x10] sm:$0xff] %v148_v54  ;;  %165 = vst [vmem:[%s335_s3 + $0x18] sm:$0xff] %v149_v55  ;;  %v150_v59 = vsel %vm118_vm4, %v102_v41, %v134_v53  ;;  %vm120_vm6 = vcmp.gt.f32.partialorder %v104_v45, 0.0  ;;  %v136_v60 = vmul.f32 0.01, %v104_v45  ;;  %vm121_vm7 = vcmp.gt.f32.partialorder %v105_v46, 0.0 }
  0x11   :  { %166 = vst [vmem:[%s335_s3 + $0x20] sm:$0xff] %v150_v59  ;;  %v151_v61 = vsel %vm119_vm5, %v103_v42, %v135_v56  ;;  %v137_v62 = vmul.f32 0.01, %v105_v46  ;;  %v68_v63 = vmul.f32 %v227_v23, %v30_v21  ;;  %v69_v0 = vmul.f32 %v231_v25, %v31_v22 }
  0x12   :  { %167 = vst [vmem:[%s335_s3 + $0x28] sm:$0xff] %v151_v61  ;;  %v152_v2 = vsel %vm120_vm6, %v104_v45, %v136_v60  ;;  %v33_v4 = vunpack.c.h.bf16 %v19_v57  ;;  %v34_v5 = vunpack.c.l.bf16 %v20_v58  ;;  %v35_v9 = vunpack.c.h.bf16 %v20_v58 }
  0x13   :  { %168 = vst [vmem:[%s335_s3 + $0x30] sm:$0xff] %v152_v2  ;;  %v153_v6 = vsel %vm121_vm7, %v105_v46, %v137_v62  ;;  %v106_v7 = vadd.f32 %v229_v24, %v68_v63  ;;  %v107_v8 = vadd.f32 %v233_v26, %v69_v0  ;;  %v70_v10 = vmul.f32 %v235_v27, %v32_v3 }
  0x14   :  { %169 = vst [vmem:[%s335_s3 + $0x38] sm:$0xff] %v153_v6  ;;  %v71_v11 = vmul.f32 %v239_v29, %v33_v4  ;;  %v72_v12 = vmul.f32 %v227_v23, %v34_v5  ;;  %v36_v13 = vunpack.c.l.bf16 %v21_v1  ;;  %v73_v19 = vmul.f32 %v231_v25, %v35_v9 }
  0x15   :  { %vm122_vm8 = vcmp.gt.f32.partialorder %v106_v7, 0.0  ;;  %v138_v14 = vmul.f32 0.01, %v106_v7  ;;  %vm123_vm9 = vcmp.gt.f32.partialorder %v107_v8, 0.0  ;;  %v139_v15 = vmul.f32 0.01, %v107_v8 }
  0x16   :  { %v108_v16 = vadd.f32 %v237_v28, %v70_v10  ;;  %v109_v17 = vadd.f32 %v241_v30, %v71_v11  ;;  %v110_v18 = vadd.f32 %v229_v24, %v72_v12  ;;  %v74_v22 = vmul.f32 %v235_v27, %v36_v13 }
  0x17   :  { %v154_v20 = vsel %vm122_vm8, %v106_v7, %v138_v14  ;;  %v155_v21 = vsel %vm123_vm9, %v107_v8, %v139_v15  ;;  %v37_v31 = vunpack.c.h.bf16 %v21_v1  ;;  %v111_v25 = vadd.f32 %v233_v26, %v73_v19 }
  0x18   :  { %170 = vst [vmem:[%s335_s3 + $0x40] sm:$0xff] %v154_v20  ;;  %171 = vst [vmem:[%s335_s3 + $0x48] sm:$0xff] %v155_v21  ;;  %vm124_vm10 = vcmp.gt.f32.partialorder %v108_v16, 0.0  ;;  %v140_v23 = vmul.f32 0.01, %v108_v16  ;;  %vm125_vm11 = vcmp.gt.f32.partialorder %v109_v17, 0.0  ;;  %v112_v33 = vadd.f32 %v237_v28, %v74_v22 }
  0x19   :  { %v141_v32 = vmul.f32 0.01, %v109_v17  ;;  %vm126_vm12 = vcmp.gt.f32.partialorder %v110_v18, 0.0  ;;  %v142_v24 = vmul.f32 0.01, %v110_v18  ;;  %v75_v35 = vmul.f32 %v239_v29, %v37_v31 }
  0x1a   :  { %v156_v27 = vsel %vm124_vm10, %v108_v16, %v140_v23  ;;  %vm127_vm13 = vcmp.gt.f32.partialorder %v111_v25, 0.0  ;;  %v143_v37 = vmul.f32 0.01, %v111_v25  ;;  %vm128_vm14 = vcmp.gt.f32.partialorder %v112_v33, 0.0 }
  0x1b   :  { %v157_v34 = vsel %vm125_vm11, %v109_v17, %v141_v32  ;;  %172 = vst [vmem:[%s335_s3 + $0x50] sm:$0xff] %v156_v27  ;;  %v158_v36 = vsel %vm126_vm12, %v110_v18, %v142_v24  ;;  %v144_v26 = vmul.f32 0.01, %v112_v33  ;;  %v113_v28 = vadd.f32 %v241_v30, %v75_v35 }
  0x1c   :  { %173 = vst [vmem:[%s335_s3 + $0x58] sm:$0xff] %v157_v34  ;;  %174 = vst [vmem:[%s335_s3 + $0x60] sm:$0xff] %v158_v36  ;;  %v159_v29 = vsel %vm127_vm13, %v111_v25, %v143_v37 }
  0x1d   :  { %175 = vst [vmem:[%s335_s3 + $0x68] sm:$0xff] %v159_v29  ;;  %v160_v38 = vsel %vm128_vm14, %v112_v33, %v144_v26  ;;  %vm129_vm15 = vcmp.gt.f32.partialorder %v113_v28, 0.0  ;;  %v145_v39 = vmul.f32 0.01, %v113_v28 }
  0x1e   :  { %176 = vst [vmem:[%s335_s3 + $0x70] sm:$0xff] %v160_v38 }
  0x1f   :  { %v161_v40 = vsel %vm129_vm15, %v113_v28, %v145_v39 }
  0x20   :  { %177 = vst [vmem:[%s335_s3 + $0x78] sm:$0xff] %v161_v40 }

// kernel: double_conv_forward.4
= control target key start
LH: loop header
LB: loop body
LE: loop exit
PB: predicated region body
PF: predicated region fallthrough
CT: control target
= control target key end

     0   :  { %s4826_s21 = smov 0   ;;  %s4828_s22 = smov 0   ;;  %s5998_s0 = inlined_call_operand.vmem [shape: bf16[2,18,18,8], index: 0, kind: input, shape index: {}, may-alias: {0,1,2}]   ;;  %s5999_s1 = inlined_call_operand.vmem [shape: bf16[2,18,18,8], index: 1, kind: input, shape index: {}, may-alias: {0,1,2}]   ;;  %s6000_s2 = inlined_call_operand.vmem [shape: bf16[2,18,18,8], index: 2, kind: input, shape index: {}, may-alias: {0,1,2}]   ;;  %s6001_s3 = inlined_call_operand.vmem [shape: bf16[3,3,8,32], index: 3, kind: input, shape index: {}]   ;;  %s6002_s4 = inlined_call_operand.vmem [shape: bf16[2,16,16,32], index: 4, kind: output, shape index: {0}]   ;;  %s6003_s5 = inlined_call_operand.vmem [shape: f32[2,1,32], index: 5, kind: output, shape index: {1}]   ;;  %s6004_s6 = inlined_call_operand.vmem [shape: f32[2,1,32], index: 6, kind: output, shape index: {2}]  }
   0x1   :  { %s4830_s23 = smov 0  }
   0x2 LB: > { %s29_s24 = sadd.s32 1, %s4784_s22  ;;  %p3688_p0 = scmp.ge.s32.totalorder %s4788_s23, 1  ;;  %s4788_s23 = sphi %s4830_s23, %s17_s23   ;;  %s4784_s22 = sphi %s4828_s22, %s6083_s22   ;;  %s4780_s21 = sphi %s4826_s21, %s6082_s21  }
   0x3   : > { %p31_p1 = scmp.ge.s32.totalorder %s29_s24, 2  ;;  %p297_p2 = scmp.lt.s32.totalorder %s4788_s23, 3 }
   0x5   : > { %s6085_s24 = smov (%p31_p1, %s29_s24), 0  ;;  %p298_p3 = pnand %p3688_p0, %p297_p2 }
   0x7   : > { %301 = sbr.rel (%p298_p3) target bundleno = 573 (0x23d), region = 36 }
   0xe   : > { %v3694_v0 = vld [vmem:[%s6001_s3 + $0x4] sm:$0xf]  ;;  %vm983_vm0 = vcmask 1043456   ;;  %v3826_v1 = vld [vmem:[%s6001_s3 + $0x10] sm:$0xf]  ;;  %p376_p4 = scmp.lt.s32.totalorder %s4780_s21, 1 }
   0xf   : > { %4706 = vmatprep.subr.msk.bf16.mxu1 %vm983_vm0, %v3694_v0  ;;  %4710 = vmatprep.subr.msk.bf16.mxu0 %vm983_vm0, %v3826_v1  ;;  %v985_v2 = vsel %vm983_vm0, %v3694_v0, 0  ;;  %v4854_v3 = vsel %vm983_vm0, %v3826_v1, 0  ;;  %v496_v4 = vld [vmem:[%s6001_s3] sm:$0xf]  ;;  %v3845_v5 = vld [vmem:[%s6001_s3 + $0x14] sm:$0xf] }
  0x10   : > { %6036 = vst [vmem:[#allocation2_spill] sm:$0xff] %v4854_v3  ;;  %4143 = vmatpush3.bf16.msra.mxu1 %v985_v2  ;;  %4279 = vmatpush3.bf16.msra.mxu0 %v4854_v3  ;;  %s6087_s21 = smov (!%p376_p4, %s4780_s21), 1  ;;  %vm497_vm1 = vsmask.f32 3328  ;;  %vm498_vm2 = vsmask.f32 7440 }
  0x11   : > { %4707 = vmatprep.subr.msk.bf16.mxu1 %vm983_vm0, %v496_v4  ;;  %4712 = vmatprep.subr.msk.bf16.mxu0 %vm983_vm0, %v3845_v5  ;;  %s4868_s9 = smul.u32 216, %s6087_s21  ;;  %v4877_v6 = vsel %vm983_vm0, %v496_v4, 0  ;;  %v4880_v7 = vsel %vm983_vm0, %v3845_v5, 0  ;;  %v4885_v8 = vld [vmem:[%s6001_s3 + $0x18] sm:$0xf]  ;;  %vm934_vm3 = vcmask 64512   ;;  %vm4921_vm4 = vmor %vm497_vm1, %vm498_vm2  ;;  %s5813_s15 = scalar_lea.vmem %s6003_s5, %s6087_s21 }
  0x12   : > { %v4909_v20 = vsel %vm983_vm0, %v4885_v8, 0  ;;  %vm1456_vm5 = vcmask 1042432   ;;  %vm1457_vm6 = vcmask 1046532   ;;  %s5819_s18 = scalar_lea.vmem %s6004_s6, %s6087_s21  ;;  %vm439_vm8 = vcmask 253952   ;;  %s3956_s19 = sshll.u32 %s6087_s21, 7 }
  0x13   : > { %s4874_s12 = scalar_lea.vmem %s5998_s0, %s4868_s9  ;;  %vm5102_vm7 = vmor %vm1456_vm5, %vm1457_vm6  ;;  %s3953_s25 = sadd.s32 192, %s4868_s9  ;;  %vm3285_vm9 = vcmask 257024   ;;  %vm3319_vm10 = vcmask 261120  }
  0x14   : > { %v4888_v9 = vld [vmem:[%s4874_s12] sm:$0xf]  ;;  %v4891_v10 = vld [vmem:[%s4874_s12 + $0x4] sm:$0xf]  ;;  %v444_v11 = vld [vmem:[%s4874_s12 + $0x8] sm:$0x1]  ;;  %s401_s28 = scalar_lea.vmem %s5999_s1, %s3953_s25  ;;  %s5845_s26 = scalar_lea.vmem %s6002_s4, %s3956_s19 }
  0x15   : > { %v501_v12 = vshrl.u32 %v4888_v9, 16  ;;  %v504_v13 = vshll.u32 %v4888_v9, 16  ;;  %v510_v14 = vshll.u32 %v4891_v10, 16  ;;  %v514_v15 = vshrl.u32 %v4891_v10, 16  ;;  %v4899_v16 = vld [vmem:[%s4874_s12 + $0xc] sm:$0xf] }
  0x16   : > { %v520_v17 = vshll.u32 %v444_v11, 16  ;;  %v4902_v18 = vld [vmem:[%s4874_s12 + $0x10] sm:$0xf]  ;;  %v4905_v19 = vld [vmem:[%s4874_s12 + $0x14] sm:$0x1]  ;;  %v525_v26 = vshrl.u32 %v4899_v16, 16 }
  0x17   : > { %v503_v21 = vrot.slane %v501_v12, 4  ;;  %v506_v22 = vrot.slane %v504_v13, 5  ;;  %v512_v23 = vrot.slane %v510_v14, 5  ;;  %v516_v24 = vrot.slane %v514_v15, 4  ;;  %v4917_v33 = vld [vmem:[%s4874_s12 + $0x18] sm:$0xf] }
  0x18   : > { %v522_v25 = vrot.slane %v520_v17, 5  ;;  %v528_v27 = vshll.u32 %v4899_v16, 16  ;;  %v534_v28 = vshll.u32 %v4902_v18, 16  ;;  %v538_v31 = vshrl.u32 %v4902_v18, 16  ;;  %v4930_v39 = vld [vmem:[%s4874_s12 + $0x1c] sm:$0xf] }
  0x19   : > { %v507_v29 = vor.u32 %v506_v22, %v503_v21  ;;  %v517_v30 = vor.u32 %v516_v24, %v512_v23  ;;  %v544_v32 = vshll.u32 %v4905_v19, 16  ;;  %v527_v35 = vrot.slane %v525_v26, 4  ;;  %v4934_v46 = vld [vmem:[%s4874_s12 + $0x20] sm:$0x1]  ;;  %v4944_v57 = vld [vmem:[%s4874_s12 + $0x24] sm:$0xf] }
  0x1a   : > { %v530_v36 = vrot.slane %v528_v27, 5  ;;  %v536_v37 = vrot.slane %v534_v28, 5  ;;  %v4927_v38 = vcombine.low %v4899_v16, %v4902_v18  ;;  %v540_v42 = vrot.slane %v538_v31, 4  ;;  %v4949_v62 = vld [vmem:[%s4874_s12 + $0x28] sm:$0xf]  ;;  %s3955_s10 = sadd.s32 204, %s4868_s9 }
  0x1b   : > { %v508_v40 = vrot.slane %v507_v29, 4  ;;  %v518_v41 = vrot.slane %v517_v30, 4  ;;  %v546_v43 = vrot.slane %v544_v32, 5  ;;  %v1471_v45 = vrot.slane %v4905_v19, 5  ;;  %v4957_v4 = vld [vmem:[%s4874_s12 + $0x2c] sm:$0x1]  ;;  %s5645_s13 = scalar_lea.vmem %s6000_s2, %s3955_s10 }
  0x1c   : > { %v531_v44 = vor.u32 %v530_v36, %v527_v35  ;;  %v549_v47 = vshrl.u32 %v4917_v33, 16  ;;  %v552_v48 = vshll.u32 %v4917_v33, 16  ;;  %v541_v51 = vor.u32 %v540_v42, %v536_v37  ;;  %v4963_v14 = vld [vmem:[%s4874_s12 + $0x30] sm:$0xf]  ;;  %v4975_v28 = vld [vmem:[%s4874_s12 + $0x34] sm:$0xf] }
  0x1d   : > { %v513_v49 = vsel %vm4921_vm4, %v508_v40, %v512_v23  ;;  %v523_v50 = vsel %vm4921_vm4, %v518_v41, %v522_v25  ;;  %v558_v52 = vshll.u32 %v4930_v39, 16  ;;  %v562_v60 = vshrl.u32 %v4930_v39, 16  ;;  %v4970_v23 = vld [vmem:[%s6001_s3 + $0x8] sm:$0xf]  ;;  %v4982_v32 = vld [vmem:[%s4874_s12 + $0x38] sm:$0x1] }
  0x1e   : > { %v3695_v53 = vcombine.low %v513_v49, %v523_v50  ;;  %v532_v54 = vrot.slane %v531_v44, 4  ;;  %v551_v55 = vrot.slane %v549_v47, 4  ;;  %v554_v56 = vrot.slane %v552_v48, 5  ;;  %v4990_v48 = vld [vmem:[%s4874_s12 + $0x3c] sm:$0xf] }
  0x1f   : > { %v542_v58 = vrot.slane %v541_v51, 4  ;;  %v560_v59 = vrot.slane %v558_v52, 5  ;;  %v568_v61 = vshll.u32 %v4934_v46, 16  ;;  %v1475_v1 = vrot.slane %v4930_v39, 5  ;;  %v4998_v52 = vld [vmem:[%s4874_s12 + $0x40] sm:$0xf] }
  0x20   : > { %4144 = vmatprep.mubr.msk.bf16.mxu1 %vm934_vm3, %v3695_v53  ;;  %v537_v63 = vsel %vm4921_vm4, %v532_v54, %v536_v37  ;;  %v555_v0 = vor.u32 %v554_v56, %v551_v55  ;;  %v1478_v2 = vrot.slane %v4934_v46, 5  ;;  %v564_v11 = vrot.slane %v562_v60, 4 }
  0x21   : > { %v547_v5 = vsel %vm4921_vm4, %v542_v58, %v546_v43  ;;  %v570_v12 = vrot.slane %v568_v61, 5  ;;  %v573_v13 = vshrl.u32 %v4944_v57, 16  ;;  %v576_v21 = vshll.u32 %v4944_v57, 16 }
  0x22   : > { %v3696_v15 = vcombine.low %v537_v63, %v547_v5  ;;  %v556_v17 = vrot.slane %v555_v0, 4  ;;  %v582_v22 = vshll.u32 %v4949_v62, 16  ;;  %v565_v24 = vor.u32 %v564_v11, %v560_v59  ;;  %v5010_v5 = vld [vmem:[%s4874_s12 + $0x44] sm:$0x1] }
  0x23   : > { %v575_v25 = vrot.slane %v573_v13, 4  ;;  %v586_v26 = vshrl.u32 %v4949_v62, 16  ;;  %v592_v27 = vshll.u32 %v4957_v4, 16  ;;  %v578_v30 = vrot.slane %v576_v21, 5  ;;  %v5015_v13 = vld [vmem:[%s4874_s12 + $0x48] sm:$0xf] }
  0x24   : > { %4280 = vmatprep.mubr.msk.bf16.mxu0 %vm934_vm3, %v3696_v15  ;;  %4145 = vmatmul.mubr.msk.bf16.vlgmr.msra.gmra.mrb[0].mxu1 %vm934_vm3, %v3696_v15  ;;  %v561_v29 = vsel %vm4921_vm4, %v556_v17, %v560_v59  ;;  %v584_v31 = vrot.slane %v582_v22, 5  ;;  %v597_v35 = vshrl.u32 %v4963_v14, 16  ;;  %v566_v36 = vrot.slane %v565_v24, 4  ;;  %v5022_v24 = vld [vmem:[%s4874_s12 + $0x4c] sm:$0xf] }
  0x25   : > { %4177 = vmatpush3.bf16.msra.mxu1 %v4877_v6  ;;  %v588_v37 = vrot.slane %v586_v26, 4  ;;  %v594_v40 = vrot.slane %v592_v27, 5  ;;  %v600_v41 = vshll.u32 %v4963_v14, 16  ;;  %v579_v42 = vor.u32 %v578_v30, %v575_v25 }
  0x26   : > { %v599_v43 = vrot.slane %v597_v35, 4  ;;  %v606_v44 = vshll.u32 %v4975_v28, 16  ;;  %v610_v47 = vshrl.u32 %v4975_v28, 16  ;;  %4708 = vmatprep.subr.msk.bf16.mxu1 %vm983_vm0, %v4970_v23  ;;  %v571_v49 = vsel %vm4921_vm4, %v566_v36, %v570_v12 }
  0x27   : > { %v589_v6 = vor.u32 %v588_v37, %v584_v31  ;;  %v602_v50 = vrot.slane %v600_v41, 5  ;;  %v616_v51 = vshll.u32 %v4982_v32, 16  ;;  %v5000_v53 = vcombine.low %v561_v29, %v571_v49 }
  0x28   : > { %v580_v54 = vrot.slane %v579_v42, 4  ;;  %v608_v55 = vrot.slane %v606_v44, 5  ;;  %v612_v56 = vrot.slane %v610_v47, 4  ;;  %v621_v61 = vshrl.u32 %v4990_v48, 16  ;;  %v5044_v42 = vld [vmem:[%s4874_s12 + $0x54] sm:$0xf] }
  0x29   : > { %6039 = vst [vmem:[#allocation3_spill] sm:$0xff] %v5000_v53  ;;  %v590_v58 = vrot.slane %v589_v6, 4  ;;  %v603_v59 = vor.u32 %v602_v50, %v599_v43  ;;  %v618_v60 = vrot.slane %v616_v51, 5  ;;  %4281 = vmatmul.mubr.msk.bf16.vlgmr.msra.gmra.mrb[0].mxu0 %vm934_vm3, %v5000_v53  ;;  %4148 = vmatprep.mubr.msk.bf16.mxu1 %vm934_vm3, %v5000_v53  ;;  %v624_v11 = vshll.u32 %v4990_v48, 16  ;;  %6041 = vst [vmem:[#allocation5_spill] sm:$0xff] %v5044_v42 }
  0x2a   : > { %v585_v63 = vsel %vm4921_vm4, %v580_v54, %v584_v31  ;;  %v613_v0 = vor.u32 %v612_v56, %v608_v55  ;;  %v630_v12 = vshll.u32 %v4998_v52, 16  ;;  %4313 = vmatpush3.bf16.msra.mxu0 %v4880_v7  ;;  %v623_v21 = vrot.slane %v621_v61, 4  ;;  %v5049_v6 = vld [vmem:[%s4874_s12 + $0x58] sm:$0xf] }
  0x2b   : > { %v595_v15 = vsel %vm4921_vm4, %v590_v58, %v594_v40  ;;  %v604_v17 = vrot.slane %v603_v59, 4  ;;  %v634_v22 = vshrl.u32 %v4998_v52, 16  ;;  %v626_v27 = vrot.slane %v624_v11, 5  ;;  %4713 = vmatprep.subr.msk.bf16.mxu0 %vm983_vm0, %v4885_v8  ;;  %v5039_v8 = vld [vmem:[%s4874_s12 + $0x50] sm:$0x1] }
  0x2c   : > { %v5024_v25 = vcombine.low %v585_v63, %v595_v15  ;;  %v614_v26 = vrot.slane %v613_v0, 4  ;;  %v632_v29 = vrot.slane %v630_v12, 5  ;;  %v640_v31 = vshll.u32 %v5010_v5, 16  ;;  %v5062_v11 = vld [vmem:[%s4874_s12 + $0x5c] sm:$0x1] }
  0x2d   : > { %v609_v7 = vsel %vm4921_vm4, %v604_v17, %v608_v55  ;;  %v636_v30 = vrot.slane %v634_v22, 4  ;;  %v645_v35 = vshrl.u32 %v5015_v13, 16  ;;  %v627_v37 = vor.u32 %v626_v27, %v623_v21  ;;  %v5066_v15 = vld [vmem:[%s4874_s12 + $0x60] sm:$0xf]  ;;  %v5071_v27 = vld [vmem:[%s4874_s12 + $0x64] sm:$0xf] }
  0x2e   : > { %6040 = vst [vmem:[#allocation4_spill] sm:$0xff] %v5024_v25  ;;  %4284 = vmatprep.mubr.msk.bf16.mxu0 %vm934_vm3, %v5024_v25  ;;  %4149 = vmatmul.mubr.msk.bf16.gmra.mrb[4].mxu1 %vm934_vm3, %v5024_v25  ;;  %v619_v36 = vsel %vm4921_vm4, %v614_v26, %v618_v60  ;;  %v648_v40 = vshll.u32 %v5015_v13, 16  ;;  %v654_v41 = vshll.u32 %v5022_v24, 16  ;;  %v642_v47 = vrot.slane %v640_v31, 5  ;;  %v5283_v25 = vld [vmem:[%s4874_s12 + $0xa8] sm:$0xf] }
  0x2f   : > { %v5046_v43 = vcombine.low %v609_v7, %v619_v36  ;;  %v637_v44 = vor.u32 %v636_v30, %v632_v29  ;;  %v647_v49 = vrot.slane %v645_v35, 4  ;;  %v628_v50 = vrot.slane %v627_v37, 4 }
  0x30   : > { %v650_v51 = vrot.slane %v648_v40, 5  ;;  %v656_v54 = vrot.slane %v654_v41, 5  ;;  %v658_v55 = vshrl.u32 %v5022_v24, 16  ;;  %v664_v58 = vshll.u32 %v5039_v8, 16 }
  0x31   : > { %6042 = vst [vmem:[#allocation6_spill] sm:$0xff] %v5046_v43  ;;  %4152 = vmatprep.mubr.msk.bf16.mxu1 %vm934_vm3, %v5046_v43  ;;  %v638_v56 = vrot.slane %v637_v44, 4  ;;  %v669_v59 = vshrl.u32 %v5044_v42, 16  ;;  %v672_v60 = vshll.u32 %v5044_v42, 16  ;;  %4285 = vmatmul.mubr.msk.bf16.gmra.mrb[4].mxu0 %vm934_vm3, %v5046_v43  ;;  %v633_v61 = vsel %vm4921_vm4, %v628_v50, %v632_v29 }
  0x32   : > { %v651_v63 = vor.u32 %v650_v51, %v647_v49  ;;  %v660_v0 = vrot.slane %v658_v55, 4  ;;  %v678_v12 = vshll.u32 %v5049_v6, 16  ;;  %v666_v21 = vrot.slane %v664_v58, 5 }
  0x33   : > { %v643_v17 = vsel %vm4921_vm4, %v638_v56, %v642_v47  ;;  %v671_v22 = vrot.slane %v669_v59, 4  ;;  %v674_v26 = vrot.slane %v672_v60, 5  ;;  %v682_v36 = vshrl.u32 %v5049_v6, 16  ;;  %v5085_v47 = vld [vmem:[%s4874_s12 + $0x68] sm:$0x1] }
  0x34   : > { %v5073_v7 = vcombine.low %v633_v61, %v643_v17  ;;  %v652_v29 = vrot.slane %v651_v63, 4  ;;  %v661_v30 = vor.u32 %v660_v0, %v656_v54  ;;  %v680_v31 = vrot.slane %v678_v12, 5 }
  0x35   : > { %v675_v35 = vor.u32 %v674_v26, %v671_v22  ;;  %v688_v37 = vshll.u32 %v5062_v11, 16  ;;  %v693_v40 = vshrl.u32 %v5066_v15, 16  ;;  %v696_v49 = vshll.u32 %v5066_v15, 16 }
  0x36   : > { %6043 = vst [vmem:[#allocation7_spill] sm:$0xff] %v5073_v7  ;;  %4288 = vmatprep.mubr.msk.bf16.mxu0 %vm934_vm3, %v5073_v7  ;;  %4153 = vmatmul.mubr.msk.bf16.gmra.mrb[8].mxu1 %vm934_vm3, %v5073_v7  ;;  %v657_v41 = vsel %vm4921_vm4, %v652_v29, %v656_v54  ;;  %v662_v44 = vrot.slane %v661_v30, 4  ;;  %v702_v50 = vshll.u32 %v5071_v27, 16  ;;  %v684_v55 = vrot.slane %v682_v36, 4  ;;  %v5093_v54 = vld [vmem:[%s4874_s12 + $0x6c] sm:$0xf] }
  0x37   : > { %v676_v51 = vrot.slane %v675_v35, 4  ;;  %v690_v56 = vrot.slane %v688_v37, 5  ;;  %v695_v58 = vrot.slane %v693_v40, 4  ;;  %v698_v60 = vrot.slane %v696_v49, 5  ;;  %v5109_v36 = vld [vmem:[%s4874_s12 + $0x70] sm:$0xf] }
  0x38   : > { %v667_v59 = vsel %vm4921_vm4, %v662_v44, %v666_v21  ;;  %v704_v61 = vrot.slane %v702_v50, 5  ;;  %v706_v63 = vshrl.u32 %v5071_v27, 16  ;;  %v685_v17 = vor.u32 %v684_v55, %v680_v31  ;;  %v5260_v7 = vld [vmem:[%s4874_s12 + $0xa0] sm:$0xf] }
  0x39   : > { %v5095_v0 = vcombine.low %v657_v41, %v667_v59  ;;  %v681_v12 = vsel %vm4921_vm4, %v676_v51, %v680_v31  ;;  %v712_v22 = vshll.u32 %v5085_v47, 16  ;;  %v699_v21 = vor.u32 %v698_v60, %v695_v58  ;;  %v5122_v51 = vld [vmem:[%s4874_s12 + $0x74] sm:$0x1] }
  0x3a   : > { %v708_v29 = vrot.slane %v706_v63, 4  ;;  %v3760_v30 = vrot.slane %v4899_v16, 9  ;;  %v1468_v35 = vrot.slane %v4902_v18, 5  ;;  %v686_v31 = vrot.slane %v685_v17, 4 }
  0x3b   : > { %6044 = vst [vmem:[#allocation8_spill] sm:$0xff] %v5095_v0  ;;  %4289 = vmatmul.mubr.msk.bf16.gmra.mrb[8].mxu0 %vm934_vm3, %v5095_v0  ;;  %4156 = vmatprep.mubr.msk.bf16.mxu1 %vm934_vm3, %v5095_v0  ;;  %v714_v37 = vrot.slane %v712_v22, 5  ;;  %v717_v40 = vshrl.u32 %v5093_v54, 16  ;;  %v720_v41 = vshll.u32 %v5093_v54, 16  ;;  %v700_v44 = vrot.slane %v699_v21, 4 }
  0x3c   : > { %v709_v49 = vor.u32 %v708_v29, %v704_v61  ;;  %v1469_v16 = vsel %vm5102_vm7, %v3760_v30, %v1468_v35  ;;  %v1470_v18 = vrot.slane %v1468_v35, 4  ;;  %v691_v50 = vsel %vm4921_vm4, %v686_v31, %v690_v56  ;;  %v5134_v56 = vld [vmem:[%s4874_s12 + $0x78] sm:$0xf]  ;;  %v5150_v31 = vld [vmem:[%s4874_s12 + $0x7c] sm:$0xf] }
  0x3d   : > { %v719_v55 = vrot.slane %v717_v40, 4  ;;  %v722_v58 = vrot.slane %v720_v41, 5  ;;  %v726_v59 = vshll.u32 %v5109_v36, 16  ;;  %v5125_v60 = vcombine.low %v681_v12, %v691_v50 }
  0x3e   : > { %v705_v63 = vsel %vm4921_vm4, %v700_v44, %v704_v61  ;;  %v710_v17 = vrot.slane %v709_v49, 4  ;;  %v1472_v22 = vsel %vm5102_vm7, %v1470_v18, %v1471_v45  ;;  %v730_v35 = vshrl.u32 %v5109_v36, 16  ;;  %v5155_v49 = vld [vmem:[%s4874_s12 + $0x80] sm:$0x1] }
  0x3f   : > { %6047 = vst [vmem:[#allocation9_spill] sm:$0xff] %v5125_v60  ;;  %v5136_v21 = vcombine.low %v1469_v16, %v1472_v22  ;;  %v723_v29 = vor.u32 %v722_v58, %v719_v55  ;;  %v728_v30 = vrot.slane %v726_v59, 5  ;;  %4292 = vmatprep.mubr.msk.bf16.mxu0 %vm934_vm3, %v5125_v60  ;;  %4157 = vmatmul.mubr.msk.bf16.gmra.mrb[12].mxu1 %vm934_vm3, %v5125_v60  ;;  %v736_v45 = vshll.u32 %v5122_v51, 16  ;;  %v5253_v60 = vld [vmem:[%s4874_s12 + $0x9c] sm:$0xf] }
  0x40   : > { %v715_v19 = vsel %vm4921_vm4, %v710_v17, %v714_v37  ;;  %v3761_v61 = vrot.slane %v4917_v33, 9  ;;  %v1477_v12 = vrot.slane %v1475_v1, 4  ;;  %v732_v44 = vrot.slane %v730_v35, 4 }
  0x41   : > { %6048 = vst [vmem:[#allocation10_spill] sm:$0xff] %v5136_v21  ;;  %v5152_v40 = vcombine.low %v705_v63, %v715_v19  ;;  %v724_v41 = vrot.slane %v723_v29, 4  ;;  %v741_v16 = vshrl.u32 %v5134_v56, 16  ;;  %v738_v18 = vrot.slane %v736_v45, 5  ;;  %v5181_v29 = vld [vmem:[%s4874_s12 + $0x84] sm:$0xf] }
  0x42   : > { %v1476_v37 = vsel %vm5102_vm7, %v3761_v61, %v1475_v1  ;;  %v1479_v50 = vsel %vm5102_vm7, %v1477_v12, %v1478_v2  ;;  %v744_v55 = vshll.u32 %v5134_v56, 16  ;;  %v733_v59 = vor.u32 %v732_v44, %v728_v30 }
  0x43   : > { %6049 = vst [vmem:[#allocation11_spill] sm:$0xff] %v5152_v40  ;;  %4293 = vmatmul.mubr.msk.bf16.gmra.mrb[12].mxu0 %vm934_vm3, %v5152_v40  ;;  %4160 = vmatprep.mubr.msk.bf16.mxu1 %vm934_vm3, %v5152_v40  ;;  %v729_v58 = vsel %vm4921_vm4, %v724_v41, %v728_v30  ;;  %v5173_v63 = vcombine.low %v1476_v37, %v1479_v50  ;;  %v743_v1 = vrot.slane %v741_v16, 4  ;;  %v750_v2 = vshll.u32 %v5150_v31, 16  ;;  %v5187_v16 = vld [vmem:[%s4874_s12 + $0x88] sm:$0xf] }
  0x44   : > { %4314 = vmatprep.mubr.msk.bf16.mxu0 %vm934_vm3, %v5136_v21  ;;  %v746_v46 = vrot.slane %v744_v55, 5  ;;  %v754_v17 = vshrl.u32 %v5150_v31, 16  ;;  %v760_v22 = vshll.u32 %v5155_v49, 16  ;;  %v734_v35 = vrot.slane %v733_v59, 4 }
  0x45   : > { %6050 = vst [vmem:[#allocation12_spill] sm:$0xff] %v5173_v63  ;;  %v3762_v30 = vrot.slane %v4944_v57, 9  ;;  %v1482_v19 = vrot.slane %v4949_v62, 5  ;;  %v1485_v45 = vrot.slane %v4957_v4, 5  ;;  %v752_v12 = vrot.slane %v750_v2, 5 }
  0x46   : > { %v747_v61 = vor.u32 %v746_v46, %v743_v1  ;;  %v756_v41 = vrot.slane %v754_v17, 4  ;;  %v762_v44 = vrot.slane %v760_v22, 5  ;;  %v739_v37 = vsel %vm4921_vm4, %v734_v35, %v738_v18  ;;  %v5197_v1 = vld [vmem:[%s4874_s12 + $0x8c] sm:$0x1] }
  0x47   : > { %v1483_v50 = vsel %vm5102_vm7, %v3762_v30, %v1482_v19  ;;  %v1484_v55 = vrot.slane %v1482_v19, 4  ;;  %v765_v59 = vshrl.u32 %v5181_v29, 16  ;;  %v5194_v3 = vcombine.low %v729_v58, %v739_v37 }
  0x48   : > { %v748_v40 = vrot.slane %v747_v61, 4  ;;  %v757_v4 = vor.u32 %v756_v41, %v752_v12  ;;  %v768_v46 = vshll.u32 %v5181_v29, 16  ;;  %v774_v18 = vshll.u32 %v5187_v16, 16  ;;  %v5211_v61 = vld [vmem:[%s4874_s12 + $0x90] sm:$0xf] }
  0x49   : > { %6051 = vst [vmem:[#allocation13_spill] sm:$0xff] %v5194_v3  ;;  %v1486_v2 = vsel %vm5102_vm7, %v1484_v55, %v1485_v45  ;;  %v767_v17 = vrot.slane %v765_v59, 4  ;;  %v778_v22 = vshrl.u32 %v5187_v16, 16  ;;  %4161 = vmatmul.mubr.msk.bf16.gmra.mrb[16].mxu1 %vm934_vm3, %v5194_v3  ;;  %v5216_v45 = vld [vmem:[%s6001_s3 + $0x1c] sm:$0xf]  ;;  %v1489_v59 = vrot.slane %v4975_v28, 5 }
  0x4a   : > { %v753_v58 = vsel %vm4921_vm4, %v748_v40, %v752_v12  ;;  %v758_v35 = vrot.slane %v757_v4, 4  ;;  %v5208_v30 = vcombine.low %v1483_v50, %v1486_v2  ;;  %v770_v19 = vrot.slane %v768_v46, 5  ;;  %6053 = vst [vmem:[#allocation15_spill] sm:$0xff] %v5216_v45  ;;  %v5230_v46 = vld [vmem:[%s4874_s12 + $0x94] sm:$0xf] }
  0x4b   : > { %4315 = vmatmul.mubr.msk.bf16.vlgmr.msra.gmra.mrb[0].mxu0 %vm934_vm3, %v5173_v63  ;;  %v776_v41 = vrot.slane %v774_v18, 5  ;;  %v780_v37 = vrot.slane %v778_v22, 4  ;;  %v784_v40 = vshll.u32 %v5197_v1, 16  ;;  %v3763_v12 = vrot.slane %v4963_v14, 9  ;;  %v5235_v3 = vld [vmem:[%s4874_s12 + $0x98] sm:$0x1] }
  0x4c   : > { %6052 = vst [vmem:[#allocation14_spill] sm:$0xff] %v5208_v30  ;;  %4347 = vmatpush3.bf16.msra.mxu0 %v4909_v20  ;;  %v763_v50 = vsel %vm4921_vm4, %v758_v35, %v762_v44  ;;  %4318 = vmatprep.mubr.msk.bf16.mxu0 %vm934_vm3, %v5208_v30  ;;  %v771_v55 = vor.u32 %v770_v19, %v767_v17  ;;  %v1492_v4 = vrot.slane %v4982_v32, 5  ;;  %v789_v20 = vshrl.u32 %v5211_v61, 16 }
  0x4d   : > { %v5232_v2 = vcombine.low %v753_v58, %v763_v50  ;;  %v781_v18 = vor.u32 %v780_v37, %v776_v41  ;;  %v786_v22 = vrot.slane %v784_v40, 5  ;;  %4714 = vmatprep.subr.msk.bf16.mxu0 %vm983_vm0, %v5216_v45  ;;  %v1490_v17 = vsel %vm5102_vm7, %v3763_v12, %v1489_v59 }
  0x4e   : > { %v772_v44 = vrot.slane %v771_v55, 4  ;;  %v1491_v35 = vrot.slane %v1489_v59, 4  ;;  %v792_v32 = vshll.u32 %v5211_v61, 16  ;;  %v791_v19 = vrot.slane %v789_v20, 4 }
  0x4f   : > { %6054 = vst [vmem:[#allocation16_spill] sm:$0xff] %v5232_v2  ;;  %4164 = vmatprep.mubr.msk.bf16.mxu1 %vm934_vm3, %v5232_v2  ;;  %v782_v58 = vrot.slane %v781_v18, 4  ;;  %v798_v37 = vshll.u32 %v5230_v46, 16  ;;  %v802_v40 = vshrl.u32 %v5230_v46, 16  ;;  %v808_v59 = vshll.u32 %v5235_v3, 16 }
  0x50   : > { %v777_v50 = vsel %vm4921_vm4, %v772_v44, %v776_v41  ;;  %v1493_v55 = vsel %vm5102_vm7, %v1491_v35, %v1492_v4  ;;  %v794_v12 = vrot.slane %v792_v32, 5  ;;  %v3764_v4 = vrot.slane %v4990_v48, 9 }
  0x51   : > { %v787_v2 = vsel %vm4921_vm4, %v782_v58, %v786_v22  ;;  %v5257_v18 = vcombine.low %v1490_v17, %v1493_v55  ;;  %v800_v20 = vrot.slane %v798_v37, 5  ;;  %v804_v0 = vrot.slane %v802_v40, 4  ;;  %v5273_v58 = vld [vmem:[%s4874_s12 + $0xa4] sm:$0x1] }
  0x52   : > { %v5262_v43 = vcombine.low %v777_v50, %v787_v2  ;;  %v795_v41 = vor.u32 %v794_v12, %v791_v19  ;;  %v810_v44 = vrot.slane %v808_v59, 5  ;;  %v1496_v32 = vrot.slane %v4998_v52, 5 }
  0x53   : > { %6055 = vst [vmem:[#allocation17_spill] sm:$0xff] %v5257_v18  ;;  %4319 = vmatmul.mubr.msk.bf16.gmra.mrb[4].mxu0 %vm934_vm3, %v5257_v18  ;;  %v805_v35 = vor.u32 %v804_v0, %v800_v20  ;;  %v1499_v22 = vrot.slane %v5010_v5, 5  ;;  %v813_v17 = vshrl.u32 %v5253_v60, 16  ;;  %v816_v19 = vshll.u32 %v5253_v60, 16 }
  0x54   : > { %6056 = vst [vmem:[#allocation18_spill] sm:$0xff] %v5262_v43  ;;  %4165 = vmatmul.mubr.msk.bf16.gmra.mrb[20].mxu1 %vm934_vm3, %v5262_v43  ;;  %v796_v2 = vrot.slane %v795_v41, 4  ;;  %v822_v37 = vshll.u32 %v5260_v7, 16  ;;  %v826_v0 = vshrl.u32 %v5260_v7, 16  ;;  %v1497_v5 = vsel %vm5102_vm7, %v3764_v4, %v1496_v32 }
  0x55   : > { %v806_v40 = vrot.slane %v805_v35, 4  ;;  %v1498_v50 = vrot.slane %v1496_v32, 4  ;;  %v815_v55 = vrot.slane %v813_v17, 4  ;;  %v818_v59 = vrot.slane %v816_v19, 5  ;;  %v5292_v32 = vld [vmem:[%s4874_s12 + $0xac] sm:$0xf] }
  0x56   : > { %v801_v12 = vsel %vm4921_vm4, %v796_v2, %v800_v20  ;;  %v824_v41 = vrot.slane %v822_v37, 5  ;;  %v828_v43 = vrot.slane %v826_v0, 4  ;;  %v832_v35 = vshll.u32 %v5273_v58, 16 }
  0x57   : > { %v811_v53 = vsel %vm4921_vm4, %v806_v40, %v810_v44  ;;  %v1500_v18 = vsel %vm5102_vm7, %v1498_v50, %v1499_v22  ;;  %v3765_v4 = vrot.slane %v5015_v13, 9  ;;  %v819_v2 = vor.u32 %v818_v59, %v815_v55 }
  0x58   : > { %v5294_v17 = vcombine.low %v801_v12, %v811_v53  ;;  %v5296_v20 = vcombine.low %v1497_v5, %v1500_v18  ;;  %v829_v19 = vor.u32 %v828_v43, %v824_v41  ;;  %v834_v37 = vrot.slane %v832_v35, 5  ;;  %v5306_v18 = vld [vmem:[%s4874_s12 + $0xb0] sm:$0x1] }
  0x59   : > { %v1503_v0 = vrot.slane %v5022_v24, 5  ;;  %v1506_v44 = vrot.slane %v5039_v8, 5  ;;  %v837_v22 = vshrl.u32 %v5283_v25, 16  ;;  %v820_v53 = vrot.slane %v819_v2, 4 }
  0x5a   : > { %6057 = vst [vmem:[#allocation19_spill] sm:$0xff] %v5294_v17  ;;  %6058 = vst [vmem:[#allocation20_spill] sm:$0xff] %v5296_v20  ;;  %4168 = vmatprep.mubr.msk.bf16.mxu1 %vm934_vm3, %v5294_v17  ;;  %4322 = vmatprep.mubr.msk.bf16.mxu0 %vm934_vm3, %v5296_v20  ;;  %v830_v40 = vrot.slane %v829_v19, 4  ;;  %v840_v43 = vshll.u32 %v5283_v25, 16  ;;  %v846_v5 = vshll.u32 %v5292_v32, 16  ;;  %v850_v12 = vshrl.u32 %v5292_v32, 16 }
  0x5b   : > { %v1504_v8 = vsel %vm5102_vm7, %v3765_v4, %v1503_v0  ;;  %v1505_v50 = vrot.slane %v1503_v0, 4  ;;  %v839_v55 = vrot.slane %v837_v22, 4  ;;  %v825_v59 = vsel %vm4921_vm4, %v820_v53, %v824_v41  ;;  %v5318_v17 = vld [vmem:[%s4874_s12 + $0xb4] sm:$0xf]  ;;  %v5330_v53 = vld [vmem:[%s4874_s12 + $0xb8] sm:$0xf] }
  0x5c   : > { %v835_v35 = vsel %vm4921_vm4, %v830_v40, %v834_v37  ;;  %v842_v2 = vrot.slane %v840_v43, 5  ;;  %v848_v19 = vrot.slane %v846_v5, 5  ;;  %v852_v0 = vrot.slane %v850_v12, 4 }
  0x5d   : > { %v5320_v20 = vcombine.low %v825_v59, %v835_v35  ;;  %v1507_v4 = vsel %vm5102_vm7, %v1505_v50, %v1506_v44  ;;  %v856_v22 = vshll.u32 %v5306_v18, 16  ;;  %v3766_v41 = vrot.slane %v5044_v42, 9  ;;  %v5336_v44 = vld [vmem:[%s4874_s12 + $0xbc] sm:$0x1] }
  0x5e   : > { %v5325_v30 = vcombine.low %v1504_v8, %v1507_v4  ;;  %v843_v63 = vor.u32 %v842_v2, %v839_v55  ;;  %v1510_v37 = vrot.slane %v5049_v6, 5  ;;  %v853_v40 = vor.u32 %v852_v0, %v848_v19 }
  0x5f   : > { %6059 = vst [vmem:[#allocation21_spill] sm:$0xff] %v5320_v20  ;;  %4169 = vmatmul.mubr.msk.bf16.gmra.mrb[24].mxu1 %vm934_vm3, %v5320_v20  ;;  %v858_v43 = vrot.slane %v856_v22, 5  ;;  %v1513_v5 = vrot.slane %v5062_v11, 5  ;;  %v861_v50 = vshrl.u32 %v5318_v17, 16  ;;  %v864_v59 = vshll.u32 %v5318_v17, 16 }
  0x60   : > { %6060 = vst [vmem:[#allocation22_spill] sm:$0xff] %v5325_v30  ;;  %4323 = vmatmul.mubr.msk.bf16.gmra.mrb[8].mxu0 %vm934_vm3, %v5325_v30  ;;  %v844_v8 = vrot.slane %v843_v63, 4  ;;  %v1511_v55 = vsel %vm5102_vm7, %v3766_v41, %v1510_v37  ;;  %v1512_v12 = vrot.slane %v1510_v37, 4  ;;  %v854_v35 = vrot.slane %v853_v40, 4 }
  0x61   : > { %v863_v2 = vrot.slane %v861_v50, 4  ;;  %v870_v4 = vshll.u32 %v5330_v53, 16  ;;  %v874_v11 = vshrl.u32 %v5330_v53, 16  ;;  %v866_v20 = vrot.slane %v864_v59, 5 }
  0x62   : > { %v849_v0 = vsel %vm4921_vm4, %v844_v8, %v848_v19  ;;  %v1514_v22 = vsel %vm5102_vm7, %v1512_v12, %v1513_v5  ;;  %v880_v63 = vshll.u32 %v5336_v44, 16  ;;  %v859_v41 = vsel %vm4921_vm4, %v854_v35, %v858_v43 }
  0x63   : > { %v5353_v37 = vcombine.low %v1511_v55, %v1514_v22  ;;  %v872_v40 = vrot.slane %v870_v4, 5  ;;  %v876_v50 = vrot.slane %v874_v11, 4  ;;  %v5355_v30 = vcombine.low %v849_v0, %v859_v41 }
  0x64   : > { %v867_v21 = vor.u32 %v866_v20, %v863_v2  ;;  %v882_v45 = vrot.slane %v880_v63, 5  ;;  %v3767_v42 = vrot.slane %v5066_v15, 9  ;;  %v1517_v5 = vrot.slane %v5071_v27, 5 }
  0x65   : > { %4326 = vmatprep.mubr.msk.bf16.mxu0 %vm934_vm3, %v5353_v37  ;;  %v877_v19 = vor.u32 %v876_v50, %v872_v40  ;;  %v1520_v8 = vrot.slane %v5085_v47, 5  ;;  %v3768_v43 = vrot.slane %v5093_v54, 9  ;;  %4172 = vmatprep.mubr.msk.bf16.mxu1 %vm934_vm3, %v5355_v30  ;;  %v3727_v20 = vcombine.low %v4888_v9, %v4891_v10 }
  0x66   : > { %v868_v55 = vrot.slane %v867_v21, 4  ;;  %v1524_v12 = vrot.slane %v5109_v36, 5  ;;  %v1527_v59 = vrot.slane %v5122_v51, 5  ;;  %v1518_v2 = vsel %vm5102_vm7, %v3767_v42, %v1517_v5 }
  0x67   : > { %v878_v35 = vrot.slane %v877_v19, 4  ;;  %v1519_v4 = vrot.slane %v1517_v5, 4  ;;  %v1531_v47 = vrot.slane %v5150_v31, 5  ;;  %v3769_v9 = vrot.slane %v5134_v56, 9 }
  0x68   : > { %v873_v11 = vsel %vm4921_vm4, %v868_v55, %v872_v40  ;;  %v1525_v21 = vsel %vm5102_vm7, %v3768_v43, %v1524_v12  ;;  %v1526_v0 = vrot.slane %v1524_v12, 4  ;;  %v1534_v42 = vrot.slane %v5155_v49, 5 }
  0x69   : > { %v883_v10 = vsel %vm4921_vm4, %v878_v35, %v882_v45  ;;  %v1521_v51 = vsel %vm5102_vm7, %v1519_v4, %v1520_v8  ;;  %v1533_v22 = vrot.slane %v1531_v47, 4  ;;  %v3770_v19 = vrot.slane %v5181_v29, 9 }
  0x6a   : > { %v5382_v63 = vcombine.low %v873_v11, %v883_v10  ;;  %v5384_v41 = vcombine.low %v1518_v2, %v1521_v51  ;;  %v1528_v40 = vsel %vm5102_vm7, %v1526_v0, %v1527_v59  ;;  %v1538_v5 = vrot.slane %v5187_v16, 5 }
  0x6b   : > { %v5388_v50 = vcombine.low %v1525_v21, %v1528_v40  ;;  %v1541_v49 = vrot.slane %v5197_v1, 5  ;;  %v1532_v45 = vsel %vm5102_vm7, %v3769_v9, %v1531_v47  ;;  %v1535_v8 = vsel %vm5102_vm7, %v1533_v22, %v1534_v42 }
  0x6c   : > { %4173 = vmatmul.mubr.msk.bf16.gmra.mrb[28].mxu1 %vm934_vm3, %v5382_v63  ;;  %4327 = vmatmul.mubr.msk.bf16.gmra.mrb[12].mxu0 %vm934_vm3, %v5384_v41  ;;  %v1540_v43 = vrot.slane %v1538_v5, 4  ;;  %v1545_v55 = vrot.slane %v5230_v46, 5  ;;  %v1552_v12 = vrot.slane %v5260_v7, 5  ;;  %v1539_v59 = vsel %vm5102_vm7, %v3770_v19, %v1538_v5 }
  0x6d   : > { %4178 = vmatprep.mubr.msk.bf16.mxu1 %vm934_vm3, %v3727_v20  ;;  %4330 = vmatprep.mubr.msk.bf16.mxu0 %vm934_vm3, %v5388_v50  ;;  %v5410_v20 = vcombine.low %v1532_v45, %v1535_v8  ;;  %v3771_v35 = vrot.slane %v5211_v61, 9  ;;  %v1548_v4 = vrot.slane %v5235_v3, 5  ;;  %v5416_v47 = vcombine.low %v4917_v33, %v4930_v39  ;;  %v5428_v3 = vld [vmem:[%s6001_s3 + $0xc] sm:$0xf] }
  0x6e   : > { %v1542_v1 = vsel %vm5102_vm7, %v1540_v43, %v1541_v49  ;;  %v1547_v2 = vrot.slane %v1545_v55, 4  ;;  %v3772_v11 = vrot.slane %v5253_v60, 9  ;;  %v1670_v21 = vsel %vm983_vm0, %v4970_v23, 0 }
  0x6f   : > { %v5421_v0 = vcombine.low %v1539_v59, %v1542_v1  ;;  %v1554_v9 = vrot.slane %v1552_v12, 4  ;;  %v1555_v10 = vrot.slane %v5273_v58, 5  ;;  %v1559_v51 = vrot.slane %v5292_v32, 5 }
  0x70   : > { %v1546_v33 = vsel %vm5102_vm7, %v3771_v35, %v1545_v55  ;;  %v1549_v39 = vsel %vm5102_vm7, %v1547_v2, %v1548_v4  ;;  %v5443_v23 = vcombine.low %v4944_v57, %v4949_v62  ;;  %v1553_v58 = vsel %vm5102_vm7, %v3772_v11, %v1552_v12 }
  0x71   : > { %v5449_v22 = vcombine.low %v5066_v15, %v5071_v27  ;;  %v1556_v42 = vsel %vm5102_vm7, %v1554_v9, %v1555_v10  ;;  %v3773_v40 = vrot.slane %v5283_v25, 9  ;;  %v1566_v19 = vrot.slane %v5330_v53, 5 }
  0x72   : > { %v5459_v57 = vcombine.low %v5093_v54, %v5109_v36  ;;  %v5463_v62 = vcombine.low %v1546_v33, %v1549_v39  ;;  %v1561_v15 = vrot.slane %v1559_v51, 4  ;;  %v1562_v27 = vrot.slane %v5306_v18, 5 }
  0x73   : > { %v5471_v5 = vcombine.low %v5134_v56, %v5150_v31  ;;  %v5475_v54 = vcombine.low %v5181_v29, %v5187_v16  ;;  %v5479_v36 = vcombine.low %v5211_v61, %v5230_v46  ;;  %v5483_v49 = vcombine.low %v5253_v60, %v5260_v7  ;;  %v5501_v60 = vld [vmem:[%s401_s28 + $0x4] sm:$0xf] }
  0x74   : > { %4179 = vmatmul.mubr.msk.bf16.vlgmr.msra.gmra.mrb[0].mxu1 %vm934_vm3, %v4927_v38  ;;  %4331 = vmatmul.mubr.msk.bf16.gmra.mrb[16].mxu0 %vm934_vm3, %v5410_v20  ;;  %v5487_v18 = vcombine.low %v5283_v25, %v5292_v32  ;;  %v5491_v56 = vcombine.low %v4963_v14, %v4975_v28  ;;  %v5493_v31 = vcombine.low %v1553_v58, %v1556_v42  ;;  %v3774_v16 = vrot.slane %v5318_v17, 9  ;;  %v6061_v42 = vld [vmem:[#allocation5_spill] sm:$0xff] }
  0x75   : > { %4211 = vmatpush3.bf16.msra.mxu1 %v1670_v21  ;;  %4182 = vmatprep.mubr.msk.bf16.mxu1 %vm934_vm3, %v5416_v47  ;;  %v5497_v29 = vcombine.low %v5318_v17, %v5330_v53  ;;  %v1568_v61 = vrot.slane %v1566_v19, 4  ;;  %v1569_v7 = vrot.slane %v5336_v44, 5  ;;  %v1560_v14 = vsel %vm5102_vm7, %v3773_v40, %v1559_v51  ;;  %v5520_v17 = vld [vmem:[%s401_s28] sm:$0xf]  ;;  %v492_v53 = vld [vmem:[%s401_s28 + $0x8] sm:$0x1] }
  0x76   : > { %4334 = vmatprep.mubr.msk.bf16.mxu0 %vm934_vm3, %v5421_v0  ;;  %4709 = vmatprep.subr.msk.bf16.mxu1 %vm983_vm0, %v5428_v3  ;;  %v1563_v28 = vsel %vm5102_vm7, %v1561_v15, %v1562_v27  ;;  %v2302_v25 = vrot.slane %v5501_v60, 5  ;;  %v1567_v46 = vsel %vm5102_vm7, %v3774_v16, %v1566_v19  ;;  %v5524_v44 = vcombine.low %v4990_v48, %v4998_v52 }
  0x77   : > { %v1570_v32 = vsel %vm5102_vm7, %v1568_v61, %v1569_v7  ;;  %v5526_v45 = vcombine.low %v1560_v14, %v1563_v28  ;;  %v5530_v8 = vcombine.low %v5015_v13, %v5022_v24  ;;  %v2072_v43 = vshrl.u32 %v5520_v17, 16  ;;  %v3900_v7 = vld [vmem:[%s6001_s3 + $0x20] sm:$0xf]  ;;  %v4762_v14 = vld [vmem:[%s4874_s12 + $0x4] sm:$0xf] }
  0x78   : > { %v2075_v55 = vshll.u32 %v5520_v17, 16  ;;  %v2081_v12 = vshll.u32 %v5501_v60, 16  ;;  %v2085_v59 = vshrl.u32 %v5501_v60, 16  ;;  %v5536_v1 = vcombine.low %v1567_v46, %v1570_v32  ;;  %v4764_v32 = vld [vmem:[%s4874_s12] sm:$0xf] }
  0x79   : > { %v3844_v35 = vrot.slane %v5520_v17, 9  ;;  %v2304_v48 = vrot.slane %v2302_v25, 4  ;;  %v2305_v52 = vrot.slane %v492_v53, 5  ;;  %v2074_v2 = vrot.slane %v2072_v43, 4 }
  0x7a   : > { %v2077_v4 = vrot.slane %v2075_v55, 5  ;;  %v2083_v11 = vrot.slane %v2081_v12, 5  ;;  %v2087_v21 = vrot.slane %v2085_v59, 4  ;;  %v2091_v9 = vshll.u32 %v492_v53, 16 }
  0x7b   : > { %v2303_v10 = vsel %vm5102_vm7, %v3844_v35, %v2302_v25  ;;  %v2306_v51 = vsel %vm5102_vm7, %v2304_v48, %v2305_v52  ;;  %v5553_v40 = vcombine.low %v6061_v42, %v5049_v6  ;;  %v6062_v6 = vld [vmem:[#allocation15_spill] sm:$0xff]  ;;  %v1461_v28 = vrot.slane %v4762_v14, 5  ;;  %v6063_v48 = vld [vmem:[#allocation10_spill] sm:$0xff]  ;;  %v6064_v52 = vld [vmem:[#allocation12_spill] sm:$0xff] }
  0x7c   : > { %4183 = vmatmul.mubr.msk.bf16.gmra.mrb[4].mxu1 %vm934_vm3, %v5443_v23  ;;  %4335 = vmatmul.mubr.msk.bf16.gmra.mrb[20].mxu0 %vm934_vm3, %v5463_v62  ;;  %v2078_v13 = vor.u32 %v2077_v4, %v2074_v2  ;;  %v2088_v24 = vor.u32 %v2087_v21, %v2083_v11  ;;  %v2093_v58 = vrot.slane %v2091_v9, 5  ;;  %v5555_v19 = vcombine.low %v2303_v10, %v2306_v51  ;;  %v4763_v25 = vld [vmem:[%s4874_s12 + $0x8] sm:$0x1]  ;;  %v4765_v2 = vld [vmem:[%s6001_s3 + $0x10] sm:$0xf]  ;;  %v6066_v4 = vld [vmem:[#allocation17_spill] sm:$0xff] }
  0x7d   : > { %4186 = vmatprep.mubr.msk.bf16.mxu1 %vm934_vm3, %v5491_v56  ;;  %4338 = vmatprep.mubr.msk.bf16.mxu0 %vm934_vm3, %v5493_v31  ;;  %v2750_v61 = vsel %vm983_vm0, %v6062_v6, 0  ;;  %v1464_v46 = vrot.slane %v4763_v25, 5  ;;  %v3759_v53 = vrot.slane %v4764_v32, 9  ;;  %v1463_v43 = vrot.slane %v1461_v28, 4  ;;  %v6067_v21 = vld [vmem:[#allocation20_spill] sm:$0xff]  ;;  %v6069_v9 = vld [vmem:[#allocation3_spill] sm:$0xff] }
  0x7e   : > { %v2079_v33 = vrot.slane %v2078_v13, 4  ;;  %v2089_v39 = vrot.slane %v2088_v24, 4  ;;  %v1876_v35 = vsel %vm983_vm0, %v5428_v3, 0  ;;  %v6065_v3 = vld [vmem:[#allocation14_spill] sm:$0xff]  ;;  %v2962_v10 = vsel %vm983_vm0, %v3900_v7, 0  ;;  %v6070_v51 = vld [vmem:[#allocation4_spill] sm:$0xff] }
  0x7f   : > { %v1462_v55 = vsel %vm5102_vm7, %v3759_v53, %v1461_v28  ;;  %v1465_v12 = vsel %vm5102_vm7, %v1463_v43, %v1464_v46  ;;  %v6068_v13 = vld [vmem:[#allocation22_spill] sm:$0xff]  ;;  %v6074_v42 = vld [vmem:[#allocation9_spill] sm:$0xff]  ;;  %v6077_v6 = vld [vmem:[#allocation16_spill] sm:$0xff]  ;;  %v4790_v26 = vmov 0.0  }
  0x80   : > { %v2084_v15 = vsel %vm4921_vm4, %v2079_v33, %v2083_v11  ;;  %v2094_v27 = vsel %vm4921_vm4, %v2089_v39, %v2093_v58  ;;  %v3776_v59 = vcombine.low %v1462_v55, %v1465_v12  ;;  %v5640_v11 = vcombine.low %v5520_v17, %v5501_v60  ;;  %v5656_v60 = vld [vmem:[%s5645_s13] sm:$0xf]  ;;  %v5659_v17 = vld [vmem:[%s5645_s13 + $0x4] sm:$0xf]  ;;  %v6072_v39 = vld [vmem:[#allocation7_spill] sm:$0xff] }
  0x81   : > { %v5561_v16 = vcombine.low %v2084_v15, %v2094_v27  ;;  %v3864_v24 = vcombine.low %v5656_v60, %v5659_v17  ;;  %v6071_v33 = vld [vmem:[#allocation6_spill] sm:$0xff]  ;;  %v6073_v58 = vld [vmem:[#allocation8_spill] sm:$0xff]  ;;  %v6075_v15 = vld [vmem:[#allocation11_spill] sm:$0xff]  ;;  %v2721_v14 = vshll.u32 %v5656_v60, 16  ;;  %v2731_v28 = vshrl.u32 %v5659_v17, 16 }
  0x82   : > { %v6076_v27 = vld [vmem:[#allocation13_spill] sm:$0xff]  ;;  %v6079_v25 = vld [vmem:[#allocation2_spill] sm:$0xff]  ;;  %v6080_v46 = vld [vmem:[#allocation19_spill] sm:$0xff]  ;;  %v2948_v34 = vrot.slane %v5659_v17, 5  ;;  %440 = vst.msk [vmem:[%s5813_s15] sm:$0x1] %vm439_vm8, %v4790_v26 }
  0x83   : > { %v2723_v32 = vrot.slane %v2721_v14, 5  ;;  %v2733_v43 = vrot.slane %v2731_v28, 4  ;;  %v495_v55 = vld [vmem:[%s5645_s13 + $0x8] sm:$0x1]  ;;  %v6081_v12 = vld [vmem:[#allocation21_spill] sm:$0xff] }
  0x84   : > { %4187 = vmatmul.mubr.msk.bf16.gmra.mrb[8].mxu1 %vm934_vm3, %v5524_v44  ;;  %4339 = vmatmul.mubr.msk.bf16.gmra.mrb[24].mxu0 %vm934_vm3, %v5526_v45  ;;  %441 = vst.msk [vmem:[%s5819_s18] sm:$0x1] %vm439_vm8, %v4790_v26 }
  0x85   : > { %4190 = vmatprep.mubr.msk.bf16.mxu1 %vm934_vm3, %v5530_v8  ;;  %4342 = vmatprep.mubr.msk.bf16.mxu0 %vm934_vm3, %v5536_v1 }
  0x8c   : > { %4191 = vmatmul.mubr.msk.bf16.gmra.mrb[12].mxu1 %vm934_vm3, %v5553_v40  ;;  %4343 = vmatmul.mubr.msk.bf16.gmra.mrb[28].mxu0 %vm934_vm3, %v5555_v19 }
  0x8d   : > { %4194 = vmatprep.mubr.msk.bf16.mxu1 %vm934_vm3, %v5449_v22  ;;  %4348 = vmatprep.mubr.msk.bf16.mxu0 %vm934_vm3, %v5416_v47 }
  0x94   : > { %4195 = vmatmul.mubr.msk.bf16.gmra.mrb[16].mxu1 %vm934_vm3, %v5459_v57  ;;  %4349 = vmatmul.mubr.msk.bf16.vlgmr.msra.gmra.mrb[0].mxu0 %vm934_vm3, %v5443_v23 }
  0x95   : > { %4381 = vmatpush3.bf16.msra.mxu0 %v2750_v61  ;;  %4198 = vmatprep.mubr.msk.bf16.mxu1 %vm934_vm3, %v5471_v5  ;;  %v6078_v61 = vld [vmem:[#allocation18_spill] sm:$0xff] }
  0x96   : > { %4352 = vmatprep.mubr.msk.bf16.mxu0 %vm934_vm3, %v5491_v56  ;;  %4715 = vmatprep.subr.msk.bf16.mxu0 %vm983_vm0, %v3900_v7  ;;  %v2718_v7 = vshrl.u32 %v5656_v60, 16 }
  0x9c   : > { %4199 = vmatmul.mubr.msk.bf16.gmra.mrb[20].mxu1 %vm934_vm3, %v5475_v54  ;;  %4353 = vmatmul.mubr.msk.bf16.gmra.mrb[4].mxu0 %vm934_vm3, %v5524_v44 }
  0x9d   : > { %4202 = vmatprep.mubr.msk.bf16.mxu1 %vm934_vm3, %v5479_v36  ;;  %4356 = vmatprep.mubr.msk.bf16.mxu0 %vm934_vm3, %v5530_v8 }
  0xa4   : > { %4203 = vmatmul.mubr.msk.bf16.gmra.mrb[24].mxu1 %vm934_vm3, %v5483_v49  ;;  %4357 = vmatmul.mubr.msk.bf16.gmra.mrb[8].mxu0 %vm934_vm3, %v5553_v40 }
  0xa5   : > { %4206 = vmatprep.mubr.msk.bf16.mxu1 %vm934_vm3, %v5487_v18  ;;  %4360 = vmatprep.mubr.msk.bf16.mxu0 %vm934_vm3, %v5449_v22 }
  0xac   : > { %4207 = vmatmul.mubr.msk.bf16.gmra.mrb[28].mxu1 %vm934_vm3, %v5497_v29  ;;  %4361 = vmatmul.mubr.msk.bf16.gmra.mrb[12].mxu0 %vm934_vm3, %v5459_v57 }
  0xad   : > { %4212 = vmatprep.mubr.msk.bf16.mxu1 %vm934_vm3, %v3776_v59  ;;  %4364 = vmatprep.mubr.msk.bf16.mxu0 %vm934_vm3, %v5471_v5 }
  0xb4   : > { %4213 = vmatmul.mubr.msk.bf16.vlgmr.msra.gmra.mrb[0].mxu1 %vm934_vm3, %v6063_v48  ;;  %4365 = vmatmul.mubr.msk.bf16.gmra.mrb[16].mxu0 %vm934_vm3, %v5475_v54 }
  0xb5   : > { %4245 = vmatpush3.bf16.msra.mxu1 %v1876_v35  ;;  %4216 = vmatprep.mubr.msk.bf16.mxu1 %vm934_vm3, %v6064_v52  ;;  %v2737_v35 = vshll.u32 %v495_v55, 16 }
  0xb6   : > { %4368 = vmatprep.mubr.msk.bf16.mxu0 %vm934_vm3, %v5479_v36  ;;  %4711 = vmatprep.subr.msk.bf16.mxu1 %vm983_vm0, %v4765_v2 }
  0xbc   : > { %4217 = vmatmul.mubr.msk.bf16.gmra.mrb[4].mxu1 %vm934_vm3, %v6065_v3  ;;  %4369 = vmatmul.mubr.msk.bf16.gmra.mrb[20].mxu0 %vm934_vm3, %v5483_v49 }
  0xbd   : > { %4220 = vmatprep.mubr.msk.bf16.mxu1 %vm934_vm3, %v6066_v4  ;;  %4372 = vmatprep.mubr.msk.bf16.mxu0 %vm934_vm3, %v5487_v18 }
  0xc4   : > { %4221 = vmatmul.mubr.msk.bf16.gmra.mrb[8].mxu1 %vm934_vm3, %v6067_v21  ;;  %4373 = vmatmul.mubr.msk.bf16.gmra.mrb[24].mxu0 %vm934_vm3, %v5497_v29 }
  0xc5   : > { %4224 = vmatprep.mubr.msk.bf16.mxu1 %vm934_vm3, %v6068_v13  ;;  %4376 = vmatprep.mubr.msk.bf16.mxu0 %vm934_vm3, %v5640_v11 }
  0xcc   : > { %4225 = vmatmul.mubr.msk.bf16.gmra.mrb[12].mxu1 %vm934_vm3, %v5353_v37  ;;  %4377 = vmatmul.mubr.msk.bf16.gmra.mrb[28].mxu0 %vm934_vm3, %v3864_v24  ;;  %v2739_v24 = vrot.slane %v2737_v35, 5 }
  0xcd   : > { %4228 = vmatprep.mubr.msk.bf16.mxu1 %vm934_vm3, %v5384_v41  ;;  %4382 = vmatprep.mubr.msk.bf16.mxu0 %vm934_vm3, %v6069_v9 }
  0xd4   : > { %4229 = vmatmul.mubr.msk.bf16.gmra.mrb[16].mxu1 %vm934_vm3, %v5388_v50  ;;  %4383 = vmatmul.mubr.msk.bf16.vlgmr.msra.gmra.mrb[0].mxu0 %vm934_vm3, %v6070_v51 }
  0xd5   : > { %4415 = vmatpush3.bf16.msra.mxu0 %v2962_v10  ;;  %4232 = vmatprep.mubr.msk.bf16.mxu1 %vm934_vm3, %v5410_v20 }
  0xd6   : > { %4386 = vmatprep.mubr.msk.bf16.mxu0 %vm934_vm3, %v6071_v33 }
  0xdc   : > { %4233 = vmatmul.mubr.msk.bf16.gmra.mrb[20].mxu1 %vm934_vm3, %v5421_v0  ;;  %4387 = vmatmul.mubr.msk.bf16.gmra.mrb[4].mxu0 %vm934_vm3, %v6072_v39 }
  0xdd   : > { %4236 = vmatprep.mubr.msk.bf16.mxu1 %vm934_vm3, %v5463_v62  ;;  %4390 = vmatprep.mubr.msk.bf16.mxu0 %vm934_vm3, %v6073_v58 }
  0xe4   : > { %4237 = vmatmul.mubr.msk.bf16.gmra.mrb[24].mxu1 %vm934_vm3, %v5493_v31  ;;  %4391 = vmatmul.mubr.msk.bf16.gmra.mrb[8].mxu0 %vm934_vm3, %v6074_v42 }
  0xe5   : > { %4240 = vmatprep.mubr.msk.bf16.mxu1 %vm934_vm3, %v5526_v45  ;;  %4394 = vmatprep.mubr.msk.bf16.mxu0 %vm934_vm3, %v6075_v15 }
  0xec   : > { %4241 = vmatmul.mubr.msk.bf16.gmra.mrb[28].mxu1 %vm934_vm3, %v5536_v1  ;;  %4395 = vmatmul.mubr.msk.bf16.gmra.mrb[12].mxu0 %vm934_vm3, %v6076_v27 }
  0xed   : > { %4246 = vmatprep.mubr.msk.bf16.mxu1 %vm934_vm3, %v4927_v38  ;;  %4398 = vmatprep.mubr.msk.bf16.mxu0 %vm934_vm3, %v6077_v6  ;;  %v2727_v38 = vshll.u32 %v5659_v17, 16 }
  0xef   : > { %v2729_v53 = vrot.slane %v2727_v38, 5 }
  0xf1   : > { %v2734_v59 = vor.u32 %v2733_v43, %v2729_v53 }
  0xf3   : > { %v2735_v2 = vrot.slane %v2734_v59, 4 }
  0xf4   : > { %4247 = vmatmul.mubr.msk.bf16.vlgmr.msra.gmra.mrb[0].mxu1 %vm934_vm3, %v5416_v47  ;;  %4399 = vmatmul.mubr.msk.bf16.gmra.mrb[16].mxu0 %vm934_vm3, %v6078_v61  ;;  %v2720_v47 = vrot.slane %v2718_v7, 4 }
  0xf5   : > { %4449 = vmatpush3.bf16.msra.mxu1 %v6079_v25  ;;  %4250 = vmatprep.mubr.msk.bf16.mxu1 %vm934_vm3, %v5443_v23 }
  0xf6   : > { %4402 = vmatprep.mubr.msk.bf16.mxu0 %vm934_vm3, %v6080_v46  ;;  %v2724_v23 = vor.u32 %v2723_v32, %v2720_v47 }
  0xf8   : > { %v2725_v48 = vrot.slane %v2724_v23, 4 }
  0xfc   : > { %4251 = vmatmul.mubr.msk.bf16.gmra.mrb[4].mxu1 %vm934_vm3, %v5491_v56  ;;  %4403 = vmatmul.mubr.msk.bf16.gmra.mrb[20].mxu0 %vm934_vm3, %v6081_v12  ;;  %v2730_v56 = vsel %vm4921_vm4, %v2725_v48, %v2729_v53 }
  0xfd   : > { %4254 = vmatprep.mubr.msk.bf16.mxu1 %vm934_vm3, %v5524_v44  ;;  %4406 = vmatprep.mubr.msk.bf16.mxu0 %vm934_vm3, %v5355_v30  ;;  %v2740_v44 = vsel %vm4921_vm4, %v2735_v2, %v2739_v24 }
  0xfe   : > { %v3882_v9 = vcombine.low %v2730_v56, %v2740_v44 }
 0x104   : > { %4255 = vmatmul.mubr.msk.bf16.gmra.mrb[8].mxu1 %vm934_vm3, %v5530_v8  ;;  %4407 = vmatmul.mubr.msk.bf16.gmra.mrb[24].mxu0 %vm934_vm3, %v5382_v63 }
 0x105   : > { %4258 = vmatprep.mubr.msk.bf16.mxu1 %vm934_vm3, %v5553_v40  ;;  %4410 = vmatprep.mubr.msk.bf16.mxu0 %vm934_vm3, %v5561_v16 }
 0x10c   : > { %4259 = vmatmul.mubr.msk.bf16.gmra.mrb[12].mxu1 %vm934_vm3, %v5449_v22  ;;  %4411 = vmatmul.mubr.msk.bf16.gmra.mrb[28].mxu0 %vm934_vm3, %v3882_v9 }
 0x10d   : > { %4262 = vmatprep.mubr.msk.bf16.mxu1 %vm934_vm3, %v5459_v57  ;;  %4416 = vmatprep.mubr.msk.bf16.mxu0 %vm934_vm3, %v6064_v52 }
 0x114   : > { %4263 = vmatmul.mubr.msk.bf16.gmra.mrb[16].mxu1 %vm934_vm3, %v5471_v5  ;;  %4417 = vmatmul.mubr.msk.bf16.vlgmr.msra.gmra.mrb[0].mxu0 %vm934_vm3, %v6065_v3 }
 0x115   : > { %4266 = vmatprep.mubr.msk.bf16.mxu1 %vm934_vm3, %v5475_v54  ;;  %4420 = vmatprep.mubr.msk.bf16.mxu0 %vm934_vm3, %v6066_v4 }
 0x11c   : > { %4267 = vmatmul.mubr.msk.bf16.gmra.mrb[20].mxu1 %vm934_vm3, %v5479_v36  ;;  %4421 = vmatmul.mubr.msk.bf16.gmra.mrb[4].mxu0 %vm934_vm3, %v6067_v21 }
 0x11d   : > { %4270 = vmatprep.mubr.msk.bf16.mxu1 %vm934_vm3, %v5483_v49  ;;  %4424 = vmatprep.mubr.msk.bf16.mxu0 %vm934_vm3, %v6068_v13 }
 0x124   : > { %4271 = vmatmul.mubr.msk.bf16.gmra.mrb[24].mxu1 %vm934_vm3, %v5487_v18  ;;  %4425 = vmatmul.mubr.msk.bf16.gmra.mrb[8].mxu0 %vm934_vm3, %v5353_v37  ;;  %v3899_v37 = vrot.slane %v5656_v60, 9 }
 0x125   : > { %4274 = vmatprep.mubr.msk.bf16.mxu1 %vm934_vm3, %v5497_v29  ;;  %4428 = vmatprep.mubr.msk.bf16.mxu0 %vm934_vm3, %v5384_v41  ;;  %v2950_v41 = vrot.slane %v2948_v34, 4 }
 0x12c   : > { %4275 = vmatmul.mubr.msk.bf16.gmra.mrb[28].mxu1 %vm934_vm3, %v5640_v11  ;;  %4429 = vmatmul.mubr.msk.bf16.gmra.mrb[12].mxu0 %vm934_vm3, %v5388_v50  ;;  %v2951_v50 = vrot.slane %v495_v55, 5 }
 0x12d   : > { %4296 = vmatprep.mubr.msk.bf16.mxu1 %vm934_vm3, %v6076_v27  ;;  %4432 = vmatprep.mubr.msk.bf16.mxu0 %vm934_vm3, %v5410_v20  ;;  %v2949_v20 = vsel %vm5102_vm7, %v3899_v37, %v2948_v34 }
 0x134   : > { %4297 = vmatmul.mubr.msk.bf16.vlgmr.msra.gmra.mrb[16].mxu1 %vm934_vm3, %v6077_v6  ;;  %4433 = vmatmul.mubr.msk.bf16.gmra.mrb[16].mxu0 %vm934_vm3, %v5421_v0  ;;  %v2952_v0 = vsel %vm5102_vm7, %v2950_v41, %v2951_v50 }
 0x135   : > { %4300 = vmatprep.mubr.msk.bf16.mxu1 %vm934_vm3, %v6078_v61  ;;  %4436 = vmatprep.mubr.msk.bf16.mxu0 %vm934_vm3, %v5463_v62  ;;  %v3901_v22 = vcombine.low %v2949_v20, %v2952_v0 }
 0x13c   : > { %4301 = vmatmul.mubr.msk.bf16.gmra.mrb[20].mxu1 %vm934_vm3, %v6080_v46  ;;  %4437 = vmatmul.mubr.msk.bf16.gmra.mrb[20].mxu0 %vm934_vm3, %v5493_v31 }
 0x13d   : > { %4304 = vmatprep.mubr.msk.bf16.mxu1 %vm934_vm3, %v6081_v12  ;;  %4440 = vmatprep.mubr.msk.bf16.mxu0 %vm934_vm3, %v5526_v45 }
 0x144   : > { %4305 = vmatmul.mubr.msk.bf16.gmra.mrb[24].mxu1 %vm934_vm3, %v5355_v30  ;;  %4441 = vmatmul.mubr.msk.bf16.gmra.mrb[24].mxu0 %vm934_vm3, %v5536_v1 }
 0x145   : > { %4308 = vmatprep.mubr.msk.bf16.mxu1 %vm934_vm3, %v5382_v63  ;;  %4444 = vmatprep.mubr.msk.bf16.mxu0 %vm934_vm3, %v5555_v19 }
 0x14c   : > { %4309 = vmatmul.mubr.msk.bf16.gmra.mrb[28].mxu1 %vm934_vm3, %v5561_v16  ;;  %4445 = vmatmul.mubr.msk.bf16.gmra.mrb[28].mxu0 %vm934_vm3, %v3901_v22 }
 0x1c7   : > { %v4248_v30 = vpop.f32.mrb[0].mxu1 }
 0x1c8   : > { %v1912_v63 = vpop.f32.mrb[1].mxu1 }
 0x1c9   : > { %v4249_v57 = vpop.f32.mrb[2].mxu1 }
 0x1ca   : > { %v1915_v62 = vpop.f32.mrb[3].mxu1 }
 0x1cf   : > { %v4252_v5 = vpop.f32.mrb[4].mxu1 }
 0x1d0   : > { %v1928_v54 = vpop.f32.mrb[5].mxu1 }
 0x1d1   : > { %v4253_v36 = vpop.f32.mrb[6].mxu1 }
 0x1d2   : > { %v1931_v49 = vpop.f32.mrb[7].mxu1 }
 0x1d7   : > { %v5825_v18 = vpop.f32.mrb[8].mxu1 }
 0x1d8   : > { %v5827_v31 = vpop.f32.mrb[9].mxu1 }
 0x1d9   : > { %v5829_v29 = vpop.f32.mrb[10].mxu1 }
 0x1da   : > { %v5831_v45 = vpop.f32.mrb[11].mxu1 }
 0x1df   : > { %v5833_v8 = vpop.f32.mrb[12].mxu1 }
 0x1e0   : > { %v5835_v1 = vpop.f32.mrb[13].mxu1 }
 0x1e1   : > { %v5837_v40 = vpop.f32.mrb[14].mxu1 }
 0x1e2   : > { %v5839_v19 = vpop.f32.mrb[15].mxu1 }
 0x1e7   : > { %v4418_v16 = vpop.f32.mrb[0].mxu0 }
 0x1e8   : > { %v4450_v52 = vadd.f32 %v4418_v16, %v4248_v30  ;;  %v2998_v3 = vpop.f32.mrb[1].mxu0 }
 0x1e9   : > { %v4451_v4 = vadd.f32 %v2998_v3, %v1912_v63  ;;  %v4419_v11 = vpop.f32.mrb[2].mxu0 }
 0x1ea   : > { %v3959_v21 = vpack.c.bf16 %v4450_v52, %v4450_v52  ;;  %v4452_v13 = vadd.f32 %v4419_v11, %v4249_v57  ;;  %v3001_v60 = vpop.f32.mrb[3].mxu0  ;;  %v3395_v33 = vmul.f32 %v4450_v52, %v4450_v52  ;;  %v3323_v7 = vsel %vm3319_vm10, %v4450_v52, 0.0 }
 0x1eb   : > { %v3957_v17 = vpack.c.bf16 %v4451_v4, %v4451_v4  ;;  %v3393_v10 = vmul.f32 %v4451_v4, %v4451_v4  ;;  %v4453_v51 = vadd.f32 %v3001_v60, %v1915_v62  ;;  %v3320_v58 = vsel %vm3319_vm10, %v4451_v4, 0.0 }
 0x1ec   : > { %3288 = vst.msk [vmem:[%s5845_s26 + $0x8] sm:$0xf] %vm3285_vm9, %v3959_v21  ;;  %v3960_v39 = vpack.c.bf16 %v4452_v13, %v4452_v13  ;;  %v3396_v6 = vmul.f32 %v4452_v13, %v4452_v13  ;;  %v3428_v53 = vsel %vm3319_vm10, %v3395_v33, 0.0  ;;  %v3325_v12 = vsel %vm3319_vm10, %v4452_v13, 0.0 }
 0x1ed   : > { %3286 = vst.msk [vmem:[%s5845_s26] sm:$0xf] %vm3285_vm9, %v3957_v17  ;;  %v3958_v42 = vpack.c.bf16 %v4453_v51, %v4453_v51  ;;  %v3321_v15 = vsel %vm3319_vm10, %v4453_v51, 0.0  ;;  %v3394_v27 = vmul.f32 %v4453_v51, %v4453_v51  ;;  %v3425_v14 = vsel %vm3319_vm10, %v3393_v10, 0.0 }
 0x1ee   : > { %3289 = vst.msk [vmem:[%s5845_s26 + $0xc] sm:$0xf] %vm3285_vm9, %v3960_v39  ;;  %v3322_v61 = vadd.f32 %v3321_v15, %v3320_v58  ;;  %v3430_v23 = vsel %vm3319_vm10, %v3396_v6, 0.0 }
 0x1ef   : > { %3287 = vst.msk [vmem:[%s5845_s26 + $0x4] sm:$0xf] %vm3285_vm9, %v3958_v42  ;;  %v3426_v28 = vsel %vm3319_vm10, %v3394_v27, 0.0  ;;  %v4422_v25 = vpop.f32.mrb[4].mxu0 }
 0x1f0   : > { %v3324_v38 = vadd.f32 %v3323_v7, %v3322_v61  ;;  %v3427_v46 = vadd.f32 %v3426_v28, %v3425_v14  ;;  %v4454_v47 = vadd.f32 %v4422_v25, %v4252_v5  ;;  %v3014_v32 = vpop.f32.mrb[5].mxu0 }
 0x1f1   : > { %v4455_v43 = vadd.f32 %v3014_v32, %v1928_v54  ;;  %v4423_v55 = vpop.f32.mrb[6].mxu0 }
 0x1f2   : > { %v3429_v59 = vadd.f32 %v3428_v53, %v3427_v46  ;;  %v3963_v35 = vpack.c.bf16 %v4454_v47, %v4454_v47  ;;  %v3017_v48 = vpop.f32.mrb[7].mxu0  ;;  %v3326_v24 = vadd.f32 %v3325_v12, %v3324_v38  ;;  %v4456_v34 = vadd.f32 %v4423_v55, %v4253_v36 }
 0x1f3   : > { %v3961_v2 = vpack.c.bf16 %v4455_v43, %v4455_v43  ;;  %v3327_v56 = vsel %vm3319_vm10, %v4455_v43, 0.0  ;;  %v3397_v44 = vmul.f32 %v4455_v43, %v4455_v43  ;;  %v4457_v37 = vadd.f32 %v3017_v48, %v1931_v49 }
 0x1f4   : > { %3292 = vst.msk [vmem:[%s5845_s26 + $0x18] sm:$0xf] %vm3285_vm9, %v3963_v35  ;;  %v3431_v9 = vadd.f32 %v3430_v23, %v3429_v59  ;;  %v3328_v41 = vadd.f32 %v3327_v56, %v3326_v24  ;;  %v3399_v20 = vmul.f32 %v4454_v47, %v4454_v47  ;;  %v3964_v22 = vpack.c.bf16 %v4456_v34, %v4456_v34 }
 0x1f5   : > { %3290 = vst.msk [vmem:[%s5845_s26 + $0x10] sm:$0xf] %vm3285_vm9, %v3961_v2  ;;  %v3432_v50 = vsel %vm3319_vm10, %v3397_v44, 0.0  ;;  %v3962_v26 = vpack.c.bf16 %v4457_v37, %v4457_v37  ;;  %v3329_v30 = vsel %vm3319_vm10, %v4457_v37, 0.0  ;;  %v3398_v63 = vmul.f32 %v4457_v37, %v4457_v37 }
 0x1f6   : > { %v3433_v0 = vadd.f32 %v3432_v50, %v3431_v9  ;;  %3293 = vst.msk [vmem:[%s5845_s26 + $0x1c] sm:$0xf] %vm3285_vm9, %v3964_v22  ;;  %v3330_v62 = vadd.f32 %v3329_v30, %v3328_v41  ;;  %v3331_v36 = vsel %vm3319_vm10, %v4454_v47, 0.0  ;;  %v3400_v49 = vmul.f32 %v4456_v34, %v4456_v34 }
 0x1f7   : > { %v4426_v57 = vpop.f32.mrb[8].mxu0  ;;  %3291 = vst.msk [vmem:[%s5845_s26 + $0x14] sm:$0xf] %vm3285_vm9, %v3962_v26  ;;  %v3434_v16 = vsel %vm3319_vm10, %v3398_v63, 0.0  ;;  %v3436_v4 = vsel %vm3319_vm10, %v3399_v20, 0.0 }
 0x1f8   : > { %v4458_v5 = vadd.f32 %v4426_v57, %v5825_v18  ;;  %v3030_v54 = vpop.f32.mrb[9].mxu0  ;;  %v3332_v11 = vadd.f32 %v3331_v36, %v3330_v62  ;;  %v3435_v21 = vadd.f32 %v3434_v16, %v3433_v0  ;;  %v3333_v18 = vsel %vm3319_vm10, %v4456_v34, 0.0 }
 0x1f9   : > { %v4459_v52 = vadd.f32 %v3030_v54, %v5827_v31  ;;  %v4427_v3 = vpop.f32.mrb[10].mxu0  ;;  %v3438_v42 = vsel %vm3319_vm10, %v3400_v49, 0.0 }
 0x1fa   : > { %v3967_v13 = vpack.c.bf16 %v4458_v5, %v4458_v5  ;;  %v3033_v60 = vpop.f32.mrb[11].mxu0  ;;  %v3437_v33 = vadd.f32 %v3436_v4, %v3435_v21  ;;  %v3334_v39 = vadd.f32 %v3333_v18, %v3332_v11  ;;  %v4460_v31 = vadd.f32 %v4427_v3, %v5829_v29 }
 0x1fb   : > { %v3965_v17 = vpack.c.bf16 %v4459_v52, %v4459_v52  ;;  %v3335_v10 = vsel %vm3319_vm10, %v4459_v52, 0.0  ;;  %v3401_v51 = vmul.f32 %v4459_v52, %v4459_v52  ;;  %v4461_v58 = vadd.f32 %v3033_v60, %v5831_v45 }
 0x1fc   : > { %3296 = vst.msk [vmem:[%s5845_s26 + $0x28] sm:$0xf] %vm3285_vm9, %v3967_v13  ;;  %v3403_v27 = vmul.f32 %v4458_v5, %v4458_v5  ;;  %v3336_v6 = vadd.f32 %v3335_v10, %v3334_v39  ;;  %v3439_v61 = vadd.f32 %v3438_v42, %v3437_v33  ;;  %v3968_v7 = vpack.c.bf16 %v4460_v31, %v4460_v31 }
 0x1fd   : > { %3294 = vst.msk [vmem:[%s5845_s26 + $0x20] sm:$0xf] %vm3285_vm9, %v3965_v17  ;;  %v3440_v15 = vsel %vm3319_vm10, %v3401_v51, 0.0  ;;  %v3966_v14 = vpack.c.bf16 %v4461_v58, %v4461_v58  ;;  %v3337_v28 = vsel %vm3319_vm10, %v4461_v58, 0.0  ;;  %v3402_v25 = vmul.f32 %v4461_v58, %v4461_v58 }
 0x1fe   : > { %v3441_v46 = vadd.f32 %v3440_v15, %v3439_v61  ;;  %3297 = vst.msk [vmem:[%s5845_s26 + $0x2c] sm:$0xf] %vm3285_vm9, %v3968_v7  ;;  %v3338_v29 = vadd.f32 %v3337_v28, %v3336_v6  ;;  %v3339_v32 = vsel %vm3319_vm10, %v4458_v5, 0.0  ;;  %v3404_v53 = vmul.f32 %v4460_v31, %v4460_v31 }
 0x1ff   : > { %v4430_v38 = vpop.f32.mrb[12].mxu0  ;;  %3295 = vst.msk [vmem:[%s5845_s26 + $0x24] sm:$0xf] %vm3285_vm9, %v3966_v14  ;;  %v3442_v43 = vsel %vm3319_vm10, %v3402_v25, 0.0  ;;  %v3444_v23 = vsel %vm3319_vm10, %v3403_v27, 0.0 }
 0x200   : > { %v4462_v45 = vadd.f32 %v4430_v38, %v5833_v8  ;;  %v3046_v47 = vpop.f32.mrb[13].mxu0  ;;  %v3340_v59 = vadd.f32 %v3339_v32, %v3338_v29  ;;  %v3443_v35 = vadd.f32 %v3442_v43, %v3441_v46  ;;  %v3341_v8 = vsel %vm3319_vm10, %v4460_v31, 0.0 }
 0x201   : > { %v4463_v55 = vadd.f32 %v3046_v47, %v5835_v1  ;;  %v4431_v12 = vpop.f32.mrb[14].mxu0  ;;  %v3446_v41 = vsel %vm3319_vm10, %v3404_v53, 0.0 }
 0x202   : > { %v3971_v48 = vpack.c.bf16 %v4462_v45, %v4462_v45  ;;  %v3049_v2 = vpop.f32.mrb[15].mxu0  ;;  %v3445_v9 = vadd.f32 %v3444_v23, %v3443_v35  ;;  %v3342_v34 = vadd.f32 %v3341_v8, %v3340_v59  ;;  %v4464_v1 = vadd.f32 %v4431_v12, %v5837_v40 }
 0x203   : > { %v3969_v24 = vpack.c.bf16 %v4463_v55, %v4463_v55  ;;  %v3343_v56 = vsel %vm3319_vm10, %v4463_v55, 0.0  ;;  %v3405_v44 = vmul.f32 %v4463_v55, %v4463_v55  ;;  %v4465_v37 = vadd.f32 %v3049_v2, %v5839_v19 }
 0x204   : > { %3300 = vst.msk [vmem:[%s5845_s26 + $0x38] sm:$0xf] %vm3285_vm9, %v3971_v48  ;;  %v3407_v20 = vmul.f32 %v4462_v45, %v4462_v45  ;;  %v3344_v0 = vadd.f32 %v3343_v56, %v3342_v34  ;;  %v3447_v22 = vadd.f32 %v3446_v41, %v3445_v9  ;;  %v3972_v26 = vpack.c.bf16 %v4464_v1, %v4464_v1 }
 0x205   : > { %3298 = vst.msk [vmem:[%s5845_s26 + $0x30] sm:$0xf] %vm3285_vm9, %v3969_v24  ;;  %v3448_v50 = vsel %vm3319_vm10, %v3405_v44, 0.0  ;;  %v3970_v30 = vpack.c.bf16 %v4465_v37, %v4465_v37  ;;  %v3345_v63 = vsel %vm3319_vm10, %v4465_v37, 0.0  ;;  %v3406_v57 = vmul.f32 %v4465_v37, %v4465_v37 }
 0x206   : > { %v3449_v40 = vadd.f32 %v3448_v50, %v3447_v22  ;;  %3301 = vst.msk [vmem:[%s5845_s26 + $0x3c] sm:$0xf] %vm3285_vm9, %v3972_v26  ;;  %v3346_v19 = vadd.f32 %v3345_v63, %v3344_v0  ;;  %v3347_v16 = vsel %vm3319_vm10, %v4462_v45, 0.0  ;;  %v3408_v52 = vmul.f32 %v4464_v1, %v4464_v1 }
 0x207   : > { %v4298_v62 = vpop.f32.mrb[16].mxu1  ;;  %v4434_v5 = vpop.f32.mrb[16].mxu0  ;;  %3299 = vst.msk [vmem:[%s5845_s26 + $0x34] sm:$0xf] %vm3285_vm9, %v3970_v30  ;;  %v3450_v3 = vsel %vm3319_vm10, %v3406_v57, 0.0  ;;  %v3452_v13 = vsel %vm3319_vm10, %v3407_v20, 0.0 }
 0x208   : > { %v4466_v54 = vadd.f32 %v4434_v5, %v4298_v62  ;;  %v2204_v36 = vpop.f32.mrb[17].mxu1  ;;  %v3062_v49 = vpop.f32.mrb[17].mxu0  ;;  %v3348_v60 = vadd.f32 %v3347_v16, %v3346_v19  ;;  %v3451_v18 = vadd.f32 %v3450_v3, %v3449_v40  ;;  %v3349_v33 = vsel %vm3319_vm10, %v4464_v1, 0.0 }
 0x209   : > { %v4467_v4 = vadd.f32 %v3062_v49, %v2204_v36  ;;  %v4299_v11 = vpop.f32.mrb[18].mxu1  ;;  %v4435_v21 = vpop.f32.mrb[18].mxu0  ;;  %v3454_v61 = vsel %vm3319_vm10, %v3408_v52, 0.0 }
 0x20a   : > { %v3975_v17 = vpack.c.bf16 %v4466_v54, %v4466_v54  ;;  %v2207_v10 = vpop.f32.mrb[19].mxu1  ;;  %v3065_v51 = vpop.f32.mrb[19].mxu0  ;;  %v3453_v42 = vadd.f32 %v3452_v13, %v3451_v18  ;;  %v3350_v15 = vadd.f32 %v3349_v33, %v3348_v60  ;;  %v4468_v27 = vadd.f32 %v4435_v21, %v4299_v11 }
 0x20b   : > { %v3973_v39 = vpack.c.bf16 %v4467_v4, %v4467_v4  ;;  %v3351_v31 = vsel %vm3319_vm10, %v4467_v4, 0.0  ;;  %v3409_v58 = vmul.f32 %v4467_v4, %v4467_v4  ;;  %v4469_v6 = vadd.f32 %v3065_v51, %v2207_v10 }
 0x20c   : > { %3304 = vst.msk [vmem:[%s5845_s26 + $0x48] sm:$0xf] %vm3285_vm9, %v3975_v17  ;;  %v3411_v14 = vmul.f32 %v4466_v54, %v4466_v54  ;;  %v3352_v28 = vadd.f32 %v3351_v31, %v3350_v15  ;;  %v3455_v25 = vadd.f32 %v3454_v61, %v3453_v42  ;;  %v3976_v38 = vpack.c.bf16 %v4468_v27, %v4468_v27 }
 0x20d   : > { %3302 = vst.msk [vmem:[%s5845_s26 + $0x40] sm:$0xf] %vm3285_vm9, %v3973_v39  ;;  %v3456_v7 = vsel %vm3319_vm10, %v3409_v58, 0.0  ;;  %v3974_v46 = vpack.c.bf16 %v4469_v6, %v4469_v6  ;;  %v3353_v29 = vsel %vm3319_vm10, %v4469_v6, 0.0  ;;  %v3410_v45 = vmul.f32 %v4469_v6, %v4469_v6 }
 0x20e   : > { %v3457_v53 = vadd.f32 %v3456_v7, %v3455_v25  ;;  %3305 = vst.msk [vmem:[%s5845_s26 + $0x4c] sm:$0xf] %vm3285_vm9, %v3976_v38  ;;  %v3354_v43 = vadd.f32 %v3353_v29, %v3352_v28  ;;  %v3355_v59 = vsel %vm3319_vm10, %v4466_v54, 0.0  ;;  %v3412_v35 = vmul.f32 %v4468_v27, %v4468_v27 }
 0x20f   : > { %v4302_v47 = vpop.f32.mrb[20].mxu1  ;;  %v4438_v32 = vpop.f32.mrb[20].mxu0  ;;  %3303 = vst.msk [vmem:[%s5845_s26 + $0x44] sm:$0xf] %vm3285_vm9, %v3974_v46  ;;  %v3458_v48 = vsel %vm3319_vm10, %v3410_v45, 0.0  ;;  %v3460_v56 = vsel %vm3319_vm10, %v3411_v14, 0.0 }
 0x210   : > { %v4470_v55 = vadd.f32 %v4438_v32, %v4302_v47  ;;  %v2220_v12 = vpop.f32.mrb[21].mxu1  ;;  %v3078_v23 = vpop.f32.mrb[21].mxu0  ;;  %v3356_v44 = vadd.f32 %v3355_v59, %v3354_v43  ;;  %v3459_v9 = vadd.f32 %v3458_v48, %v3457_v53  ;;  %v3357_v41 = vsel %vm3319_vm10, %v4468_v27, 0.0 }
 0x211   : > { %v4471_v2 = vadd.f32 %v3078_v23, %v2220_v12  ;;  %v4303_v8 = vpop.f32.mrb[22].mxu1  ;;  %v4439_v24 = vpop.f32.mrb[22].mxu0  ;;  %v3462_v57 = vsel %vm3319_vm10, %v3412_v35, 0.0 }
 0x212   : > { %v3979_v34 = vpack.c.bf16 %v4470_v55, %v4470_v55  ;;  %v2223_v1 = vpop.f32.mrb[23].mxu1  ;;  %v3081_v37 = vpop.f32.mrb[23].mxu0  ;;  %v3461_v22 = vadd.f32 %v3460_v56, %v3459_v9  ;;  %v3358_v26 = vadd.f32 %v3357_v41, %v3356_v44  ;;  %v4472_v30 = vadd.f32 %v4439_v24, %v4303_v8 }
 0x213   : > { %v3977_v50 = vpack.c.bf16 %v4471_v2, %v4471_v2  ;;  %v3359_v20 = vsel %vm3319_vm10, %v4471_v2, 0.0  ;;  %v3413_v0 = vmul.f32 %v4471_v2, %v4471_v2  ;;  %v4473_v63 = vadd.f32 %v3081_v37, %v2223_v1 }
 0x214   : > { %3308 = vst.msk [vmem:[%s5845_s26 + $0x58] sm:$0xf] %vm3285_vm9, %v3979_v34  ;;  %v3415_v5 = vmul.f32 %v4470_v55, %v4470_v55  ;;  %v3360_v40 = vadd.f32 %v3359_v20, %v3358_v26  ;;  %v3463_v19 = vadd.f32 %v3462_v57, %v3461_v22  ;;  %v3980_v54 = vpack.c.bf16 %v4472_v30, %v4472_v30 }
 0x215   : > { %3306 = vst.msk [vmem:[%s5845_s26 + $0x50] sm:$0xf] %vm3285_vm9, %v3977_v50  ;;  %v3464_v62 = vsel %vm3319_vm10, %v3413_v0, 0.0  ;;  %v3978_v36 = vpack.c.bf16 %v4473_v63, %v4473_v63  ;;  %v3361_v49 = vsel %vm3319_vm10, %v4473_v63, 0.0  ;;  %v3414_v16 = vmul.f32 %v4473_v63, %v4473_v63 }
 0x216   : > { %v3465_v4 = vadd.f32 %v3464_v62, %v3463_v19  ;;  %3309 = vst.msk [vmem:[%s5845_s26 + $0x5c] sm:$0xf] %vm3285_vm9, %v3980_v54  ;;  %v3362_v11 = vadd.f32 %v3361_v49, %v3360_v40  ;;  %v3363_v18 = vsel %vm3319_vm10, %v4470_v55, 0.0  ;;  %v3416_v17 = vmul.f32 %v4472_v30, %v4472_v30 }
 0x217   : > { %v4306_v52 = vpop.f32.mrb[24].mxu1  ;;  %v4442_v3 = vpop.f32.mrb[24].mxu0  ;;  %3307 = vst.msk [vmem:[%s5845_s26 + $0x54] sm:$0xf] %vm3285_vm9, %v3978_v36  ;;  %v3466_v10 = vsel %vm3319_vm10, %v3414_v16, 0.0  ;;  %v3468_v31 = vsel %vm3319_vm10, %v3415_v5, 0.0 }
 0x218   : > { %v4474_v21 = vadd.f32 %v4442_v3, %v4306_v52  ;;  %v2236_v13 = vpop.f32.mrb[25].mxu1  ;;  %v3094_v60 = vpop.f32.mrb[25].mxu0  ;;  %v3364_v58 = vadd.f32 %v3363_v18, %v3362_v11  ;;  %v3467_v42 = vadd.f32 %v3466_v10, %v3465_v4  ;;  %v3365_v61 = vsel %vm3319_vm10, %v4472_v30, 0.0 }
 0x219   : > { %v4475_v51 = vadd.f32 %v3094_v60, %v2236_v13  ;;  %v4307_v33 = vpop.f32.mrb[26].mxu1  ;;  %v4443_v39 = vpop.f32.mrb[26].mxu0  ;;  %v3470_v45 = vsel %vm3319_vm10, %v3416_v17, 0.0 }
 0x21a   : > { %v3983_v15 = vpack.c.bf16 %v4474_v21, %v4474_v21  ;;  %v2239_v27 = vpop.f32.mrb[27].mxu1  ;;  %v3097_v6 = vpop.f32.mrb[27].mxu0  ;;  %v3469_v25 = vadd.f32 %v3468_v31, %v3467_v42  ;;  %v3366_v38 = vadd.f32 %v3365_v61, %v3364_v58  ;;  %v4476_v46 = vadd.f32 %v4443_v39, %v4307_v33 }
 0x21b   : > { %v3981_v7 = vpack.c.bf16 %v4475_v51, %v4475_v51  ;;  %v3367_v14 = vsel %vm3319_vm10, %v4475_v51, 0.0  ;;  %v3417_v28 = vmul.f32 %v4475_v51, %v4475_v51  ;;  %v4477_v29 = vadd.f32 %v3097_v6, %v2239_v27 }
 0x21c   : > { %3312 = vst.msk [vmem:[%s5845_s26 + $0x68] sm:$0xf] %vm3285_vm9, %v3983_v15  ;;  %v3419_v32 = vmul.f32 %v4474_v21, %v4474_v21  ;;  %v3368_v53 = vadd.f32 %v3367_v14, %v3366_v38  ;;  %v3471_v43 = vadd.f32 %v3470_v45, %v3469_v25  ;;  %v3984_v55 = vpack.c.bf16 %v4476_v46, %v4476_v46 }
 0x21d   : > { %3310 = vst.msk [vmem:[%s5845_s26 + $0x60] sm:$0xf] %vm3285_vm9, %v3981_v7  ;;  %v3472_v47 = vsel %vm3319_vm10, %v3417_v28, 0.0  ;;  %v3982_v12 = vpack.c.bf16 %v4477_v29, %v4477_v29  ;;  %v3369_v23 = vsel %vm3319_vm10, %v4477_v29, 0.0  ;;  %v3418_v59 = vmul.f32 %v4477_v29, %v4477_v29 }
 0x21e   : > { %v3473_v2 = vadd.f32 %v3472_v47, %v3471_v43  ;;  %3313 = vst.msk [vmem:[%s5845_s26 + $0x6c] sm:$0xf] %vm3285_vm9, %v3984_v55  ;;  %v3370_v8 = vadd.f32 %v3369_v23, %v3368_v53  ;;  %v3371_v9 = vsel %vm3319_vm10, %v4474_v21, 0.0  ;;  %v3420_v34 = vmul.f32 %v4476_v46, %v4476_v46  ;;  %v3318_v53 = vld [vmem:[%s5813_s15] sm:$0x1] }
 0x21f   : > { %v4310_v35 = vpop.f32.mrb[28].mxu1  ;;  %v4446_v48 = vpop.f32.mrb[28].mxu0  ;;  %3311 = vst.msk [vmem:[%s5845_s26 + $0x64] sm:$0xf] %vm3285_vm9, %v3982_v12  ;;  %v3474_v1 = vsel %vm3319_vm10, %v3418_v59, 0.0  ;;  %v3476_v20 = vsel %vm3319_vm10, %v3419_v32, 0.0 }
 0x220   : > { %v4478_v24 = vadd.f32 %v4446_v48, %v4310_v35  ;;  %v2252_v56 = vpop.f32.mrb[29].mxu1  ;;  %v3110_v44 = vpop.f32.mrb[29].mxu0  ;;  %v3372_v0 = vadd.f32 %v3371_v9, %v3370_v8  ;;  %v3475_v22 = vadd.f32 %v3474_v1, %v3473_v2  ;;  %v3373_v57 = vsel %vm3319_vm10, %v4476_v46, 0.0  ;;  %v3392_v12 = vld [vmem:[%s5819_s18] sm:$0x1] }
 0x221   : > { %v4479_v37 = vadd.f32 %v3110_v44, %v2252_v56  ;;  %v4311_v41 = vpop.f32.mrb[30].mxu1  ;;  %v4447_v50 = vpop.f32.mrb[30].mxu0  ;;  %v3478_v16 = vsel %vm3319_vm10, %v3420_v34, 0.0 }
 0x222   : > { %v3987_v26 = vpack.c.bf16 %v4478_v24, %v4478_v24  ;;  %v2255_v30 = vpop.f32.mrb[31].mxu1  ;;  %v3113_v63 = vpop.f32.mrb[31].mxu0  ;;  %v3477_v19 = vadd.f32 %v3476_v20, %v3475_v22  ;;  %v3374_v54 = vadd.f32 %v3373_v57, %v3372_v0  ;;  %v4480_v36 = vadd.f32 %v4447_v50, %v4311_v41 }
 0x223   : > { %v3985_v62 = vpack.c.bf16 %v4479_v37, %v4479_v37  ;;  %v3375_v5 = vsel %vm3319_vm10, %v4479_v37, 0.0  ;;  %v3421_v40 = vmul.f32 %v4479_v37, %v4479_v37  ;;  %v4481_v49 = vadd.f32 %v3113_v63, %v2255_v30 }
 0x224   : > { %3316 = vst.msk [vmem:[%s5845_s26 + $0x78] sm:$0xf] %vm3285_vm9, %v3987_v26  ;;  %v3376_v3 = vadd.f32 %v3375_v5, %v3374_v54  ;;  %v3479_v4 = vadd.f32 %v3478_v16, %v3477_v19  ;;  %v3988_v11 = vpack.c.bf16 %v4480_v36, %v4480_v36  ;;  %v3423_v21 = vmul.f32 %v4478_v24, %v4478_v24 }
 0x225   : > { %3314 = vst.msk [vmem:[%s5845_s26 + $0x70] sm:$0xf] %vm3285_vm9, %v3985_v62  ;;  %v3480_v52 = vsel %vm3319_vm10, %v3421_v40, 0.0  ;;  %v3986_v13 = vpack.c.bf16 %v4481_v49, %v4481_v49  ;;  %v3377_v60 = vsel %vm3319_vm10, %v4481_v49, 0.0  ;;  %v3422_v18 = vmul.f32 %v4481_v49, %v4481_v49 }
 0x226   : > { %v3481_v17 = vadd.f32 %v3480_v52, %v3479_v4  ;;  %3317 = vst.msk [vmem:[%s5845_s26 + $0x7c] sm:$0xf] %vm3285_vm9, %v3988_v11  ;;  %v3378_v10 = vadd.f32 %v3377_v60, %v3376_v3  ;;  %v3379_v51 = vsel %vm3319_vm10, %v4478_v24, 0.0  ;;  %v3424_v33 = vmul.f32 %v4480_v36, %v4480_v36 }
 0x227   : > { %3315 = vst.msk [vmem:[%s5845_s26 + $0x74] sm:$0xf] %vm3285_vm9, %v3986_v13  ;;  %v3482_v39 = vsel %vm3319_vm10, %v3422_v18, 0.0  ;;  %v3484_v42 = vsel %vm3319_vm10, %v3423_v21, 0.0  ;;  %v3381_v15 = vsel %vm3319_vm10, %v4480_v36, 0.0 }
 0x228   : > { %v3380_v31 = vadd.f32 %v3379_v51, %v3378_v10  ;;  %v3483_v58 = vadd.f32 %v3482_v39, %v3481_v17  ;;  %v3486_v61 = vsel %vm3319_vm10, %v3424_v33, 0.0 }
 0x22a   : > { %v3382_v27 = vadd.f32 %v3381_v15, %v3380_v31  ;;  %v3485_v6 = vadd.f32 %v3484_v42, %v3483_v58 }
 0x22c   : > { %v3383_v7 = vrot.slane %v3382_v27, 4  ;;  %v3487_v14 = vadd.f32 %v3486_v61, %v3485_v6 }
 0x22e   : > { %v3384_v28 = vadd.f32 %v3383_v7, %v3382_v27  ;;  %v3488_v25 = vrot.slane %v3487_v14, 4 }
 0x230   : > { %v3385_v38 = vrot.slane %v3384_v28, 2  ;;  %v3489_v46 = vadd.f32 %v3488_v25, %v3487_v14 }
 0x232   : > { %v3386_v29 = vadd.f32 %v3385_v38, %v3384_v28  ;;  %v3490_v45 = vrot.slane %v3489_v46, 2 }
 0x234   : > { %v3387_v47 = vrot.slane %v3386_v29, 1  ;;  %v3491_v32 = vadd.f32 %v3490_v45, %v3489_v46 }
 0x236   : > { %v3388_v43 = vadd.f32 %v3387_v47, %v3386_v29  ;;  %v3492_v55 = vrot.slane %v3491_v32, 1 }
 0x238   : > { %v3389_v23 = vadd.f32 %v3388_v43, %v3318_v53  ;;  %v3493_v59 = vadd.f32 %v3492_v55, %v3491_v32 }
 0x23a   : > { %3391 = vst.msk [vmem:[%s5813_s15] sm:$0x1] %vm439_vm8, %v3389_v23  ;;  %v3494_v35 = vadd.f32 %v3493_v59, %v3392_v12 }
 0x23c   : > { %3495 = vst.msk [vmem:[%s5819_s18] sm:$0x1] %vm439_vm8, %v3494_v35 }
 0x23d PF: > { %s17_s23 = sadd.s32 1, %s4788_s23   ;;  %s6082_s21 = smov %s4784_s22 }
 0x23e   : > { %p14_p5 = scmp.ge.s32.totalorder %s17_s23, 4   ;;  %s6083_s22 = smov %s6085_s24 }
 0x240   :  { %16 = sbr.rel (!%p14_p5) target bundleno = 2 (0x2), region = 108 }

// kernel: double_conv_forward.6
= control target key start
LH: loop header
LB: loop body
LE: loop exit
PB: predicated region body
PF: predicated region fallthrough
CT: control target
= control target key end

     0   :  { %s5012_s21 = smov 0   ;;  %s5014_s22 = smov 0   ;;  %s6190_s0 = inlined_call_operand.vmem [shape: bf16[2,18,18,32], index: 0, kind: input, shape index: {}, may-alias: {0,1,2}]   ;;  %s6191_s1 = inlined_call_operand.vmem [shape: bf16[2,18,18,32], index: 1, kind: input, shape index: {}, may-alias: {0,1,2}]   ;;  %s6192_s2 = inlined_call_operand.vmem [shape: bf16[2,18,18,32], index: 2, kind: input, shape index: {}, may-alias: {0,1,2}]   ;;  %s6193_s3 = inlined_call_operand.vmem [shape: bf16[3,3,32,32], index: 3, kind: input, shape index: {}]   ;;  %s6194_s4 = inlined_call_operand.vmem [shape: bf16[2,16,16,32], index: 4, kind: output, shape index: {0}]   ;;  %s6195_s5 = inlined_call_operand.vmem [shape: f32[2,1,32], index: 5, kind: output, shape index: {1}]   ;;  %s6196_s6 = inlined_call_operand.vmem [shape: f32[2,1,32], index: 6, kind: output, shape index: {2}]  }
   0x1   :  { %s5016_s23 = smov 0  }
   0x2 LB: > { %s29_s24 = sadd.s32 1, %s4970_s22  ;;  %p3794_p0 = scmp.ge.s32.totalorder %s4974_s23, 1  ;;  %s4974_s23 = sphi %s5016_s23, %s17_s23   ;;  %s4970_s22 = sphi %s5014_s22, %s6272_s22   ;;  %s4966_s21 = sphi %s5012_s21, %s6271_s21  }
   0x3   : > { %p31_p1 = scmp.ge.s32.totalorder %s29_s24, 2  ;;  %p297_p2 = scmp.lt.s32.totalorder %s4974_s23, 3 }
   0x5   : > { %s6274_s24 = smov (%p31_p1, %s29_s24), 0  ;;  %p298_p3 = pnand %p3794_p0, %p297_p2 }
   0x7   : > { %301 = sbr.rel (%p298_p3) target bundleno = 573 (0x23d), region = 36 }
   0xe   : > { %v4911_v0 = vld [vmem:[%s6193_s3 + $0x10] sm:$0xff]   ;;  %p376_p4 = scmp.lt.s32.totalorder %s4966_s21, 1  ;;  %v4912_v1 = vld [vmem:[%s6193_s3 + $0x40] sm:$0xff]   ;;  %v4913_v2 = vld [vmem:[%s6193_s3 + $0x18] sm:$0xff]   ;;  %vm500_vm0 = vsmask.f32 3328 }
   0xf   : > { %4299 = vmatprep.subr.bf16.mxu1 %v4911_v0  ;;  %4443 = vmatprep.subr.bf16.mxu0 %v4912_v1  ;;  %v4914_v3 = vld [vmem:[%s6193_s3 + $0x48] sm:$0xff]   ;;  %vm501_vm1 = vsmask.f32 7440  ;;  %v5050_v4 = vld [vmem:[%s6193_s3] sm:$0xff]   ;;  %v5061_v5 = vld [vmem:[%s6193_s3 + $0x50] sm:$0xff]   ;;  %vm952_vm2 = vcmask 261120  }
  0x10   : > { %s6276_s21 = smov (!%p376_p4, %s4966_s21), 1  ;;  %4300 = vmatpush3.bf16.msra.mxu1 %v4911_v0  ;;  %4444 = vmatpush3.bf16.msra.mxu0 %v4912_v1  ;;  %vm5095_vm3 = vmor %vm500_vm0, %vm501_vm1  ;;  %vm1479_vm4 = vcmask 1042432   ;;  %vm1480_vm5 = vcmask 1046532   ;;  %vm439_vm7 = vcmask 253952   ;;  %vm3392_vm8 = vcmask 257024  }
  0x11   : > { %4301 = vmatprep.subr.bf16.mxu1 %v4913_v2  ;;  %s5045_s9 = smul.u32 216, %s6276_s21  ;;  %4445 = vmatprep.subr.bf16.mxu0 %v4914_v3  ;;  %vm5285_vm6 = vmor %vm1479_vm4, %vm1480_vm5  ;;  %s6005_s17 = scalar_lea.vmem %s6195_s5, %s6276_s21 }
  0x12   : > { %s6011_s20 = scalar_lea.vmem %s6196_s6, %s6276_s21  ;;  %s4104_s25 = sshll.u32 %s6276_s21, 7 }
  0x13   : > { %s5056_s14 = scalar_lea.vmem %s6190_s0, %s5045_s9  ;;  %s4101_s12 = sadd.s32 192, %s5045_s9 }
  0x14   : > { %4302 = vmatpush3.bf16.msra.mxu1 %v4913_v2  ;;  %v5064_v6 = vld [vmem:[%s5056_s14] sm:$0xf]  ;;  %v5067_v7 = vld [vmem:[%s5056_s14 + $0x4] sm:$0xf]  ;;  %v444_v8 = vld [vmem:[%s5056_s14 + $0x8] sm:$0x1]  ;;  %4446 = vmatpush3.bf16.msra.mxu0 %v4914_v3  ;;  %s401_s18 = scalar_lea.vmem %s6191_s1, %s4101_s12  ;;  %s6037_s27 = scalar_lea.vmem %s6194_s4, %s4104_s25 }
  0x15   : > { %v504_v9 = vshrl.u32 %v5064_v6, 16  ;;  %v507_v10 = vshll.u32 %v5064_v6, 16  ;;  %v513_v11 = vshll.u32 %v5067_v7, 16  ;;  %v517_v12 = vshrl.u32 %v5067_v7, 16  ;;  %4335 = vmatprep.subr.bf16.mxu1 %v5050_v4  ;;  %v5076_v13 = vld [vmem:[%s5056_s14 + $0xc] sm:$0xf]  ;;  %4479 = vmatprep.subr.bf16.mxu0 %v5061_v5 }
  0x16   : > { %v523_v14 = vshll.u32 %v444_v8, 16  ;;  %v5079_v15 = vld [vmem:[%s5056_s14 + $0x10] sm:$0xf]  ;;  %v5082_v16 = vld [vmem:[%s5056_s14 + $0x14] sm:$0x1]  ;;  %v528_v22 = vshrl.u32 %v5076_v13, 16 }
  0x17   : > { %v506_v17 = vrot.slane %v504_v9, 4  ;;  %v509_v18 = vrot.slane %v507_v10, 5  ;;  %v515_v19 = vrot.slane %v513_v11, 5  ;;  %v519_v20 = vrot.slane %v517_v12, 4  ;;  %v5091_v29 = vld [vmem:[%s5056_s14 + $0x18] sm:$0xf] }
  0x18   : > { %v525_v21 = vrot.slane %v523_v14, 5  ;;  %v531_v23 = vshll.u32 %v5076_v13, 16  ;;  %v537_v24 = vshll.u32 %v5079_v15, 16  ;;  %v541_v27 = vshrl.u32 %v5079_v15, 16  ;;  %v5104_v35 = vld [vmem:[%s5056_s14 + $0x1c] sm:$0xf] }
  0x19   : > { %v510_v25 = vor.u32 %v509_v18, %v506_v17  ;;  %v520_v26 = vor.u32 %v519_v20, %v515_v19  ;;  %v547_v28 = vshll.u32 %v5082_v16, 16  ;;  %v530_v31 = vrot.slane %v528_v22, 4  ;;  %v5108_v42 = vld [vmem:[%s5056_s14 + $0x20] sm:$0x1]  ;;  %v5118_v49 = vld [vmem:[%s5056_s14 + $0x24] sm:$0xf] }
  0x1a   : > { %v533_v32 = vrot.slane %v531_v23, 5  ;;  %v539_v33 = vrot.slane %v537_v24, 5  ;;  %v5101_v34 = vcombine.low %v5076_v13, %v5079_v15  ;;  %v543_v38 = vrot.slane %v541_v27, 4  ;;  %v5121_v54 = vld [vmem:[%s5056_s14 + $0x28] sm:$0xf]  ;;  %s4103_s30 = sadd.s32 204, %s5045_s9 }
  0x1b   : > { %v511_v36 = vrot.slane %v510_v25, 4  ;;  %v521_v37 = vrot.slane %v520_v26, 4  ;;  %v549_v39 = vrot.slane %v547_v28, 5  ;;  %v1494_v41 = vrot.slane %v5082_v16, 5  ;;  %v5126_v59 = vld [vmem:[%s5056_s14 + $0x2c] sm:$0x1]  ;;  %s5833_s10 = scalar_lea.vmem %s6192_s2, %s4103_s30 }
  0x1c   : > { %v534_v40 = vor.u32 %v533_v32, %v530_v31  ;;  %v552_v43 = vshrl.u32 %v5091_v29, 16  ;;  %v555_v44 = vshll.u32 %v5091_v29, 16  ;;  %v544_v47 = vor.u32 %v543_v38, %v539_v33  ;;  %v5134_v0 = vld [vmem:[%s5056_s14 + $0x30] sm:$0xf]  ;;  %v4919_v14 = vld [vmem:[%s6193_s3 + $0x8] sm:$0xff]  }
  0x1d   : > { %v516_v45 = vsel %vm5095_vm3, %v511_v36, %v515_v19  ;;  %v526_v46 = vsel %vm5095_vm3, %v521_v37, %v525_v21  ;;  %v561_v48 = vshll.u32 %v5104_v35, 16  ;;  %v565_v57 = vshrl.u32 %v5104_v35, 16  ;;  %v5147_v21 = vld [vmem:[%s5056_s14 + $0x34] sm:$0xf]  ;;  %v5154_v25 = vld [vmem:[%s5056_s14 + $0x38] sm:$0x1] }
  0x1e   : > { %v3804_v50 = vcombine.low %v516_v45, %v526_v46  ;;  %v535_v51 = vrot.slane %v534_v40, 4  ;;  %v554_v52 = vrot.slane %v552_v43, 4  ;;  %v557_v53 = vrot.slane %v555_v44, 5  ;;  %v5168_v45 = vld [vmem:[%s5056_s14 + $0x40] sm:$0xf] }
  0x1f   : > { %v545_v55 = vrot.slane %v544_v47, 4  ;;  %v563_v56 = vrot.slane %v561_v48, 5  ;;  %v571_v58 = vshll.u32 %v5108_v42, 16  ;;  %v1498_v62 = vrot.slane %v5104_v35, 5  ;;  %v5173_v46 = vld [vmem:[%s6193_s3 + $0x20] sm:$0xff]  }
  0x20   : > { %4303 = vmatprep.mubr.msk.bf16.mxu1 %vm952_vm2, %v3804_v50  ;;  %v540_v60 = vsel %vm5095_vm3, %v535_v51, %v539_v33  ;;  %v558_v61 = vor.u32 %v557_v53, %v554_v52  ;;  %v1501_v63 = vrot.slane %v5108_v42, 5  ;;  %v567_v2 = vrot.slane %v565_v57, 4  ;;  %v5178_v52 = vld [vmem:[%s5056_s14 + $0x44] sm:$0x1]  ;;  %v4918_v53 = vld [vmem:[%s6193_s3 + $0x58] sm:$0xff]  }
  0x21   : > { %v550_v1 = vsel %vm5095_vm3, %v545_v55, %v549_v39  ;;  %v573_v3 = vrot.slane %v571_v58, 5  ;;  %v576_v8 = vshrl.u32 %v5118_v49, 16  ;;  %v579_v11 = vshll.u32 %v5118_v49, 16  ;;  %v5162_v39 = vld [vmem:[%s5056_s14 + $0x3c] sm:$0xf] }
  0x22   : > { %v3805_v9 = vcombine.low %v540_v60, %v550_v1  ;;  %v559_v10 = vrot.slane %v558_v61, 4  ;;  %v585_v12 = vshll.u32 %v5121_v54, 16  ;;  %v568_v17 = vor.u32 %v567_v2, %v563_v56  ;;  %v5184_v55 = vld [vmem:[%s5056_s14 + $0x48] sm:$0xf]  ;;  %v5188_v61 = vld [vmem:[%s5056_s14 + $0x4c] sm:$0xf] }
  0x23   : > { %v578_v18 = vrot.slane %v576_v8, 4  ;;  %v589_v19 = vshrl.u32 %v5121_v54, 16  ;;  %v595_v20 = vshll.u32 %v5126_v59, 16  ;;  %v581_v23 = vrot.slane %v579_v11, 5 }
  0x24   : > { %4447 = vmatprep.mubr.msk.bf16.mxu0 %vm952_vm2, %v3805_v9  ;;  %4304 = vmatmul.mubr.msk.bf16.vlgmr.msra.gmra.mrb[0].mxu1 %vm952_vm2, %v3805_v9  ;;  %v564_v22 = vsel %vm5095_vm3, %v559_v10, %v563_v56  ;;  %v587_v24 = vrot.slane %v585_v12, 5  ;;  %v600_v26 = vshrl.u32 %v5134_v0, 16  ;;  %v569_v27 = vrot.slane %v568_v17, 4 }
  0x25   : > { %4336 = vmatpush3.bf16.msra.mxu1 %v5050_v4  ;;  %v591_v28 = vrot.slane %v589_v19, 4  ;;  %v597_v31 = vrot.slane %v595_v20, 5  ;;  %v603_v32 = vshll.u32 %v5134_v0, 16  ;;  %v582_v33 = vor.u32 %v581_v23, %v578_v18 }
  0x26   : > { %v602_v36 = vrot.slane %v600_v26, 4  ;;  %v609_v37 = vshll.u32 %v5147_v21, 16  ;;  %v613_v38 = vshrl.u32 %v5147_v21, 16  ;;  %4337 = vmatprep.subr.bf16.mxu1 %v4919_v14  ;;  %v574_v40 = vsel %vm5095_vm3, %v569_v27, %v573_v3 }
  0x27   : > { %v592_v4 = vor.u32 %v591_v28, %v587_v24  ;;  %v605_v43 = vrot.slane %v603_v32, 5  ;;  %v619_v44 = vshll.u32 %v5154_v25, 16  ;;  %v5175_v47 = vcombine.low %v564_v22, %v574_v40  ;;  %v5221_v28 = vld [vmem:[%s5056_s14 + $0x50] sm:$0x1] }
  0x28   : > { %v583_v48 = vrot.slane %v582_v33, 4  ;;  %v611_v50 = vrot.slane %v609_v37, 5  ;;  %v615_v51 = vrot.slane %v613_v38, 4  ;;  %v624_v60 = vshrl.u32 %v5162_v39, 16  ;;  %v5226_v33 = vld [vmem:[%s5056_s14 + $0x54] sm:$0xf] }
  0x29   : > { %6229 = vst [vmem:[#allocation2_spill] sm:$0xff] %v5175_v47  ;;  %v593_v56 = vrot.slane %v592_v4, 4  ;;  %v606_v57 = vor.u32 %v605_v43, %v602_v36  ;;  %v621_v58 = vrot.slane %v619_v44, 5  ;;  %4338 = vmatpush3.bf16.msra.mxu1 %v4919_v14  ;;  %4448 = vmatmul.mubr.msk.bf16.vlgmr.msra.gmra.mrb[0].mxu0 %vm952_vm2, %v5175_v47  ;;  %v627_v3 = vshll.u32 %v5162_v39, 16  ;;  %6231 = vst [vmem:[#allocation4_spill] sm:$0xff] %v5226_v33 }
  0x2a   : > { %4307 = vmatprep.mubr.msk.bf16.mxu1 %vm952_vm2, %v5175_v47  ;;  %v588_v1 = vsel %vm5095_vm3, %v583_v48, %v587_v24  ;;  %v616_v2 = vor.u32 %v615_v51, %v611_v50  ;;  %v633_v8 = vshll.u32 %v5168_v45, 16  ;;  %4480 = vmatpush3.bf16.msra.mxu0 %v5061_v5  ;;  %v626_v11 = vrot.slane %v624_v60, 4  ;;  %v5208_v5 = vld [vmem:[%s6193_s3 + $0x60] sm:$0xff]   ;;  %v5231_v4 = vld [vmem:[%s5056_s14 + $0x58] sm:$0xf] }
  0x2b   : > { %v598_v9 = vsel %vm5095_vm3, %v593_v56, %v597_v31  ;;  %v607_v10 = vrot.slane %v606_v57, 4  ;;  %v637_v12 = vshrl.u32 %v5168_v45, 16  ;;  %4371 = vmatprep.subr.bf16.mxu1 %v5173_v46  ;;  %v629_v18 = vrot.slane %v627_v3, 5  ;;  %4481 = vmatprep.subr.bf16.mxu0 %v4918_v53 }
  0x2c   : > { %v5203_v14 = vcombine.low %v588_v1, %v598_v9  ;;  %v617_v17 = vrot.slane %v616_v2, 4  ;;  %v635_v19 = vrot.slane %v633_v8, 5  ;;  %v643_v23 = vshll.u32 %v5178_v52, 16  ;;  %v5245_v2 = vld [vmem:[%s5056_s14 + $0x5c] sm:$0x1] }
  0x2d   : > { %v612_v20 = vsel %vm5095_vm3, %v607_v10, %v611_v50  ;;  %v639_v22 = vrot.slane %v637_v12, 4  ;;  %v648_v24 = vshrl.u32 %v5184_v55, 16  ;;  %v630_v27 = vor.u32 %v629_v18, %v626_v11  ;;  %v5249_v8 = vld [vmem:[%s5056_s14 + $0x60] sm:$0xf] }
  0x2e   : > { %6230 = vst [vmem:[#allocation3_spill] sm:$0xff] %v5203_v14  ;;  %4451 = vmatprep.mubr.msk.bf16.mxu0 %vm952_vm2, %v5203_v14  ;;  %4308 = vmatmul.mubr.msk.bf16.gmra.mrb[4].mxu1 %vm952_vm2, %v5203_v14  ;;  %v622_v26 = vsel %vm5095_vm3, %v617_v17, %v621_v58  ;;  %v651_v31 = vshll.u32 %v5184_v55, 16  ;;  %v657_v32 = vshll.u32 %v5188_v61, 16  ;;  %v645_v38 = vrot.slane %v643_v23, 5  ;;  %v5254_v17 = vld [vmem:[%s5056_s14 + $0x64] sm:$0xf] }
  0x2f   : > { %v5228_v36 = vcombine.low %v612_v20, %v622_v26  ;;  %v640_v37 = vor.u32 %v639_v22, %v635_v19  ;;  %v650_v40 = vrot.slane %v648_v24, 4  ;;  %4482 = vmatpush3.bf16.msra.mxu0 %v4918_v53  ;;  %v631_v43 = vrot.slane %v630_v27, 4  ;;  %v5468_v14 = vld [vmem:[%s5056_s14 + $0xa8] sm:$0xf] }
  0x30   : > { %v653_v44 = vrot.slane %v651_v31, 5  ;;  %v659_v48 = vrot.slane %v657_v32, 5  ;;  %v661_v50 = vshrl.u32 %v5188_v61, 16  ;;  %4515 = vmatprep.subr.bf16.mxu0 %v5208_v5  ;;  %v667_v56 = vshll.u32 %v5221_v28, 16 }
  0x31   : > { %6232 = vst [vmem:[#allocation5_spill] sm:$0xff] %v5228_v36  ;;  %4311 = vmatprep.mubr.msk.bf16.mxu1 %vm952_vm2, %v5228_v36  ;;  %v641_v51 = vrot.slane %v640_v37, 4  ;;  %v672_v53 = vshrl.u32 %v5226_v33, 16  ;;  %v675_v57 = vshll.u32 %v5226_v33, 16  ;;  %4452 = vmatmul.mubr.msk.bf16.gmra.mrb[4].mxu0 %vm952_vm2, %v5228_v36  ;;  %v636_v58 = vsel %vm5095_vm3, %v631_v43, %v635_v19  ;;  %v5268_v37 = vld [vmem:[%s5056_s14 + $0x68] sm:$0x1] }
  0x32   : > { %v654_v60 = vor.u32 %v653_v44, %v650_v40  ;;  %v663_v1 = vrot.slane %v661_v50, 4  ;;  %v681_v3 = vshll.u32 %v5231_v4, 16  ;;  %v669_v10 = vrot.slane %v667_v56, 5  ;;  %v5444_v36 = vld [vmem:[%s5056_s14 + $0xa0] sm:$0xf] }
  0x33   : > { %v646_v9 = vsel %vm5095_vm3, %v641_v51, %v645_v38  ;;  %v674_v11 = vrot.slane %v672_v53, 4  ;;  %v677_v12 = vrot.slane %v675_v57, 5  ;;  %v685_v24 = vshrl.u32 %v5231_v4, 16 }
  0x34   : > { %v5256_v18 = vcombine.low %v636_v58, %v646_v9  ;;  %v655_v19 = vrot.slane %v654_v60, 4  ;;  %v664_v20 = vor.u32 %v663_v1, %v659_v48  ;;  %v683_v22 = vrot.slane %v681_v3, 5 }
  0x35   : > { %v678_v23 = vor.u32 %v677_v12, %v674_v11  ;;  %v691_v26 = vshll.u32 %v5245_v2, 16  ;;  %v696_v27 = vshrl.u32 %v5249_v8, 16  ;;  %v699_v38 = vshll.u32 %v5249_v8, 16 }
  0x36   : > { %6233 = vst [vmem:[#allocation6_spill] sm:$0xff] %v5256_v18  ;;  %4455 = vmatprep.mubr.msk.bf16.mxu0 %vm952_vm2, %v5256_v18  ;;  %4312 = vmatmul.mubr.msk.bf16.gmra.mrb[8].mxu1 %vm952_vm2, %v5256_v18  ;;  %v660_v31 = vsel %vm5095_vm3, %v655_v19, %v659_v48  ;;  %v665_v32 = vrot.slane %v664_v20, 4  ;;  %v705_v40 = vshll.u32 %v5254_v17, 16  ;;  %v687_v44 = vrot.slane %v685_v24, 4  ;;  %v5276_v48 = vld [vmem:[%s5056_s14 + $0x6c] sm:$0xf] }
  0x37   : > { %v679_v43 = vrot.slane %v678_v23, 4  ;;  %v693_v50 = vrot.slane %v691_v26, 5  ;;  %v698_v51 = vrot.slane %v696_v27, 4  ;;  %v701_v53 = vrot.slane %v699_v38, 5  ;;  %v5292_v23 = vld [vmem:[%s5056_s14 + $0x70] sm:$0xf] }
  0x38   : > { %v670_v56 = vsel %vm5095_vm3, %v665_v32, %v669_v10  ;;  %v707_v57 = vrot.slane %v705_v40, 5  ;;  %v709_v58 = vshrl.u32 %v5254_v17, 16  ;;  %v688_v3 = vor.u32 %v687_v44, %v683_v22  ;;  %v5299_v26 = vld [vmem:[%s5056_s14 + $0x74] sm:$0x1]  ;;  %v5306_v40 = vld [vmem:[%s5056_s14 + $0x78] sm:$0xf] }
  0x39   : > { %v5278_v60 = vcombine.low %v660_v31, %v670_v56  ;;  %v684_v1 = vsel %vm5095_vm3, %v679_v43, %v683_v22  ;;  %v715_v9 = vshll.u32 %v5268_v37, 16  ;;  %v702_v10 = vor.u32 %v701_v53, %v698_v51 }
  0x3a   : > { %v711_v12 = vrot.slane %v709_v58, 4  ;;  %v3873_v19 = vrot.slane %v5076_v13, 9  ;;  %v1491_v20 = vrot.slane %v5079_v15, 5  ;;  %v689_v22 = vrot.slane %v688_v3, 4 }
  0x3b   : > { %6234 = vst [vmem:[#allocation7_spill] sm:$0xff] %v5278_v60  ;;  %4456 = vmatmul.mubr.msk.bf16.gmra.mrb[8].mxu0 %vm952_vm2, %v5278_v60  ;;  %4315 = vmatprep.mubr.msk.bf16.mxu1 %vm952_vm2, %v5278_v60  ;;  %v717_v24 = vrot.slane %v715_v9, 5  ;;  %v720_v27 = vshrl.u32 %v5276_v48, 16  ;;  %v723_v31 = vshll.u32 %v5276_v48, 16  ;;  %v703_v32 = vrot.slane %v702_v10, 4 }
  0x3c   : > { %v712_v13 = vor.u32 %v711_v12, %v707_v57  ;;  %v1492_v15 = vsel %vm5285_vm6, %v3873_v19, %v1491_v20  ;;  %v1493_v38 = vrot.slane %v1491_v20, 4  ;;  %v694_v43 = vsel %vm5095_vm3, %v689_v22, %v693_v50  ;;  %v5323_v20 = vld [vmem:[%s5056_s14 + $0x7c] sm:$0xf]  ;;  %v5336_v22 = vld [vmem:[%s5056_s14 + $0x80] sm:$0x1] }
  0x3d   : > { %v722_v44 = vrot.slane %v720_v27, 4  ;;  %v725_v51 = vrot.slane %v723_v31, 5  ;;  %v729_v56 = vshll.u32 %v5292_v23, 16  ;;  %v5311_v53 = vcombine.low %v684_v1, %v694_v43  ;;  %v5437_v60 = vld [vmem:[%s5056_s14 + $0x9c] sm:$0xf] }
  0x3e   : > { %v708_v58 = vsel %vm5095_vm3, %v703_v32, %v707_v57  ;;  %v713_v3 = vrot.slane %v712_v13, 4  ;;  %v1495_v9 = vsel %vm5285_vm6, %v1493_v38, %v1494_v41  ;;  %v733_v19 = vshrl.u32 %v5292_v23, 16 }
  0x3f   : > { %6237 = vst [vmem:[#allocation8_spill] sm:$0xff] %v5311_v53  ;;  %v5319_v10 = vcombine.low %v1492_v15, %v1495_v9  ;;  %v726_v12 = vor.u32 %v725_v51, %v722_v44  ;;  %v731_v50 = vrot.slane %v729_v56, 5  ;;  %4459 = vmatprep.mubr.msk.bf16.mxu0 %vm952_vm2, %v5311_v53  ;;  %4316 = vmatmul.mubr.msk.bf16.gmra.mrb[12].mxu1 %vm952_vm2, %v5311_v53  ;;  %v739_v41 = vshll.u32 %v5299_v26, 16  ;;  %v5351_v44 = vld [vmem:[%s5056_s14 + $0x84] sm:$0xf] }
  0x40   : > { %v718_v16 = vsel %vm5095_vm3, %v713_v3, %v717_v24  ;;  %v3874_v57 = vrot.slane %v5091_v29, 9  ;;  %v1500_v1 = vrot.slane %v1498_v62, 4  ;;  %v735_v32 = vrot.slane %v733_v19, 4 }
  0x41   : > { %6238 = vst [vmem:[#allocation9_spill] sm:$0xff] %v5319_v10  ;;  %v5338_v27 = vcombine.low %v708_v58, %v718_v16  ;;  %v727_v31 = vrot.slane %v726_v12, 4  ;;  %v744_v13 = vshrl.u32 %v5306_v40, 16  ;;  %v741_v15 = vrot.slane %v739_v41, 5  ;;  %v5367_v12 = vld [vmem:[%s5056_s14 + $0x88] sm:$0xf] }
  0x42   : > { %v1499_v24 = vsel %vm5285_vm6, %v3874_v57, %v1498_v62  ;;  %v1502_v38 = vsel %vm5285_vm6, %v1500_v1, %v1501_v63  ;;  %v747_v43 = vshll.u32 %v5306_v40, 16  ;;  %v736_v56 = vor.u32 %v735_v32, %v731_v50 }
  0x43   : > { %6239 = vst [vmem:[#allocation10_spill] sm:$0xff] %v5338_v27  ;;  %4460 = vmatmul.mubr.msk.bf16.gmra.mrb[12].mxu0 %vm952_vm2, %v5338_v27  ;;  %4319 = vmatprep.mubr.msk.bf16.mxu1 %vm952_vm2, %v5338_v27  ;;  %v732_v51 = vsel %vm5095_vm3, %v727_v31, %v731_v50  ;;  %v5359_v62 = vcombine.low %v1499_v24, %v1502_v38  ;;  %v746_v42 = vrot.slane %v744_v13, 4  ;;  %v753_v58 = vshll.u32 %v5323_v20, 16 }
  0x44   : > { %4483 = vmatprep.mubr.msk.bf16.mxu0 %vm952_vm2, %v5319_v10  ;;  %v749_v63 = vrot.slane %v747_v43, 5  ;;  %v757_v3 = vshrl.u32 %v5323_v20, 16  ;;  %v763_v9 = vshll.u32 %v5336_v22, 16  ;;  %v737_v19 = vrot.slane %v736_v56, 4  ;;  %v5377_v43 = vld [vmem:[%s5056_s14 + $0x8c] sm:$0x1] }
  0x45   : > { %6240 = vst [vmem:[#allocation11_spill] sm:$0xff] %v5359_v62  ;;  %v3875_v16 = vrot.slane %v5118_v49, 9  ;;  %v1505_v50 = vrot.slane %v5121_v54, 5  ;;  %v1508_v41 = vrot.slane %v5126_v59, 5  ;;  %v755_v1 = vrot.slane %v753_v58, 5 }
  0x46   : > { %v750_v57 = vor.u32 %v749_v63, %v746_v42  ;;  %v759_v31 = vrot.slane %v757_v3, 4  ;;  %v765_v32 = vrot.slane %v763_v9, 5  ;;  %v742_v13 = vsel %vm5095_vm3, %v737_v19, %v741_v15  ;;  %v4923_v9 = vld [vmem:[%s6193_s3 + $0x68] sm:$0xff]  }
  0x47   : > { %v1506_v24 = vsel %vm5285_vm6, %v3875_v16, %v1505_v50  ;;  %v1507_v38 = vrot.slane %v1505_v50, 4  ;;  %v768_v56 = vshrl.u32 %v5351_v44, 16  ;;  %v5380_v27 = vcombine.low %v732_v51, %v742_v13 }
  0x48   : > { %v751_v53 = vrot.slane %v750_v57, 4  ;;  %v760_v59 = vor.u32 %v759_v31, %v755_v1  ;;  %v771_v42 = vshll.u32 %v5351_v44, 16  ;;  %v777_v15 = vshll.u32 %v5367_v12, 16 }
  0x49   : > { %6241 = vst [vmem:[#allocation12_spill] sm:$0xff] %v5380_v27  ;;  %v1509_v63 = vsel %vm5285_vm6, %v1507_v38, %v1508_v41  ;;  %v770_v58 = vrot.slane %v768_v56, 4  ;;  %v781_v3 = vshrl.u32 %v5367_v12, 16  ;;  %4320 = vmatmul.mubr.msk.bf16.gmra.mrb[16].mxu1 %vm952_vm2, %v5380_v27  ;;  %v5397_v41 = vld [vmem:[%s5056_s14 + $0x90] sm:$0xf]  ;;  %v787_v13 = vshll.u32 %v5377_v43, 16 }
  0x4a   : > { %v756_v51 = vsel %vm5095_vm3, %v751_v53, %v755_v1  ;;  %v761_v19 = vrot.slane %v760_v59, 4  ;;  %v5394_v16 = vcombine.low %v1506_v24, %v1509_v63  ;;  %v773_v50 = vrot.slane %v771_v42, 5  ;;  %v5411_v59 = vld [vmem:[%s5056_s14 + $0x94] sm:$0xf] }
  0x4b   : > { %4484 = vmatmul.mubr.msk.bf16.vlgmr.msra.gmra.mrb[0].mxu0 %vm952_vm2, %v5359_v62  ;;  %v779_v57 = vrot.slane %v777_v15, 5  ;;  %v783_v31 = vrot.slane %v781_v3, 4  ;;  %v3876_v38 = vrot.slane %v5134_v0, 9  ;;  %v1512_v24 = vrot.slane %v5147_v21, 5  ;;  %v5416_v3 = vld [vmem:[%s5056_s14 + $0x98] sm:$0x1] }
  0x4c   : > { %6242 = vst [vmem:[#allocation13_spill] sm:$0xff] %v5394_v16  ;;  %4516 = vmatpush3.bf16.msra.mxu0 %v5208_v5  ;;  %v766_v53 = vsel %vm5095_vm3, %v761_v19, %v765_v32  ;;  %4487 = vmatprep.mubr.msk.bf16.mxu0 %vm952_vm2, %v5394_v16  ;;  %v774_v1 = vor.u32 %v773_v50, %v770_v58  ;;  %v1515_v56 = vrot.slane %v5154_v25, 5  ;;  %v789_v15 = vrot.slane %v787_v13, 5  ;;  %v5422_v32 = vld [vmem:[%s6193_s3 + $0x70] sm:$0xff]  }
  0x4d   : > { %v5413_v42 = vcombine.low %v756_v51, %v766_v53  ;;  %v784_v63 = vor.u32 %v783_v31, %v779_v57  ;;  %v792_v5 = vshrl.u32 %v5397_v41, 16  ;;  %4517 = vmatprep.subr.bf16.mxu0 %v4923_v9  ;;  %6244 = vst [vmem:[#allocation15_spill] sm:$0xff] %v5422_v32  ;;  %v1513_v25 = vsel %vm5285_vm6, %v3876_v38, %v1512_v24 }
  0x4e   : > { %v775_v58 = vrot.slane %v774_v1, 4  ;;  %v1514_v19 = vrot.slane %v1512_v24, 4  ;;  %v795_v51 = vshll.u32 %v5397_v41, 16  ;;  %v801_v13 = vshll.u32 %v5411_v59, 16 }
  0x4f   : > { %6243 = vst [vmem:[#allocation14_spill] sm:$0xff] %v5413_v42  ;;  %4323 = vmatprep.mubr.msk.bf16.mxu1 %vm952_vm2, %v5413_v42  ;;  %v785_v50 = vrot.slane %v784_v63, 4  ;;  %v794_v31 = vrot.slane %v792_v5, 4  ;;  %v805_v53 = vshrl.u32 %v5411_v59, 16  ;;  %v811_v24 = vshll.u32 %v5416_v3, 16 }
  0x50   : > { %v780_v27 = vsel %vm5095_vm3, %v775_v58, %v779_v57  ;;  %v1516_v1 = vsel %vm5285_vm6, %v1514_v19, %v1515_v56  ;;  %v797_v38 = vrot.slane %v795_v51, 5  ;;  %4518 = vmatpush3.bf16.msra.mxu0 %v4923_v9  ;;  %v803_v42 = vrot.slane %v801_v13, 5 }
  0x51   : > { %v790_v63 = vsel %vm5095_vm3, %v785_v50, %v789_v15  ;;  %v5441_v5 = vcombine.low %v1513_v25, %v1516_v1  ;;  %v807_v18 = vrot.slane %v805_v53, 4  ;;  %4551 = vmatprep.subr.bf16.mxu0 %v5422_v32  ;;  %v813_v58 = vrot.slane %v811_v24, 5  ;;  %v5458_v50 = vld [vmem:[%s5056_s14 + $0xa4] sm:$0x1] }
  0x52   : > { %v5447_v57 = vcombine.low %v780_v27, %v790_v63  ;;  %v798_v56 = vor.u32 %v797_v38, %v794_v31  ;;  %v3877_v19 = vrot.slane %v5162_v39, 9  ;;  %v1519_v15 = vrot.slane %v5168_v45, 5 }
  0x53   : > { %6245 = vst [vmem:[#allocation16_spill] sm:$0xff] %v5441_v5  ;;  %4488 = vmatmul.mubr.msk.bf16.gmra.mrb[4].mxu0 %vm952_vm2, %v5441_v5  ;;  %v808_v9 = vor.u32 %v807_v18, %v803_v42  ;;  %v1522_v25 = vrot.slane %v5178_v52, 5  ;;  %v816_v51 = vshrl.u32 %v5437_v60, 16  ;;  %v819_v31 = vshll.u32 %v5437_v60, 16 }
  0x54   : > { %6246 = vst [vmem:[#allocation17_spill] sm:$0xff] %v5447_v57  ;;  %4324 = vmatmul.mubr.msk.bf16.gmra.mrb[20].mxu1 %vm952_vm2, %v5447_v57  ;;  %v799_v27 = vrot.slane %v798_v56, 4  ;;  %v825_v13 = vshll.u32 %v5444_v36, 16  ;;  %v829_v18 = vshrl.u32 %v5444_v36, 16  ;;  %v1520_v52 = vsel %vm5285_vm6, %v3877_v19, %v1519_v15 }
  0x55   : > { %v809_v53 = vrot.slane %v808_v9, 4  ;;  %v1521_v1 = vrot.slane %v1519_v15, 4  ;;  %v818_v38 = vrot.slane %v816_v51, 4  ;;  %v821_v63 = vrot.slane %v819_v31, 5  ;;  %v5477_v15 = vld [vmem:[%s5056_s14 + $0xac] sm:$0xf] }
  0x56   : > { %v804_v24 = vsel %vm5095_vm3, %v799_v27, %v803_v42  ;;  %v827_v56 = vrot.slane %v825_v13, 5  ;;  %v831_v57 = vrot.slane %v829_v18, 4  ;;  %v835_v9 = vshll.u32 %v5458_v50, 16 }
  0x57   : > { %v814_v47 = vsel %vm5095_vm3, %v809_v53, %v813_v58  ;;  %v1523_v5 = vsel %vm5285_vm6, %v1521_v1, %v1522_v25  ;;  %v3878_v19 = vrot.slane %v5184_v55, 9  ;;  %v822_v27 = vor.u32 %v821_v63, %v818_v38 }
  0x58   : > { %v5479_v51 = vcombine.low %v804_v24, %v814_v47  ;;  %v5481_v42 = vcombine.low %v1520_v52, %v1523_v5  ;;  %v832_v31 = vor.u32 %v831_v57, %v827_v56  ;;  %v837_v13 = vrot.slane %v835_v9, 5  ;;  %v5491_v5 = vld [vmem:[%s5056_s14 + $0xb0] sm:$0x1] }
  0x59   : > { %v1526_v18 = vrot.slane %v5188_v61, 5  ;;  %v1529_v58 = vrot.slane %v5221_v28, 5  ;;  %v840_v25 = vshrl.u32 %v5468_v14, 16  ;;  %v823_v47 = vrot.slane %v822_v27, 4 }
  0x5a   : > { %6247 = vst [vmem:[#allocation18_spill] sm:$0xff] %v5479_v51  ;;  %6248 = vst [vmem:[#allocation19_spill] sm:$0xff] %v5481_v42  ;;  %4327 = vmatprep.mubr.msk.bf16.mxu1 %vm952_vm2, %v5479_v51  ;;  %4491 = vmatprep.mubr.msk.bf16.mxu0 %vm952_vm2, %v5481_v42  ;;  %v833_v53 = vrot.slane %v832_v31, 4  ;;  %v843_v57 = vshll.u32 %v5468_v14, 16  ;;  %v849_v52 = vshll.u32 %v5477_v15, 16  ;;  %v853_v24 = vshrl.u32 %v5477_v15, 16 }
  0x5b   : > { %v1527_v28 = vsel %vm5285_vm6, %v3878_v19, %v1526_v18  ;;  %v1528_v1 = vrot.slane %v1526_v18, 4  ;;  %v842_v38 = vrot.slane %v840_v25, 4  ;;  %v828_v63 = vsel %vm5095_vm3, %v823_v47, %v827_v56  ;;  %v5503_v51 = vld [vmem:[%s5056_s14 + $0xb4] sm:$0xf]  ;;  %v5515_v47 = vld [vmem:[%s5056_s14 + $0xb8] sm:$0xf] }
  0x5c   : > { %v838_v9 = vsel %vm5095_vm3, %v833_v53, %v837_v13  ;;  %v845_v27 = vrot.slane %v843_v57, 5  ;;  %v851_v31 = vrot.slane %v849_v52, 5  ;;  %v855_v18 = vrot.slane %v853_v24, 4 }
  0x5d   : > { %v5505_v42 = vcombine.low %v828_v63, %v838_v9  ;;  %v1530_v19 = vsel %vm5285_vm6, %v1528_v1, %v1529_v58  ;;  %v859_v25 = vshll.u32 %v5491_v5, 16  ;;  %v3879_v56 = vrot.slane %v5226_v33, 9  ;;  %v5521_v58 = vld [vmem:[%s5056_s14 + $0xbc] sm:$0x1] }
  0x5e   : > { %v5510_v16 = vcombine.low %v1527_v28, %v1530_v19  ;;  %v846_v62 = vor.u32 %v845_v27, %v842_v38  ;;  %v1533_v13 = vrot.slane %v5231_v4, 5  ;;  %v856_v53 = vor.u32 %v855_v18, %v851_v31 }
  0x5f   : > { %6249 = vst [vmem:[#allocation20_spill] sm:$0xff] %v5505_v42  ;;  %4328 = vmatmul.mubr.msk.bf16.gmra.mrb[24].mxu1 %vm952_vm2, %v5505_v42  ;;  %v861_v57 = vrot.slane %v859_v25, 5  ;;  %v1536_v52 = vrot.slane %v5245_v2, 5  ;;  %v864_v1 = vshrl.u32 %v5503_v51, 16  ;;  %v867_v63 = vshll.u32 %v5503_v51, 16 }
  0x60   : > { %6250 = vst [vmem:[#allocation21_spill] sm:$0xff] %v5510_v16  ;;  %4492 = vmatmul.mubr.msk.bf16.gmra.mrb[8].mxu0 %vm952_vm2, %v5510_v16  ;;  %v847_v28 = vrot.slane %v846_v62, 4  ;;  %v1534_v38 = vsel %vm5285_vm6, %v3879_v56, %v1533_v13  ;;  %v1535_v24 = vrot.slane %v1533_v13, 4  ;;  %v857_v9 = vrot.slane %v856_v53, 4 }
  0x61   : > { %v866_v27 = vrot.slane %v864_v1, 4  ;;  %v873_v19 = vshll.u32 %v5515_v47, 16  ;;  %v877_v2 = vshrl.u32 %v5515_v47, 16  ;;  %v869_v42 = vrot.slane %v867_v63, 5 }
  0x62   : > { %v852_v18 = vsel %vm5095_vm3, %v847_v28, %v851_v31  ;;  %v1537_v25 = vsel %vm5285_vm6, %v1535_v24, %v1536_v52  ;;  %v883_v62 = vshll.u32 %v5521_v58, 16  ;;  %v862_v56 = vsel %vm5095_vm3, %v857_v9, %v861_v57 }
  0x63   : > { %v5538_v13 = vcombine.low %v1534_v38, %v1537_v25  ;;  %v875_v53 = vrot.slane %v873_v19, 5  ;;  %v879_v1 = vrot.slane %v877_v2, 4  ;;  %v5540_v16 = vcombine.low %v852_v18, %v862_v56 }
  0x64   : > { %v870_v10 = vor.u32 %v869_v42, %v866_v27  ;;  %v885_v32 = vrot.slane %v883_v62, 5  ;;  %v3880_v33 = vrot.slane %v5249_v8, 9  ;;  %v1540_v52 = vrot.slane %v5254_v17, 5 }
  0x65   : > { %4495 = vmatprep.mubr.msk.bf16.mxu0 %vm952_vm2, %v5538_v13  ;;  %v880_v31 = vor.u32 %v879_v1, %v875_v53  ;;  %v1543_v28 = vrot.slane %v5268_v37, 5  ;;  %v3881_v57 = vrot.slane %v5276_v48, 9  ;;  %4331 = vmatprep.mubr.msk.bf16.mxu1 %vm952_vm2, %v5540_v16  ;;  %v3838_v42 = vcombine.low %v5064_v6, %v5067_v7 }
  0x66   : > { %v871_v38 = vrot.slane %v870_v10, 4  ;;  %v1547_v24 = vrot.slane %v5292_v23, 5  ;;  %v1550_v63 = vrot.slane %v5299_v26, 5  ;;  %v1541_v27 = vsel %vm5285_vm6, %v3880_v33, %v1540_v52 }
  0x67   : > { %v881_v9 = vrot.slane %v880_v31, 4  ;;  %v1542_v19 = vrot.slane %v1540_v52, 4  ;;  %v1554_v37 = vrot.slane %v5323_v20, 5  ;;  %v3882_v6 = vrot.slane %v5306_v40, 9 }
  0x68   : > { %v876_v2 = vsel %vm5095_vm3, %v871_v38, %v875_v53  ;;  %v1548_v10 = vsel %vm5285_vm6, %v3881_v57, %v1547_v24  ;;  %v1549_v18 = vrot.slane %v1547_v24, 4  ;;  %v1557_v33 = vrot.slane %v5336_v22, 5 }
  0x69   : > { %v886_v7 = vsel %vm5095_vm3, %v881_v9, %v885_v32  ;;  %v1544_v26 = vsel %vm5285_vm6, %v1542_v19, %v1543_v28  ;;  %v1556_v25 = vrot.slane %v1554_v37, 4  ;;  %v3883_v31 = vrot.slane %v5351_v44, 9 }
  0x6a   : > { %v5567_v62 = vcombine.low %v876_v2, %v886_v7  ;;  %v5569_v56 = vcombine.low %v1541_v27, %v1544_v26  ;;  %v1551_v53 = vsel %vm5285_vm6, %v1549_v18, %v1550_v63  ;;  %v1561_v52 = vrot.slane %v5367_v12, 5  ;;  %v4931_v7 = vld [vmem:[%s6193_s3 + $0x28] sm:$0xff]  }
  0x6b   : > { %v5573_v1 = vcombine.low %v1548_v10, %v1551_v53  ;;  %v1564_v22 = vrot.slane %v5377_v43, 5  ;;  %v1555_v32 = vsel %vm5285_vm6, %v3882_v6, %v1554_v37  ;;  %v1558_v28 = vsel %vm5285_vm6, %v1556_v25, %v1557_v33 }
  0x6c   : > { %4332 = vmatmul.mubr.msk.bf16.gmra.mrb[28].mxu1 %vm952_vm2, %v5567_v62  ;;  %4496 = vmatmul.mubr.msk.bf16.gmra.mrb[12].mxu0 %vm952_vm2, %v5569_v56  ;;  %v1563_v57 = vrot.slane %v1561_v52, 4  ;;  %v1568_v38 = vrot.slane %v5411_v59, 5  ;;  %v1575_v24 = vrot.slane %v5444_v36, 5  ;;  %v1562_v63 = vsel %vm5285_vm6, %v3883_v31, %v1561_v52 }
  0x6d   : > { %4339 = vmatprep.mubr.msk.bf16.mxu1 %vm952_vm2, %v3838_v42  ;;  %4499 = vmatprep.mubr.msk.bf16.mxu0 %vm952_vm2, %v5573_v1  ;;  %v5595_v42 = vcombine.low %v1555_v32, %v1558_v28  ;;  %v3884_v9 = vrot.slane %v5397_v41, 9  ;;  %v1571_v19 = vrot.slane %v5416_v3, 5  ;;  %v5601_v37 = vcombine.low %v5091_v29, %v5104_v35 }
  0x6e   : > { %v1565_v43 = vsel %vm5285_vm6, %v1563_v57, %v1564_v22  ;;  %v1570_v27 = vrot.slane %v1568_v38, 4  ;;  %v3885_v2 = vrot.slane %v5437_v60, 9  ;;  %v1577_v18 = vrot.slane %v1575_v24, 4 }
  0x6f   : > { %v5604_v10 = vcombine.low %v1562_v63, %v1565_v43  ;;  %v1578_v6 = vrot.slane %v5458_v50, 5  ;;  %v1582_v26 = vrot.slane %v5477_v15, 5  ;;  %v1569_v29 = vsel %vm5285_vm6, %v3884_v9, %v1568_v38 }
  0x70   : > { %v1572_v35 = vsel %vm5285_vm6, %v1570_v27, %v1571_v19  ;;  %v5625_v3 = vcombine.low %v5118_v49, %v5121_v54  ;;  %v1576_v50 = vsel %vm5285_vm6, %v3885_v2, %v1575_v24  ;;  %v5631_v25 = vcombine.low %v5249_v8, %v5254_v17  ;;  %v5646_v54 = vld [vmem:[%s6193_s3 + $0x30] sm:$0xff]  }
  0x71   : > { %v3886_v33 = vrot.slane %v5468_v14, 9  ;;  %v1589_v53 = vrot.slane %v5515_v47, 5  ;;  %v5641_v49 = vcombine.low %v5276_v48, %v5292_v23  ;;  %v5648_v8 = vcombine.low %v1569_v29, %v1572_v35 }
  0x72   : > { %v1584_v17 = vrot.slane %v1582_v26, 4  ;;  %v1585_v31 = vrot.slane %v5491_v5, 5  ;;  %v5656_v52 = vcombine.low %v5306_v40, %v5323_v20  ;;  %v5660_v48 = vcombine.low %v5351_v44, %v5367_v12 }
  0x73   : > { %v5664_v23 = vcombine.low %v5397_v41, %v5411_v59  ;;  %v5668_v22 = vcombine.low %v5437_v60, %v5444_v36  ;;  %v5672_v5 = vcombine.low %v5468_v14, %v5477_v15  ;;  %v5676_v40 = vcombine.low %v5134_v0, %v5147_v21  ;;  %v5686_v60 = vld [vmem:[%s401_s18 + $0x4] sm:$0xf] }
  0x74   : > { %4340 = vmatmul.mubr.msk.bf16.vlgmr.msra.gmra.mrb[0].mxu1 %vm952_vm2, %v5101_v34  ;;  %4500 = vmatmul.mubr.msk.bf16.gmra.mrb[16].mxu0 %vm952_vm2, %v5595_v42  ;;  %v5682_v44 = vcombine.low %v5503_v51, %v5515_v47  ;;  %v3887_v12 = vrot.slane %v5503_v51, 9  ;;  %v1591_v41 = vrot.slane %v1589_v53, 4  ;;  %v1592_v36 = vrot.slane %v5521_v58, 5  ;;  %v5706_v51 = vld [vmem:[%s401_s18] sm:$0xf] }
  0x75   : > { %4372 = vmatpush3.bf16.msra.mxu1 %v5173_v46  ;;  %4343 = vmatprep.mubr.msk.bf16.mxu1 %vm952_vm2, %v5601_v37  ;;  %v1579_v46 = vsel %vm5285_vm6, %v1577_v18, %v1578_v6  ;;  %v1583_v0 = vsel %vm5285_vm6, %v3886_v33, %v1582_v26  ;;  %v1586_v21 = vsel %vm5285_vm6, %v1584_v17, %v1585_v31  ;;  %v2361_v14 = vrot.slane %v5686_v60, 5  ;;  %v492_v47 = vld [vmem:[%s401_s18 + $0x8] sm:$0x1] }
  0x76   : > { %4503 = vmatprep.mubr.msk.bf16.mxu0 %vm952_vm2, %v5604_v10  ;;  %4373 = vmatprep.subr.bf16.mxu1 %v4931_v7  ;;  %v5678_v20 = vcombine.low %v1576_v50, %v1579_v46  ;;  %v1590_v59 = vsel %vm5285_vm6, %v3887_v12, %v1589_v53  ;;  %v1593_v15 = vsel %vm5285_vm6, %v1591_v41, %v1592_v36  ;;  %v2119_v57 = vshrl.u32 %v5706_v51, 16  ;;  %v6251_v46 = vld [vmem:[#allocation4_spill] sm:$0xff]  ;;  %v6252_v41 = vld [vmem:[#allocation15_spill] sm:$0xff]  ;;  %v4945_v36 = vld [vmem:[%s6193_s3 + $0x80] sm:$0xff]  }
  0x77   : > { %v5710_v58 = vcombine.low %v5162_v39, %v5168_v45  ;;  %v5712_v32 = vcombine.low %v1583_v0, %v1586_v21  ;;  %v5716_v28 = vcombine.low %v5184_v55, %v5188_v61  ;;  %v2122_v38 = vshll.u32 %v5706_v51, 16  ;;  %v4947_v0 = vld [vmem:[%s5056_s14 + $0x4] sm:$0xf] }
  0x78   : > { %v2128_v24 = vshll.u32 %v5686_v60, 16  ;;  %v2132_v63 = vshrl.u32 %v5686_v60, 16  ;;  %v5722_v43 = vcombine.low %v1590_v59, %v1593_v15  ;;  %v3972_v9 = vrot.slane %v5706_v51, 9  ;;  %v4949_v15 = vld [vmem:[%s5056_s14] sm:$0xf] }
  0x79   : > { %4374 = vmatpush3.bf16.msra.mxu1 %v4931_v7  ;;  %v2363_v39 = vrot.slane %v2361_v14, 4  ;;  %v2364_v45 = vrot.slane %v492_v47, 5  ;;  %v2121_v27 = vrot.slane %v2119_v57, 4  ;;  %v2124_v19 = vrot.slane %v2122_v38, 5 }
  0x7a   : > { %4407 = vmatprep.subr.bf16.mxu1 %v5646_v54  ;;  %v2130_v2 = vrot.slane %v2128_v24, 5  ;;  %v2134_v18 = vrot.slane %v2132_v63, 4  ;;  %v2138_v6 = vshll.u32 %v492_v47, 16  ;;  %v2362_v7 = vsel %vm5285_vm6, %v3972_v9, %v2361_v14  ;;  %v4948_v14 = vld [vmem:[%s5056_s14 + $0x8] sm:$0x1]  ;;  %v4944_v9 = vld [vmem:[%s6193_s3 + $0x38] sm:$0xff]  }
  0x7b   : > { %v2125_v55 = vor.u32 %v2124_v19, %v2121_v27  ;;  %v2365_v26 = vsel %vm5285_vm6, %v2363_v39, %v2364_v45  ;;  %v5739_v33 = vcombine.low %v6251_v46, %v5231_v4  ;;  %v4941_v4 = vld [vmem:[%s6193_s3 + $0x78] sm:$0xff]   ;;  %v1484_v21 = vrot.slane %v4947_v0, 5  ;;  %v6254_v45 = vld [vmem:[#allocation11_spill] sm:$0xff]  ;;  %v4950_v27 = vld [vmem:[%s6193_s3 + $0x40] sm:$0xff]  }
  0x7c   : > { %4344 = vmatmul.mubr.msk.bf16.gmra.mrb[4].mxu1 %vm952_vm2, %v5625_v3  ;;  %4504 = vmatmul.mubr.msk.bf16.gmra.mrb[20].mxu0 %vm952_vm2, %v5648_v8  ;;  %v2135_v61 = vor.u32 %v2134_v18, %v2130_v2  ;;  %v2140_v50 = vrot.slane %v2138_v6, 5  ;;  %v5741_v53 = vcombine.low %v2362_v7, %v2365_v26  ;;  %v1487_v59 = vrot.slane %v4948_v14, 5  ;;  %v6253_v39 = vld [vmem:[#allocation9_spill] sm:$0xff]  ;;  %v6257_v18 = vld [vmem:[#allocation19_spill] sm:$0xff]  ;;  %v6259_v6 = vld [vmem:[#allocation2_spill] sm:$0xff] }
  0x7d   : > { %4347 = vmatprep.mubr.msk.bf16.mxu1 %vm952_vm2, %v5676_v40  ;;  %4507 = vmatprep.mubr.msk.bf16.mxu0 %vm952_vm2, %v5678_v20  ;;  %v2126_v29 = vrot.slane %v2125_v55, 4  ;;  %v3872_v47 = vrot.slane %v4949_v15, 9  ;;  %v1486_v57 = vrot.slane %v1484_v21, 4  ;;  %v6255_v19 = vld [vmem:[#allocation13_spill] sm:$0xff]  ;;  %v4946_v7 = vld [vmem:[%s6193_s3 + $0x88] sm:$0xff]   ;;  %v6264_v46 = vld [vmem:[#allocation8_spill] sm:$0xff] }
  0x7e   : > { %v2136_v35 = vrot.slane %v2135_v61, 4  ;;  %v6258_v55 = vld [vmem:[#allocation21_spill] sm:$0xff]  ;;  %v6260_v26 = vld [vmem:[#allocation3_spill] sm:$0xff]  ;;  %v6269_v14 = vld [vmem:[#allocation18_spill] sm:$0xff]  ;;  %v4976_v11 = vmov 0.0  }
  0x7f   : > { %v2131_v17 = vsel %vm5095_vm3, %v2126_v29, %v2130_v2  ;;  %v1485_v38 = vsel %vm5285_vm6, %v3872_v47, %v1484_v21  ;;  %v1488_v24 = vsel %vm5285_vm6, %v1486_v57, %v1487_v59  ;;  %v5828_v2 = vcombine.low %v5706_v51, %v5686_v60  ;;  %v5844_v60 = vld [vmem:[%s5833_s10] sm:$0xf]  ;;  %v5847_v51 = vld [vmem:[%s5833_s10 + $0x4] sm:$0xf]  ;;  %v6261_v29 = vld [vmem:[#allocation5_spill] sm:$0xff] }
  0x80   : > { %v2141_v31 = vsel %vm5095_vm3, %v2136_v35, %v2140_v50  ;;  %v3892_v63 = vcombine.low %v1485_v38, %v1488_v24  ;;  %v4000_v61 = vcombine.low %v5844_v60, %v5847_v51  ;;  %v6262_v35 = vld [vmem:[#allocation6_spill] sm:$0xff]  ;;  %v6263_v50 = vld [vmem:[#allocation7_spill] sm:$0xff]  ;;  %v2804_v0 = vshll.u32 %v5844_v60, 16  ;;  %440 = vst.msk [vmem:[%s6005_s17] sm:$0x1] %vm439_vm7, %v4976_v11 }
  0x81   : > { %v5747_v12 = vcombine.low %v2131_v17, %v2141_v31  ;;  %v6265_v17 = vld [vmem:[#allocation10_spill] sm:$0xff]  ;;  %v6266_v31 = vld [vmem:[#allocation12_spill] sm:$0xff]  ;;  %v2814_v21 = vshrl.u32 %v5847_v51, 16  ;;  %v495_v38 = vld [vmem:[%s5833_s10 + $0x8] sm:$0x1]  ;;  %v3043_v30 = vrot.slane %v5847_v51, 5 }
  0x82   : > { %v2806_v15 = vrot.slane %v2804_v0, 5  ;;  %441 = vst.msk [vmem:[%s6011_s20] sm:$0x1] %vm439_vm7, %v4976_v11 }
  0x83   : > { %v2816_v57 = vrot.slane %v2814_v21, 4 }
  0x84   : > { %4348 = vmatmul.mubr.msk.bf16.gmra.mrb[8].mxu1 %vm952_vm2, %v5710_v58  ;;  %4508 = vmatmul.mubr.msk.bf16.gmra.mrb[24].mxu0 %vm952_vm2, %v5712_v32 }
  0x85   : > { %4351 = vmatprep.mubr.msk.bf16.mxu1 %vm952_vm2, %v5716_v28  ;;  %4511 = vmatprep.mubr.msk.bf16.mxu0 %vm952_vm2, %v5722_v43 }
  0x8c   : > { %4352 = vmatmul.mubr.msk.bf16.gmra.mrb[12].mxu1 %vm952_vm2, %v5739_v33  ;;  %4512 = vmatmul.mubr.msk.bf16.gmra.mrb[28].mxu0 %vm952_vm2, %v5741_v53 }
  0x8d   : > { %4355 = vmatprep.mubr.msk.bf16.mxu1 %vm952_vm2, %v5631_v25  ;;  %4519 = vmatprep.mubr.msk.bf16.mxu0 %vm952_vm2, %v5601_v37 }
  0x94   : > { %4356 = vmatmul.mubr.msk.bf16.gmra.mrb[16].mxu1 %vm952_vm2, %v5641_v49  ;;  %4520 = vmatmul.mubr.msk.bf16.vlgmr.msra.gmra.mrb[0].mxu0 %vm952_vm2, %v5625_v3 }
  0x95   : > { %4552 = vmatpush3.bf16.msra.mxu0 %v6252_v41  ;;  %4359 = vmatprep.mubr.msk.bf16.mxu1 %vm952_vm2, %v5656_v52  ;;  %v6268_v41 = vld [vmem:[#allocation17_spill] sm:$0xff] }
  0x96   : > { %4523 = vmatprep.mubr.msk.bf16.mxu0 %vm952_vm2, %v5676_v40  ;;  %4553 = vmatprep.subr.bf16.mxu0 %v4941_v4 }
  0x99   : > { %4554 = vmatpush3.bf16.msra.mxu0 %v4941_v4  ;;  %v6267_v4 = vld [vmem:[#allocation14_spill] sm:$0xff] }
  0x9a   : > { %4587 = vmatprep.subr.bf16.mxu0 %v4945_v36 }
  0x9c   : > { %4360 = vmatmul.mubr.msk.bf16.gmra.mrb[20].mxu1 %vm952_vm2, %v5660_v48  ;;  %4524 = vmatmul.mubr.msk.bf16.gmra.mrb[4].mxu0 %vm952_vm2, %v5710_v58 }
  0x9d   : > { %4363 = vmatprep.mubr.msk.bf16.mxu1 %vm952_vm2, %v5664_v23  ;;  %4527 = vmatprep.mubr.msk.bf16.mxu0 %vm952_vm2, %v5716_v28 }
  0xa4   : > { %4364 = vmatmul.mubr.msk.bf16.gmra.mrb[24].mxu1 %vm952_vm2, %v5668_v22  ;;  %4528 = vmatmul.mubr.msk.bf16.gmra.mrb[8].mxu0 %vm952_vm2, %v5739_v33 }
  0xa5   : > { %4367 = vmatprep.mubr.msk.bf16.mxu1 %vm952_vm2, %v5672_v5  ;;  %4531 = vmatprep.mubr.msk.bf16.mxu0 %vm952_vm2, %v5631_v25 }
  0xac   : > { %4368 = vmatmul.mubr.msk.bf16.gmra.mrb[28].mxu1 %vm952_vm2, %v5682_v44  ;;  %4532 = vmatmul.mubr.msk.bf16.gmra.mrb[12].mxu0 %vm952_vm2, %v5641_v49 }
  0xad   : > { %4375 = vmatprep.mubr.msk.bf16.mxu1 %vm952_vm2, %v3892_v63  ;;  %4535 = vmatprep.mubr.msk.bf16.mxu0 %vm952_vm2, %v5656_v52 }
  0xb4   : > { %4376 = vmatmul.mubr.msk.bf16.vlgmr.msra.gmra.mrb[0].mxu1 %vm952_vm2, %v6253_v39  ;;  %4536 = vmatmul.mubr.msk.bf16.gmra.mrb[16].mxu0 %vm952_vm2, %v5660_v48 }
  0xb5   : > { %4408 = vmatpush3.bf16.msra.mxu1 %v5646_v54  ;;  %4379 = vmatprep.mubr.msk.bf16.mxu1 %vm952_vm2, %v6254_v45  ;;  %v6256_v54 = vld [vmem:[#allocation16_spill] sm:$0xff] }
  0xb6   : > { %4539 = vmatprep.mubr.msk.bf16.mxu0 %vm952_vm2, %v5664_v23  ;;  %4409 = vmatprep.subr.bf16.mxu1 %v4944_v9 }
  0xb9   : > { %4410 = vmatpush3.bf16.msra.mxu1 %v4944_v9  ;;  %v2820_v9 = vshll.u32 %v495_v38, 16 }
  0xba   : > { %4623 = vmatprep.subr.bf16.mxu1 %v4950_v27 }
  0xbc   : > { %4380 = vmatmul.mubr.msk.bf16.gmra.mrb[4].mxu1 %vm952_vm2, %v6255_v19  ;;  %4540 = vmatmul.mubr.msk.bf16.gmra.mrb[20].mxu0 %vm952_vm2, %v5668_v22 }
  0xbd   : > { %4383 = vmatprep.mubr.msk.bf16.mxu1 %vm952_vm2, %v6256_v54  ;;  %4543 = vmatprep.mubr.msk.bf16.mxu0 %vm952_vm2, %v5672_v5 }
  0xc4   : > { %4384 = vmatmul.mubr.msk.bf16.gmra.mrb[8].mxu1 %vm952_vm2, %v6257_v18  ;;  %4544 = vmatmul.mubr.msk.bf16.gmra.mrb[24].mxu0 %vm952_vm2, %v5682_v44 }
  0xc5   : > { %4387 = vmatprep.mubr.msk.bf16.mxu1 %vm952_vm2, %v6258_v55  ;;  %4547 = vmatprep.mubr.msk.bf16.mxu0 %vm952_vm2, %v5828_v2 }
  0xcc   : > { %4388 = vmatmul.mubr.msk.bf16.gmra.mrb[12].mxu1 %vm952_vm2, %v5538_v13  ;;  %4548 = vmatmul.mubr.msk.bf16.gmra.mrb[28].mxu0 %vm952_vm2, %v4000_v61  ;;  %v2822_v61 = vrot.slane %v2820_v9, 5 }
  0xcd   : > { %4391 = vmatprep.mubr.msk.bf16.mxu1 %vm952_vm2, %v5569_v56  ;;  %4555 = vmatprep.mubr.msk.bf16.mxu0 %vm952_vm2, %v6259_v6 }
  0xd4   : > { %4392 = vmatmul.mubr.msk.bf16.gmra.mrb[16].mxu1 %vm952_vm2, %v5573_v1  ;;  %4556 = vmatmul.mubr.msk.bf16.vlgmr.msra.gmra.mrb[0].mxu0 %vm952_vm2, %v6260_v26 }
  0xd5   : > { %4588 = vmatpush3.bf16.msra.mxu0 %v4945_v36  ;;  %4395 = vmatprep.mubr.msk.bf16.mxu1 %vm952_vm2, %v5595_v42  ;;  %v2801_v36 = vshrl.u32 %v5844_v60, 16 }
  0xd6   : > { %4559 = vmatprep.mubr.msk.bf16.mxu0 %vm952_vm2, %v6261_v29  ;;  %4589 = vmatprep.subr.bf16.mxu0 %v4946_v7 }
  0xd7   : > { %v2803_v59 = vrot.slane %v2801_v36, 4 }
  0xd9   : > { %4590 = vmatpush3.bf16.msra.mxu0 %v4946_v7  ;;  %v2807_v24 = vor.u32 %v2806_v15, %v2803_v59 }
  0xdb   : > { %v2808_v39 = vrot.slane %v2807_v24, 4 }
  0xdc   : > { %4396 = vmatmul.mubr.msk.bf16.gmra.mrb[20].mxu1 %vm952_vm2, %v5604_v10  ;;  %4560 = vmatmul.mubr.msk.bf16.gmra.mrb[4].mxu0 %vm952_vm2, %v6262_v35 }
  0xdd   : > { %4399 = vmatprep.mubr.msk.bf16.mxu1 %vm952_vm2, %v5648_v8  ;;  %4563 = vmatprep.mubr.msk.bf16.mxu0 %vm952_vm2, %v6263_v50 }
  0xe4   : > { %4400 = vmatmul.mubr.msk.bf16.gmra.mrb[24].mxu1 %vm952_vm2, %v5678_v20  ;;  %4564 = vmatmul.mubr.msk.bf16.gmra.mrb[8].mxu0 %vm952_vm2, %v6264_v46 }
  0xe5   : > { %4403 = vmatprep.mubr.msk.bf16.mxu1 %vm952_vm2, %v5712_v32  ;;  %4567 = vmatprep.mubr.msk.bf16.mxu0 %vm952_vm2, %v6265_v17 }
  0xec   : > { %4404 = vmatmul.mubr.msk.bf16.gmra.mrb[28].mxu1 %vm952_vm2, %v5722_v43  ;;  %4568 = vmatmul.mubr.msk.bf16.gmra.mrb[12].mxu0 %vm952_vm2, %v6266_v31 }
  0xed   : > { %4411 = vmatprep.mubr.msk.bf16.mxu1 %vm952_vm2, %v5101_v34  ;;  %4571 = vmatprep.mubr.msk.bf16.mxu0 %vm952_vm2, %v6267_v4  ;;  %v2810_v34 = vshll.u32 %v5847_v51, 16 }
  0xef   : > { %v2812_v47 = vrot.slane %v2810_v34, 5 }
  0xf1   : > { %v2817_v63 = vor.u32 %v2816_v57, %v2812_v47 }
  0xf4   : > { %4412 = vmatmul.mubr.msk.bf16.vlgmr.msra.gmra.mrb[0].mxu1 %vm952_vm2, %v5601_v37  ;;  %4572 = vmatmul.mubr.msk.bf16.gmra.mrb[16].mxu0 %vm952_vm2, %v6268_v41  ;;  %v4951_v37 = vld [vmem:[%s6193_s3 + $0x48] sm:$0xff]  }
  0xf5   : > { %4625 = vmatpush3.bf16.msra.mxu1 %v4950_v27  ;;  %4415 = vmatprep.mubr.msk.bf16.mxu1 %vm952_vm2, %v5625_v3  ;;  %v6270_v3 = vld [vmem:[#allocation20_spill] sm:$0xff]  ;;  %v2818_v27 = vrot.slane %v2817_v63, 4 }
  0xf6   : > { %4575 = vmatprep.mubr.msk.bf16.mxu0 %vm952_vm2, %v6269_v14  ;;  %4624 = vmatprep.subr.bf16.mxu1 %v4951_v37 }
  0xf9   : > { %4626 = vmatpush3.bf16.msra.mxu1 %v4951_v37 }
  0xfc   : > { %4416 = vmatmul.mubr.msk.bf16.gmra.mrb[4].mxu1 %vm952_vm2, %v5676_v40  ;;  %4576 = vmatmul.mubr.msk.bf16.gmra.mrb[20].mxu0 %vm952_vm2, %v6270_v3  ;;  %v2813_v40 = vsel %vm5095_vm3, %v2808_v39, %v2812_v47 }
  0xfd   : > { %4419 = vmatprep.mubr.msk.bf16.mxu1 %vm952_vm2, %v5710_v58  ;;  %4579 = vmatprep.mubr.msk.bf16.mxu0 %vm952_vm2, %v5540_v16  ;;  %v2823_v58 = vsel %vm5095_vm3, %v2818_v27, %v2822_v61 }
  0xfe   : > { %v4023_v6 = vcombine.low %v2813_v40, %v2823_v58 }
 0x104   : > { %4420 = vmatmul.mubr.msk.bf16.gmra.mrb[8].mxu1 %vm952_vm2, %v5716_v28  ;;  %4580 = vmatmul.mubr.msk.bf16.gmra.mrb[24].mxu0 %vm952_vm2, %v5567_v62 }
 0x105   : > { %4423 = vmatprep.mubr.msk.bf16.mxu1 %vm952_vm2, %v5739_v33  ;;  %4583 = vmatprep.mubr.msk.bf16.mxu0 %vm952_vm2, %v5747_v12 }
 0x10c   : > { %4424 = vmatmul.mubr.msk.bf16.gmra.mrb[12].mxu1 %vm952_vm2, %v5631_v25  ;;  %4584 = vmatmul.mubr.msk.bf16.gmra.mrb[28].mxu0 %vm952_vm2, %v4023_v6 }
 0x10d   : > { %4427 = vmatprep.mubr.msk.bf16.mxu1 %vm952_vm2, %v5641_v49  ;;  %4591 = vmatprep.mubr.msk.bf16.mxu0 %vm952_vm2, %v6254_v45 }
 0x114   : > { %4428 = vmatmul.mubr.msk.bf16.gmra.mrb[16].mxu1 %vm952_vm2, %v5656_v52  ;;  %4592 = vmatmul.mubr.msk.bf16.vlgmr.msra.gmra.mrb[0].mxu0 %vm952_vm2, %v6255_v19 }
 0x115   : > { %4431 = vmatprep.mubr.msk.bf16.mxu1 %vm952_vm2, %v5660_v48  ;;  %4595 = vmatprep.mubr.msk.bf16.mxu0 %vm952_vm2, %v6256_v54 }
 0x11c   : > { %4432 = vmatmul.mubr.msk.bf16.gmra.mrb[20].mxu1 %vm952_vm2, %v5664_v23  ;;  %4596 = vmatmul.mubr.msk.bf16.gmra.mrb[4].mxu0 %vm952_vm2, %v6257_v18 }
 0x11d   : > { %4435 = vmatprep.mubr.msk.bf16.mxu1 %vm952_vm2, %v5668_v22  ;;  %4599 = vmatprep.mubr.msk.bf16.mxu0 %vm952_vm2, %v6258_v55 }
 0x124   : > { %4436 = vmatmul.mubr.msk.bf16.gmra.mrb[24].mxu1 %vm952_vm2, %v5672_v5  ;;  %4600 = vmatmul.mubr.msk.bf16.gmra.mrb[8].mxu0 %vm952_vm2, %v5538_v13  ;;  %v4042_v13 = vrot.slane %v5844_v60, 9 }
 0x125   : > { %4439 = vmatprep.mubr.msk.bf16.mxu1 %vm952_vm2, %v5682_v44  ;;  %4603 = vmatprep.mubr.msk.bf16.mxu0 %vm952_vm2, %v5569_v56  ;;  %v3045_v56 = vrot.slane %v3043_v30, 4 }
 0x12c   : > { %4440 = vmatmul.mubr.msk.bf16.gmra.mrb[28].mxu1 %vm952_vm2, %v5828_v2  ;;  %4604 = vmatmul.mubr.msk.bf16.gmra.mrb[12].mxu0 %vm952_vm2, %v5573_v1  ;;  %v3046_v1 = vrot.slane %v495_v38, 5 }
 0x12d   : > { %4463 = vmatprep.mubr.msk.bf16.mxu1 %vm952_vm2, %v6266_v31  ;;  %4607 = vmatprep.mubr.msk.bf16.mxu0 %vm952_vm2, %v5595_v42  ;;  %v3044_v42 = vsel %vm5285_vm6, %v4042_v13, %v3043_v30 }
 0x134   : > { %4464 = vmatmul.mubr.msk.bf16.vlgmr.msra.gmra.mrb[16].mxu1 %vm952_vm2, %v6267_v4  ;;  %4608 = vmatmul.mubr.msk.bf16.gmra.mrb[16].mxu0 %vm952_vm2, %v5604_v10  ;;  %v3047_v10 = vsel %vm5285_vm6, %v3045_v56, %v3046_v1 }
 0x135   : > { %4467 = vmatprep.mubr.msk.bf16.mxu1 %vm952_vm2, %v6268_v41  ;;  %4611 = vmatprep.mubr.msk.bf16.mxu0 %vm952_vm2, %v5648_v8  ;;  %v4047_v25 = vcombine.low %v3044_v42, %v3047_v10 }
 0x13c   : > { %4468 = vmatmul.mubr.msk.bf16.gmra.mrb[20].mxu1 %vm952_vm2, %v6269_v14  ;;  %4612 = vmatmul.mubr.msk.bf16.gmra.mrb[20].mxu0 %vm952_vm2, %v5678_v20 }
 0x13d   : > { %4471 = vmatprep.mubr.msk.bf16.mxu1 %vm952_vm2, %v6270_v3  ;;  %4615 = vmatprep.mubr.msk.bf16.mxu0 %vm952_vm2, %v5712_v32 }
 0x144   : > { %4472 = vmatmul.mubr.msk.bf16.gmra.mrb[24].mxu1 %vm952_vm2, %v5540_v16  ;;  %4616 = vmatmul.mubr.msk.bf16.gmra.mrb[24].mxu0 %vm952_vm2, %v5722_v43 }
 0x145   : > { %4475 = vmatprep.mubr.msk.bf16.mxu1 %vm952_vm2, %v5567_v62  ;;  %4619 = vmatprep.mubr.msk.bf16.mxu0 %vm952_vm2, %v5741_v53 }
 0x14c   : > { %4476 = vmatmul.mubr.msk.bf16.gmra.mrb[28].mxu1 %vm952_vm2, %v5747_v12  ;;  %4620 = vmatmul.mubr.msk.bf16.gmra.mrb[28].mxu0 %vm952_vm2, %v4047_v25 }
 0x1c7   : > { %v4413_v16 = vpop.f32.mrb[0].mxu1 }
 0x1c8   : > { %v1959_v62 = vpop.f32.mrb[1].mxu1 }
 0x1c9   : > { %v4414_v49 = vpop.f32.mrb[2].mxu1 }
 0x1ca   : > { %v1962_v8 = vpop.f32.mrb[3].mxu1 }
 0x1cf   : > { %v4417_v52 = vpop.f32.mrb[4].mxu1 }
 0x1d0   : > { %v1975_v48 = vpop.f32.mrb[5].mxu1 }
 0x1d1   : > { %v4418_v23 = vpop.f32.mrb[6].mxu1 }
 0x1d2   : > { %v1978_v22 = vpop.f32.mrb[7].mxu1 }
 0x1d7   : > { %v6017_v5 = vpop.f32.mrb[8].mxu1 }
 0x1d8   : > { %v6019_v20 = vpop.f32.mrb[9].mxu1 }
 0x1d9   : > { %v6021_v44 = vpop.f32.mrb[10].mxu1 }
 0x1da   : > { %v6023_v32 = vpop.f32.mrb[11].mxu1 }
 0x1df   : > { %v6025_v28 = vpop.f32.mrb[12].mxu1 }
 0x1e0   : > { %v6027_v43 = vpop.f32.mrb[13].mxu1 }
 0x1e1   : > { %v6029_v33 = vpop.f32.mrb[14].mxu1 }
 0x1e2   : > { %v6031_v53 = vpop.f32.mrb[15].mxu1 }
 0x1e7   : > { %v4593_v12 = vpop.f32.mrb[0].mxu0 }
 0x1e8   : > { %v4627_v45 = vadd.f32 %v4593_v12, %v4413_v16  ;;  %v3105_v19 = vpop.f32.mrb[1].mxu0 }
 0x1e9   : > { %v4628_v54 = vadd.f32 %v3105_v19, %v1959_v62  ;;  %v4594_v2 = vpop.f32.mrb[2].mxu0 }
 0x1ea   : > { %v4107_v18 = vpack.c.bf16 %v4627_v45, %v4627_v45  ;;  %v4629_v55 = vadd.f32 %v4594_v2, %v4414_v49  ;;  %v3108_v60 = vpop.f32.mrb[3].mxu0  ;;  %v3501_v29 = vmul.f32 %v4627_v45, %v4627_v45  ;;  %v3429_v36 = vsel %vm952_vm2, %v4627_v45, 0.0 }
 0x1eb   : > { %v4105_v51 = vpack.c.bf16 %v4628_v54, %v4628_v54  ;;  %v3499_v7 = vmul.f32 %v4628_v54, %v4628_v54  ;;  %v4630_v26 = vadd.f32 %v3108_v60, %v1962_v8  ;;  %v3426_v50 = vsel %vm952_vm2, %v4628_v54, 0.0 }
 0x1ec   : > { %3395 = vst.msk [vmem:[%s6037_s27 + $0x8] sm:$0xf] %vm3392_vm8, %v4107_v18  ;;  %v4108_v35 = vpack.c.bf16 %v4629_v55, %v4629_v55  ;;  %v3502_v4 = vmul.f32 %v4629_v55, %v4629_v55  ;;  %v3534_v47 = vsel %vm952_vm2, %v3501_v29, 0.0  ;;  %v3431_v3 = vsel %vm952_vm2, %v4629_v55, 0.0 }
 0x1ed   : > { %3393 = vst.msk [vmem:[%s6037_s27] sm:$0xf] %vm3392_vm8, %v4105_v51  ;;  %v4106_v46 = vpack.c.bf16 %v4630_v26, %v4630_v26  ;;  %v3427_v17 = vsel %vm952_vm2, %v4630_v26, 0.0  ;;  %v3500_v31 = vmul.f32 %v4630_v26, %v4630_v26  ;;  %v3531_v0 = vsel %vm952_vm2, %v3499_v7, 0.0 }
 0x1ee   : > { %3396 = vst.msk [vmem:[%s6037_s27 + $0xc] sm:$0xf] %vm3392_vm8, %v4108_v35  ;;  %v3428_v41 = vadd.f32 %v3427_v17, %v3426_v50  ;;  %v3536_v24 = vsel %vm952_vm2, %v3502_v4, 0.0 }
 0x1ef   : > { %3394 = vst.msk [vmem:[%s6037_s27 + $0x4] sm:$0xf] %vm3392_vm8, %v4106_v46  ;;  %v3532_v21 = vsel %vm952_vm2, %v3500_v31, 0.0  ;;  %v4597_v34 = vpop.f32.mrb[4].mxu0 }
 0x1f0   : > { %v3430_v14 = vadd.f32 %v3429_v36, %v3428_v41  ;;  %v3533_v37 = vadd.f32 %v3532_v21, %v3531_v0  ;;  %v4631_v59 = vadd.f32 %v4597_v34, %v4417_v52  ;;  %v3121_v15 = vpop.f32.mrb[5].mxu0 }
 0x1f1   : > { %v4632_v57 = vadd.f32 %v3121_v15, %v1975_v48  ;;  %v4598_v38 = vpop.f32.mrb[6].mxu0 }
 0x1f2   : > { %v3535_v63 = vadd.f32 %v3534_v47, %v3533_v37  ;;  %v4111_v9 = vpack.c.bf16 %v4631_v59, %v4631_v59  ;;  %v3124_v39 = vpop.f32.mrb[7].mxu0  ;;  %v3432_v61 = vadd.f32 %v3431_v3, %v3430_v14  ;;  %v4633_v30 = vadd.f32 %v4598_v38, %v4418_v23 }
 0x1f3   : > { %v4109_v27 = vpack.c.bf16 %v4632_v57, %v4632_v57  ;;  %v3433_v40 = vsel %vm952_vm2, %v4632_v57, 0.0  ;;  %v3503_v58 = vmul.f32 %v4632_v57, %v4632_v57  ;;  %v4634_v13 = vadd.f32 %v3124_v39, %v1978_v22 }
 0x1f4   : > { %3399 = vst.msk [vmem:[%s6037_s27 + $0x18] sm:$0xf] %vm3392_vm8, %v4111_v9  ;;  %v3537_v6 = vadd.f32 %v3536_v24, %v3535_v63  ;;  %v3434_v56 = vadd.f32 %v3433_v40, %v3432_v61  ;;  %v3505_v42 = vmul.f32 %v4631_v59, %v4631_v59  ;;  %v4112_v25 = vpack.c.bf16 %v4633_v30, %v4633_v30 }
 0x1f5   : > { %3397 = vst.msk [vmem:[%s6037_s27 + $0x10] sm:$0xf] %vm3392_vm8, %v4109_v27  ;;  %v3538_v1 = vsel %vm952_vm2, %v3503_v58, 0.0  ;;  %v4110_v11 = vpack.c.bf16 %v4634_v13, %v4634_v13  ;;  %v3435_v16 = vsel %vm952_vm2, %v4634_v13, 0.0  ;;  %v3504_v62 = vmul.f32 %v4634_v13, %v4634_v13 }
 0x1f6   : > { %v3539_v10 = vadd.f32 %v3538_v1, %v3537_v6  ;;  %3400 = vst.msk [vmem:[%s6037_s27 + $0x1c] sm:$0xf] %vm3392_vm8, %v4112_v25  ;;  %v3436_v8 = vadd.f32 %v3435_v16, %v3434_v56  ;;  %v3437_v23 = vsel %vm952_vm2, %v4631_v59, 0.0  ;;  %v3506_v22 = vmul.f32 %v4633_v30, %v4633_v30 }
 0x1f7   : > { %v4601_v49 = vpop.f32.mrb[8].mxu0  ;;  %3398 = vst.msk [vmem:[%s6037_s27 + $0x14] sm:$0xf] %vm3392_vm8, %v4110_v11  ;;  %v3540_v12 = vsel %vm952_vm2, %v3504_v62, 0.0  ;;  %v3542_v54 = vsel %vm952_vm2, %v3505_v42, 0.0 }
 0x1f8   : > { %v4635_v52 = vadd.f32 %v4601_v49, %v6017_v5  ;;  %v3137_v48 = vpop.f32.mrb[9].mxu0  ;;  %v3438_v2 = vadd.f32 %v3437_v23, %v3436_v8  ;;  %v3541_v18 = vadd.f32 %v3540_v12, %v3539_v10  ;;  %v3439_v5 = vsel %vm952_vm2, %v4633_v30, 0.0 }
 0x1f9   : > { %v4636_v45 = vadd.f32 %v3137_v48, %v6019_v20  ;;  %v4602_v19 = vpop.f32.mrb[10].mxu0  ;;  %v3544_v46 = vsel %vm952_vm2, %v3506_v22, 0.0 }
 0x1fa   : > { %v4115_v55 = vpack.c.bf16 %v4635_v52, %v4635_v52  ;;  %v3140_v60 = vpop.f32.mrb[11].mxu0  ;;  %v3543_v29 = vadd.f32 %v3542_v54, %v3541_v18  ;;  %v3440_v35 = vadd.f32 %v3439_v5, %v3438_v2  ;;  %v4637_v20 = vadd.f32 %v4602_v19, %v6021_v44 }
 0x1fb   : > { %v4113_v51 = vpack.c.bf16 %v4636_v45, %v4636_v45  ;;  %v3441_v7 = vsel %vm952_vm2, %v4636_v45, 0.0  ;;  %v3507_v26 = vmul.f32 %v4636_v45, %v4636_v45  ;;  %v4638_v50 = vadd.f32 %v3140_v60, %v6023_v32 }
 0x1fc   : > { %3403 = vst.msk [vmem:[%s6037_s27 + $0x28] sm:$0xf] %vm3392_vm8, %v4115_v55  ;;  %v3509_v31 = vmul.f32 %v4635_v52, %v4635_v52  ;;  %v3442_v4 = vadd.f32 %v3441_v7, %v3440_v35  ;;  %v3545_v41 = vadd.f32 %v3544_v46, %v3543_v29  ;;  %v4116_v36 = vpack.c.bf16 %v4637_v20, %v4637_v20 }
 0x1fd   : > { %3401 = vst.msk [vmem:[%s6037_s27 + $0x20] sm:$0xf] %vm3392_vm8, %v4113_v51  ;;  %v3546_v17 = vsel %vm952_vm2, %v3507_v26, 0.0  ;;  %v4114_v0 = vpack.c.bf16 %v4638_v50, %v4638_v50  ;;  %v3443_v21 = vsel %vm952_vm2, %v4638_v50, 0.0  ;;  %v3508_v34 = vmul.f32 %v4638_v50, %v4638_v50 }
 0x1fe   : > { %v3547_v37 = vadd.f32 %v3546_v17, %v3545_v41  ;;  %3404 = vst.msk [vmem:[%s6037_s27 + $0x2c] sm:$0xf] %vm3392_vm8, %v4116_v36  ;;  %v3444_v44 = vadd.f32 %v3443_v21, %v3442_v4  ;;  %v3445_v15 = vsel %vm952_vm2, %v4635_v52, 0.0  ;;  %v3510_v47 = vmul.f32 %v4637_v20, %v4637_v20 }
 0x1ff   : > { %v4605_v14 = vpop.f32.mrb[12].mxu0  ;;  %3402 = vst.msk [vmem:[%s6037_s27 + $0x24] sm:$0xf] %vm3392_vm8, %v4114_v0  ;;  %v3548_v57 = vsel %vm952_vm2, %v3508_v34, 0.0  ;;  %v3550_v24 = vsel %vm952_vm2, %v3509_v31, 0.0 }
 0x200   : > { %v4639_v32 = vadd.f32 %v4605_v14, %v6025_v28  ;;  %v3153_v59 = vpop.f32.mrb[13].mxu0  ;;  %v3446_v63 = vadd.f32 %v3445_v15, %v3444_v44  ;;  %v3549_v9 = vadd.f32 %v3548_v57, %v3547_v37  ;;  %v3447_v28 = vsel %vm952_vm2, %v4637_v20, 0.0 }
 0x201   : > { %v4640_v38 = vadd.f32 %v3153_v59, %v6027_v43  ;;  %v4606_v3 = vpop.f32.mrb[14].mxu0  ;;  %v3552_v56 = vsel %vm952_vm2, %v3510_v47, 0.0 }
 0x202   : > { %v4119_v39 = vpack.c.bf16 %v4639_v32, %v4639_v32  ;;  %v3156_v27 = vpop.f32.mrb[15].mxu0  ;;  %v3551_v6 = vadd.f32 %v3550_v24, %v3549_v9  ;;  %v3448_v30 = vadd.f32 %v3447_v28, %v3446_v63  ;;  %v4641_v43 = vadd.f32 %v4606_v3, %v6029_v33 }
 0x203   : > { %v4117_v61 = vpack.c.bf16 %v4640_v38, %v4640_v38  ;;  %v3449_v40 = vsel %vm952_vm2, %v4640_v38, 0.0  ;;  %v3511_v58 = vmul.f32 %v4640_v38, %v4640_v38  ;;  %v4642_v13 = vadd.f32 %v3156_v27, %v6031_v53 }
 0x204   : > { %3407 = vst.msk [vmem:[%s6037_s27 + $0x38] sm:$0xf] %vm3392_vm8, %v4119_v39  ;;  %v3513_v42 = vmul.f32 %v4639_v32, %v4639_v32  ;;  %v3450_v10 = vadd.f32 %v3449_v40, %v3448_v30  ;;  %v3553_v25 = vadd.f32 %v3552_v56, %v3551_v6  ;;  %v4120_v11 = vpack.c.bf16 %v4641_v43, %v4641_v43 }
 0x205   : > { %3405 = vst.msk [vmem:[%s6037_s27 + $0x30] sm:$0xf] %vm3392_vm8, %v4117_v61  ;;  %v3554_v1 = vsel %vm952_vm2, %v3511_v58, 0.0  ;;  %v4118_v16 = vpack.c.bf16 %v4642_v13, %v4642_v13  ;;  %v3451_v62 = vsel %vm952_vm2, %v4642_v13, 0.0  ;;  %v3512_v49 = vmul.f32 %v4642_v13, %v4642_v13 }
 0x206   : > { %v3555_v33 = vadd.f32 %v3554_v1, %v3553_v25  ;;  %3408 = vst.msk [vmem:[%s6037_s27 + $0x3c] sm:$0xf] %vm3392_vm8, %v4120_v11  ;;  %v3452_v53 = vadd.f32 %v3451_v62, %v3450_v10  ;;  %v3453_v12 = vsel %vm952_vm2, %v4639_v32, 0.0  ;;  %v3514_v45 = vmul.f32 %v4641_v43, %v4641_v43 }
 0x207   : > { %v4465_v8 = vpop.f32.mrb[16].mxu1  ;;  %v4609_v52 = vpop.f32.mrb[16].mxu0  ;;  %3406 = vst.msk [vmem:[%s6037_s27 + $0x34] sm:$0xf] %vm3392_vm8, %v4118_v16  ;;  %v3556_v19 = vsel %vm952_vm2, %v3512_v49, 0.0  ;;  %v3558_v55 = vsel %vm952_vm2, %v3513_v42, 0.0 }
 0x208   : > { %v4643_v48 = vadd.f32 %v4609_v52, %v4465_v8  ;;  %v2263_v23 = vpop.f32.mrb[17].mxu1  ;;  %v3169_v22 = vpop.f32.mrb[17].mxu0  ;;  %v3454_v60 = vadd.f32 %v3453_v12, %v3452_v53  ;;  %v3557_v5 = vadd.f32 %v3556_v19, %v3555_v33  ;;  %v3455_v29 = vsel %vm952_vm2, %v4641_v43, 0.0 }
 0x209   : > { %v4644_v54 = vadd.f32 %v3169_v22, %v2263_v23  ;;  %v4466_v2 = vpop.f32.mrb[18].mxu1  ;;  %v4610_v18 = vpop.f32.mrb[18].mxu0  ;;  %v3560_v41 = vsel %vm952_vm2, %v3514_v45, 0.0 }
 0x20a   : > { %v4123_v51 = vpack.c.bf16 %v4643_v48, %v4643_v48  ;;  %v2266_v7 = vpop.f32.mrb[19].mxu1  ;;  %v3172_v26 = vpop.f32.mrb[19].mxu0  ;;  %v3559_v46 = vadd.f32 %v3558_v55, %v3557_v5  ;;  %v3456_v17 = vadd.f32 %v3455_v29, %v3454_v60  ;;  %v4645_v31 = vadd.f32 %v4610_v18, %v4466_v2 }
 0x20b   : > { %v4121_v35 = vpack.c.bf16 %v4644_v54, %v4644_v54  ;;  %v3457_v20 = vsel %vm952_vm2, %v4644_v54, 0.0  ;;  %v3515_v50 = vmul.f32 %v4644_v54, %v4644_v54  ;;  %v4646_v4 = vadd.f32 %v3172_v26, %v2266_v7 }
 0x20c   : > { %3411 = vst.msk [vmem:[%s6037_s27 + $0x48] sm:$0xf] %vm3392_vm8, %v4123_v51  ;;  %v3517_v0 = vmul.f32 %v4643_v48, %v4643_v48  ;;  %v3458_v21 = vadd.f32 %v3457_v20, %v3456_v17  ;;  %v3561_v34 = vadd.f32 %v3560_v41, %v3559_v46  ;;  %v4124_v14 = vpack.c.bf16 %v4645_v31, %v4645_v31 }
 0x20d   : > { %3409 = vst.msk [vmem:[%s6037_s27 + $0x40] sm:$0xf] %vm3392_vm8, %v4121_v35  ;;  %v3562_v36 = vsel %vm952_vm2, %v3515_v50, 0.0  ;;  %v4122_v37 = vpack.c.bf16 %v4646_v4, %v4646_v4  ;;  %v3459_v44 = vsel %vm952_vm2, %v4646_v4, 0.0  ;;  %v3516_v32 = vmul.f32 %v4646_v4, %v4646_v4 }
 0x20e   : > { %v3563_v47 = vadd.f32 %v3562_v36, %v3561_v34  ;;  %3412 = vst.msk [vmem:[%s6037_s27 + $0x4c] sm:$0xf] %vm3392_vm8, %v4124_v14  ;;  %v3460_v57 = vadd.f32 %v3459_v44, %v3458_v21  ;;  %v3461_v63 = vsel %vm952_vm2, %v4643_v48, 0.0  ;;  %v3518_v9 = vmul.f32 %v4645_v31, %v4645_v31 }
 0x20f   : > { %v4469_v59 = vpop.f32.mrb[20].mxu1  ;;  %v4613_v15 = vpop.f32.mrb[20].mxu0  ;;  %3410 = vst.msk [vmem:[%s6037_s27 + $0x44] sm:$0xf] %vm3392_vm8, %v4122_v37  ;;  %v3564_v39 = vsel %vm952_vm2, %v3516_v32, 0.0  ;;  %v3566_v40 = vsel %vm952_vm2, %v3517_v0, 0.0 }
 0x210   : > { %v4647_v38 = vadd.f32 %v4613_v15, %v4469_v59  ;;  %v2279_v3 = vpop.f32.mrb[21].mxu1  ;;  %v3185_v24 = vpop.f32.mrb[21].mxu0  ;;  %v3462_v58 = vadd.f32 %v3461_v63, %v3460_v57  ;;  %v3565_v6 = vadd.f32 %v3564_v39, %v3563_v47  ;;  %v3463_v56 = vsel %vm952_vm2, %v4645_v31, 0.0 }
 0x211   : > { %v4648_v27 = vadd.f32 %v3185_v24, %v2279_v3  ;;  %v4470_v28 = vpop.f32.mrb[22].mxu1  ;;  %v4614_v61 = vpop.f32.mrb[22].mxu0  ;;  %v3568_v49 = vsel %vm952_vm2, %v3518_v9, 0.0 }
 0x212   : > { %v4127_v30 = vpack.c.bf16 %v4647_v38, %v4647_v38  ;;  %v2282_v43 = vpop.f32.mrb[23].mxu1  ;;  %v3188_v13 = vpop.f32.mrb[23].mxu0  ;;  %v3567_v25 = vadd.f32 %v3566_v40, %v3565_v6  ;;  %v3464_v11 = vadd.f32 %v3463_v56, %v3462_v58  ;;  %v4649_v16 = vadd.f32 %v4614_v61, %v4470_v28 }
 0x213   : > { %v4125_v1 = vpack.c.bf16 %v4648_v27, %v4648_v27  ;;  %v3465_v42 = vsel %vm952_vm2, %v4648_v27, 0.0  ;;  %v3519_v10 = vmul.f32 %v4648_v27, %v4648_v27  ;;  %v4650_v62 = vadd.f32 %v3188_v13, %v2282_v43 }
 0x214   : > { %3415 = vst.msk [vmem:[%s6037_s27 + $0x58] sm:$0xf] %vm3392_vm8, %v4127_v30  ;;  %v3521_v52 = vmul.f32 %v4647_v38, %v4647_v38  ;;  %v3466_v33 = vadd.f32 %v3465_v42, %v3464_v11  ;;  %v3569_v53 = vadd.f32 %v3568_v49, %v3567_v25  ;;  %v4128_v48 = vpack.c.bf16 %v4649_v16, %v4649_v16 }
 0x215   : > { %3413 = vst.msk [vmem:[%s6037_s27 + $0x50] sm:$0xf] %vm3392_vm8, %v4125_v1  ;;  %v3570_v8 = vsel %vm952_vm2, %v3519_v10, 0.0  ;;  %v4126_v23 = vpack.c.bf16 %v4650_v62, %v4650_v62  ;;  %v3467_v22 = vsel %vm952_vm2, %v4650_v62, 0.0  ;;  %v3520_v12 = vmul.f32 %v4650_v62, %v4650_v62 }
 0x216   : > { %v3571_v54 = vadd.f32 %v3570_v8, %v3569_v53  ;;  %3416 = vst.msk [vmem:[%s6037_s27 + $0x5c] sm:$0xf] %vm3392_vm8, %v4128_v48  ;;  %v3468_v2 = vadd.f32 %v3467_v22, %v3466_v33  ;;  %v3469_v5 = vsel %vm952_vm2, %v4647_v38, 0.0  ;;  %v3522_v51 = vmul.f32 %v4649_v16, %v4649_v16 }
 0x217   : > { %v4473_v45 = vpop.f32.mrb[24].mxu1  ;;  %v4617_v19 = vpop.f32.mrb[24].mxu0  ;;  %3414 = vst.msk [vmem:[%s6037_s27 + $0x54] sm:$0xf] %vm3392_vm8, %v4126_v23  ;;  %v3572_v7 = vsel %vm952_vm2, %v3520_v12, 0.0  ;;  %v3574_v20 = vsel %vm952_vm2, %v3521_v52, 0.0 }
 0x218   : > { %v4651_v18 = vadd.f32 %v4617_v19, %v4473_v45  ;;  %v2295_v55 = vpop.f32.mrb[25].mxu1  ;;  %v3201_v60 = vpop.f32.mrb[25].mxu0  ;;  %v3470_v50 = vadd.f32 %v3469_v5, %v3468_v2  ;;  %v3573_v46 = vadd.f32 %v3572_v7, %v3571_v54  ;;  %v3471_v41 = vsel %vm952_vm2, %v4649_v16, 0.0 }
 0x219   : > { %v4652_v26 = vadd.f32 %v3201_v60, %v2295_v55  ;;  %v4474_v29 = vpop.f32.mrb[26].mxu1  ;;  %v4618_v35 = vpop.f32.mrb[26].mxu0  ;;  %v3576_v32 = vsel %vm952_vm2, %v3522_v51, 0.0 }
 0x21a   : > { %v4131_v17 = vpack.c.bf16 %v4651_v18, %v4651_v18  ;;  %v2298_v31 = vpop.f32.mrb[27].mxu1  ;;  %v3204_v4 = vpop.f32.mrb[27].mxu0  ;;  %v3575_v34 = vadd.f32 %v3574_v20, %v3573_v46  ;;  %v3472_v14 = vadd.f32 %v3471_v41, %v3470_v50  ;;  %v4653_v37 = vadd.f32 %v4618_v35, %v4474_v29 }
 0x21b   : > { %v4129_v36 = vpack.c.bf16 %v4652_v26, %v4652_v26  ;;  %v3473_v0 = vsel %vm952_vm2, %v4652_v26, 0.0  ;;  %v3523_v21 = vmul.f32 %v4652_v26, %v4652_v26  ;;  %v4654_v44 = vadd.f32 %v3204_v4, %v2298_v31 }
 0x21c   : > { %3419 = vst.msk [vmem:[%s6037_s27 + $0x68] sm:$0xf] %vm3392_vm8, %v4131_v17  ;;  %v3525_v15 = vmul.f32 %v4651_v18, %v4651_v18  ;;  %v3474_v47 = vadd.f32 %v3473_v0, %v3472_v14  ;;  %v3577_v57 = vadd.f32 %v3576_v32, %v3575_v34  ;;  %v4132_v38 = vpack.c.bf16 %v4653_v37, %v4653_v37 }
 0x21d   : > { %3417 = vst.msk [vmem:[%s6037_s27 + $0x60] sm:$0xf] %vm3392_vm8, %v4129_v36  ;;  %v3578_v59 = vsel %vm952_vm2, %v3523_v21, 0.0  ;;  %v4130_v3 = vpack.c.bf16 %v4654_v44, %v4654_v44  ;;  %v3475_v24 = vsel %vm952_vm2, %v4654_v44, 0.0  ;;  %v3524_v63 = vmul.f32 %v4654_v44, %v4654_v44 }
 0x21e   : > { %v3579_v27 = vadd.f32 %v3578_v59, %v3577_v57  ;;  %3420 = vst.msk [vmem:[%s6037_s27 + $0x6c] sm:$0xf] %vm3392_vm8, %v4132_v38  ;;  %v3476_v28 = vadd.f32 %v3475_v24, %v3474_v47  ;;  %v3477_v6 = vsel %vm952_vm2, %v4651_v18, 0.0  ;;  %v3526_v30 = vmul.f32 %v4653_v37, %v4653_v37  ;;  %v3425_v47 = vld [vmem:[%s6005_s17] sm:$0x1] }
 0x21f   : > { %v4477_v9 = vpop.f32.mrb[28].mxu1  ;;  %v4621_v39 = vpop.f32.mrb[28].mxu0  ;;  %3418 = vst.msk [vmem:[%s6037_s27 + $0x64] sm:$0xf] %vm3392_vm8, %v4130_v3  ;;  %v3580_v43 = vsel %vm952_vm2, %v3524_v63, 0.0  ;;  %v3582_v42 = vsel %vm952_vm2, %v3525_v15, 0.0 }
 0x220   : > { %v4655_v61 = vadd.f32 %v4621_v39, %v4477_v9  ;;  %v2311_v40 = vpop.f32.mrb[29].mxu1  ;;  %v3217_v58 = vpop.f32.mrb[29].mxu0  ;;  %v3478_v10 = vadd.f32 %v3477_v6, %v3476_v28  ;;  %v3581_v25 = vadd.f32 %v3580_v43, %v3579_v27  ;;  %v3479_v49 = vsel %vm952_vm2, %v4653_v37, 0.0  ;;  %v3498_v3 = vld [vmem:[%s6011_s20] sm:$0x1] }
 0x221   : > { %v4656_v13 = vadd.f32 %v3217_v58, %v2311_v40  ;;  %v4478_v56 = vpop.f32.mrb[30].mxu1  ;;  %v4622_v1 = vpop.f32.mrb[30].mxu0  ;;  %v3584_v12 = vsel %vm952_vm2, %v3526_v30, 0.0 }
 0x222   : > { %v4135_v11 = vpack.c.bf16 %v4655_v61, %v4655_v61  ;;  %v2314_v16 = vpop.f32.mrb[31].mxu1  ;;  %v3220_v62 = vpop.f32.mrb[31].mxu0  ;;  %v3583_v53 = vadd.f32 %v3582_v42, %v3581_v25  ;;  %v3480_v48 = vadd.f32 %v3479_v49, %v3478_v10  ;;  %v4657_v23 = vadd.f32 %v4622_v1, %v4478_v56 }
 0x223   : > { %v4133_v8 = vpack.c.bf16 %v4656_v13, %v4656_v13  ;;  %v3481_v52 = vsel %vm952_vm2, %v4656_v13, 0.0  ;;  %v3527_v33 = vmul.f32 %v4656_v13, %v4656_v13  ;;  %v4658_v22 = vadd.f32 %v3220_v62, %v2314_v16 }
 0x224   : > { %3423 = vst.msk [vmem:[%s6037_s27 + $0x78] sm:$0xf] %vm3392_vm8, %v4135_v11  ;;  %v3482_v19 = vadd.f32 %v3481_v52, %v3480_v48  ;;  %v3585_v54 = vadd.f32 %v3584_v12, %v3583_v53  ;;  %v4136_v2 = vpack.c.bf16 %v4657_v23, %v4657_v23  ;;  %v3529_v18 = vmul.f32 %v4655_v61, %v4655_v61 }
 0x225   : > { %3421 = vst.msk [vmem:[%s6037_s27 + $0x70] sm:$0xf] %vm3392_vm8, %v4133_v8  ;;  %v3586_v45 = vsel %vm952_vm2, %v3527_v33, 0.0  ;;  %v4134_v55 = vpack.c.bf16 %v4658_v22, %v4658_v22  ;;  %v3483_v60 = vsel %vm952_vm2, %v4658_v22, 0.0  ;;  %v3528_v5 = vmul.f32 %v4658_v22, %v4658_v22 }
 0x226   : > { %v3587_v51 = vadd.f32 %v3586_v45, %v3585_v54  ;;  %3424 = vst.msk [vmem:[%s6037_s27 + $0x7c] sm:$0xf] %vm3392_vm8, %v4136_v2  ;;  %v3484_v7 = vadd.f32 %v3483_v60, %v3482_v19  ;;  %v3485_v26 = vsel %vm952_vm2, %v4655_v61, 0.0  ;;  %v3530_v29 = vmul.f32 %v4657_v23, %v4657_v23 }
 0x227   : > { %3422 = vst.msk [vmem:[%s6037_s27 + $0x74] sm:$0xf] %vm3392_vm8, %v4134_v55  ;;  %v3588_v35 = vsel %vm952_vm2, %v3528_v5, 0.0  ;;  %v3590_v46 = vsel %vm952_vm2, %v3529_v18, 0.0  ;;  %v3487_v17 = vsel %vm952_vm2, %v4657_v23, 0.0 }
 0x228   : > { %v3486_v20 = vadd.f32 %v3485_v26, %v3484_v7  ;;  %v3589_v50 = vadd.f32 %v3588_v35, %v3587_v51  ;;  %v3592_v41 = vsel %vm952_vm2, %v3530_v29, 0.0 }
 0x22a   : > { %v3488_v31 = vadd.f32 %v3487_v17, %v3486_v20  ;;  %v3591_v4 = vadd.f32 %v3590_v46, %v3589_v50 }
 0x22c   : > { %v3489_v36 = vrot.slane %v3488_v31, 4  ;;  %v3593_v0 = vadd.f32 %v3592_v41, %v3591_v4 }
 0x22e   : > { %v3490_v21 = vadd.f32 %v3489_v36, %v3488_v31  ;;  %v3594_v34 = vrot.slane %v3593_v0, 4 }
 0x230   : > { %v3491_v14 = vrot.slane %v3490_v21, 2  ;;  %v3595_v37 = vadd.f32 %v3594_v34, %v3593_v0 }
 0x232   : > { %v3492_v44 = vadd.f32 %v3491_v14, %v3490_v21  ;;  %v3596_v32 = vrot.slane %v3595_v37, 2 }
 0x234   : > { %v3493_v59 = vrot.slane %v3492_v44, 1  ;;  %v3597_v15 = vadd.f32 %v3596_v32, %v3595_v37 }
 0x236   : > { %v3494_v57 = vadd.f32 %v3493_v59, %v3492_v44  ;;  %v3598_v38 = vrot.slane %v3597_v15, 1 }
 0x238   : > { %v3495_v24 = vadd.f32 %v3494_v57, %v3425_v47  ;;  %v3599_v63 = vadd.f32 %v3598_v38, %v3597_v15 }
 0x23a   : > { %3497 = vst.msk [vmem:[%s6005_s17] sm:$0x1] %vm439_vm7, %v3495_v24  ;;  %v3600_v9 = vadd.f32 %v3599_v63, %v3498_v3 }
 0x23c   : > { %3601 = vst.msk [vmem:[%s6011_s20] sm:$0x1] %vm439_vm7, %v3600_v9 }
 0x23d PF: > { %s17_s23 = sadd.s32 1, %s4974_s23   ;;  %s6271_s21 = smov %s4970_s22 }
 0x23e   : > { %p14_p5 = scmp.ge.s32.totalorder %s17_s23, 4   ;;  %s6272_s22 = smov %s6274_s24 }
 0x240   :  { %16 = sbr.rel (!%p14_p5) target bundleno = 2 (0x2), region = 108 }

</bundles_post_ra>
